<compile_context>
chip_gen: v6e
topology: v6e:2x2x1
jax: 0.10.0
libtpu: 0.0.40
codegen_flags: <defaults>
</compile_context>

<pallas_src>
import math

import jax
import jax.numpy as jnp
from jax.experimental import pallas as pl
from jax.experimental.pallas import tpu as pltpu

EPS_LN = 1e-5        # nn.LayerNorm default eps
EPS_MSG = 1e-8       # message normalization eps
_EDGE_TILE = 256     # edge-tile rows (review: 256-512; edges are padded to a multiple)
BF16 = jnp.bfloat16


# ---------------------------------------------------------------------------
# small helpers
# ---------------------------------------------------------------------------
def _vmem_limit_bytes():
    """Generation-aware scoped-VMEM limit (~96 MiB on v5e/v6e, ~48 MiB on v7x)."""
    try:
        cap = int(pltpu.get_tpu_info().vmem_capacity_bytes)
        return min(cap * 3 // 4, 96 * 1024 * 1024)
    except Exception:
        return 32 * 1024 * 1024


def _silu(x):
    return x * jax.nn.sigmoid(x)


def _layernorm(x, gamma, beta):
    mu = jnp.mean(x, axis=-1, keepdims=True)
    var = jnp.mean((x - mu) ** 2, axis=-1, keepdims=True)
    return (x - mu) * jax.lax.rsqrt(var + EPS_LN) * gamma + beta


def _dot(a, b):
    return jnp.dot(a, b, preferred_element_type=jnp.float32)


def _dot_t(a, b):
    # contract over axis 0 of both operands: (T, N) x (T, H) -> (N, H)  (== a.T @ b)
    return jax.lax.dot_general(a, b, (((0,), (0,)), ((), ())),
                               preferred_element_type=jnp.float32)


# ---------------------------------------------------------------------------
# the fused kernel: whole EGNN forward,  grid = (n_layers, n_edge_tiles)
# ---------------------------------------------------------------------------
def egnn_fused_kernel(
        # data
        feat_ref, edata_ref, invdeg_ref, pmean_ref,
        # input projection
        inw_ref, inb_ref, ing_ref, inbeta_ref,
        # per-layer (stacked) edge-MLP weights
        ew1i_ref, ew1j_ref, ew1e_ref, eb1_ref, ew2_ref, eb2_ref, ew3_ref, eb3_ref,
        # per-layer (stacked) node-MLP + LayerNorm weights
        nw1x_ref, nw1a_ref, nb1_ref, nw2_ref, nb2_ref, lng_ref, lnb_ref,
        # output projection
        ow1_ref, ob1_ref, og_ref, obeta_ref, ow2_ref, ob2_ref,
        # output
        out_ref,
        # VMEM scratch
        x_cur, xw_i, xw_j, agg):
    layer = pl.program_id(0)
    tile = pl.program_id(1)
    last_layer = pl.num_programs(0) - 1
    last_tile = pl.num_programs(1) - 1

    # ---- input projection: Linear -> LayerNorm -> SiLU  (Dropout == id, eval) ----
    @pl.when((layer == 0) & (tile == 0))
    def _input_proj():
        h = _dot(feat_ref[...].astype(BF16), inw_ref[...]) + inb_ref[...]
        x_cur[...] = _silu(_layernorm(h, ing_ref[...], inbeta_ref[...]))

    # ---- layer start: zero accumulator, gather-after-projection precompute ----
    @pl.when(tile == 0)
    def _layer_init():
        agg[...] = jnp.zeros_like(agg)
        xb = x_cur[...].astype(BF16)
        xw_i[...] = _dot(xb, ew1i_ref[...]).astype(BF16)
        xw_j[...] = _dot(xb, ew1j_ref[...]).astype(BF16)

    # ---- per-edge-tile work ----
    ed = edata_ref[...]                          # (TE, PACK) f32, packed edge streams
    te = ed.shape[0]
    n_nodes = x_cur.shape[0]
    ed_dim = ew1e_ref.shape[0]
    dst_f = ed[:, 0:1]                           # float node ids (pad rows == -1)
    src_f = ed[:, 1:2]
    inv_d = ed[:, 2:3]                           # 1/(dist+eps) (0 on pad rows)
    ea = ed[:, 3:3 + ed_dim].astype(BF16)        # edge_attr tile

    ids = jax.lax.broadcasted_iota(jnp.int32, (te, n_nodes), 1).astype(jnp.float32)
    gi = (dst_f == ids).astype(BF16)             # (TE, N) one-hot: x_i = x[dst]
    gj = (src_f == ids).astype(BF16)             # (TE, N) one-hot: x_j = x[src]

    # edge_mlp(cat([x_i, x_j, edge_attr])), first Linear folded into xw_i / xw_j
    h = (_dot(gi, xw_i[...]) + _dot(gj, xw_j[...]) +
         _dot(ea, ew1e_ref[...]) + eb1_ref[...])
    h = _silu(h)
    h = _silu(_dot(h.astype(BF16), ew2_ref[...]) + eb2_ref[...])
    msg = (_dot(h.astype(BF16), ew3_ref[...]) + eb3_ref[...]) * inv_d     # (TE, H) f32

    # scatter-add keyed by dst via the *transposed* gather selector (contract over TE);
    # pad rows (dst == -1) have all-zero selector columns and inv_d == 0, so they drop.
    agg[...] += _dot_t(gi, msg.astype(BF16))

    # ---- layer end: mean aggregation, node MLP, residual + LayerNorm ----
    @pl.when(tile == last_tile)
    def _layer_finalize():
        x = x_cur[...]
        agg_mean = agg[...] * invdeg_ref[...]
        hn = _silu(_dot(x.astype(BF16), nw1x_ref[...]) +
                   _dot(agg_mean.astype(BF16), nw1a_ref[...]) + nb1_ref[...])
        y = _dot(hn.astype(BF16), nw2_ref[...]) + nb2_ref[...]
        x_cur[...] = _layernorm(y + x, lng_ref[...], lnb_ref[...])

    # ---- after the last layer: output projection fused with global mean pooling ----
    @pl.when((tile == last_tile) & (layer == last_layer))
    def _output_pool():
        h = _dot(x_cur[...].astype(BF16), ow1_ref[...]) + ob1_ref[...]
        h = _silu(_layernorm(h, og_ref[...], obeta_ref[...]))
        y = _dot(h.astype(BF16), ow2_ref[...]) + ob2_ref[...]            # (N, OUT) f32
        out_ref[...] = _dot(pmean_ref[...], y)                           # (B, OUT) f32


# ---------------------------------------------------------------------------
# forward wrapper (one pallas_call for the whole network)
# ---------------------------------------------------------------------------
def egnn_forward(packed, node_features, edge_index, edge_attr, node_pos, batch,
                 num_graphs):
    del node_pos   # update_pos=False -> positions never feed node features
    N = node_features.shape[0]
    E, ED = edge_attr.shape
    IN, H = packed["in_w"].shape
    n_layers = packed["e_w1i"].shape[0]
    OUT = packed["o_w2"].shape[1]
    assert packed["e_w1e"].shape[1] == ED

    src = edge_index[0].astype(jnp.int32)   # x_j source nodes
    dst = edge_index[1].astype(jnp.int32)   # x_i targets / aggregation index

    # ---- one-time glue (plain JAX): pack the five tiny per-edge streams
    #      [dst, src, 1/(dist+eps), edge_attr] into ONE lane-dense array, pad to a
    #      tile multiple; precompute 1/deg and the mean-pool matrix ----
    te = _EDGE_TILE
    n_tiles = int(pl.cdiv(E, te))
    e_pad = n_tiles * te
    pack_w = max(8, 3 + ED)
    edata = jnp.zeros((e_pad, pack_w), jnp.float32)
    edata = edata.at[:, 0:2].set(-1.0)                     # pad rows never match a node
    edata = edata.at[:E, 0].set(dst.astype(jnp.float32))
    edata = edata.at[:E, 1].set(src.astype(jnp.float32))
    edata = edata.at[:E, 2].set(1.0 / (edge_attr[:, 0] + EPS_MSG))
    edata = edata.at[:E, 3:3 + ED].set(edge_attr.astype(jnp.float32))

    deg = jax.ops.segment_sum(jnp.ones((E,), jnp.float32), dst, num_segments=N)
    inv_deg = (1.0 / jnp.clip(deg, 1.0, None))[:, None]    # (N, 1) mean aggregation

    onehot = (batch[None, :] == jnp.arange(num_graphs)[:, None]).astype(jnp.float32)
    cnt = jnp.clip(jnp.sum(onehot, axis=1, keepdims=True), 1.0, None)
    p_mean = onehot / cnt                                  # (B, N) global mean pool

    # ---- block specs ----
    def res(shape):            # grid-invariant resident block
        return pl.BlockSpec(shape, lambda l, t: (0,) * len(shape))

    def lay(shape2d):          # per-layer stacked weight, leading layer axis squeezed
        return pl.BlockSpec((None,) + tuple(shape2d), lambda l, t: (l, 0, 0))

    in_specs = [
        res((N, IN)),                                       # node features
        pl.BlockSpec((te, pack_w), lambda l, t: (t, 0)),    # packed edge tile
        res((N, 1)),                                        # 1/deg
        res((num_graphs, N)),                               # mean-pool matrix
        res((IN, H)), res((1, H)), res((1, H)), res((1, H)),        # input projection
        lay((H, H)), lay((H, H)), lay((ED, H)), lay((1, H)),        # edge MLP
        lay((H, H)), lay((1, H)), lay((H, H)), lay((1, H)),
        lay((H, H)), lay((H, H)), lay((1, H)), lay((H, H)), lay((1, H)),   # node MLP
        lay((1, H)), lay((1, H)),                                          # LayerNorm
        res((H, H)), res((1, H)), res((1, H)), res((1, H)),          # output projection
        res((H, OUT)), res((1, OUT)),
    ]

    grid_spec = pltpu.PrefetchScalarGridSpec(
        num_scalar_prefetch=0,
        grid=(n_layers, n_tiles),
        in_specs=in_specs,
        out_specs=pl.BlockSpec((num_graphs, OUT), lambda l, t: (0, 0)),
        scratch_shapes=[
            pltpu.VMEM((N, H), jnp.float32),   # x, carried across layers (fp32)
            pltpu.VMEM((N, H), BF16),          # x @ W1_i  (gather-after-projection)
            pltpu.VMEM((N, H), BF16),          # x @ W1_j
            pltpu.VMEM((N, H), jnp.float32),   # message accumulator (fp32)
        ],
    )

    # advisory cost estimate so XLA schedules the glue ops around the custom call
    flops = (2 * n_layers * (e_pad * (3 * N + ED + 2 * H) * H + 5 * N * H * H)
             + 2 * N * (IN * H + H * H + H * OUT) + 2 * num_graphs * N * OUT)
    transc = n_layers * (2 * e_pad * H + N * H) + 2 * N * H
    bytes_acc = (int(node_features.size) * 4 + n_layers * int(edata.size) * 4
                 + sum(int(v.size) * v.dtype.itemsize for v in packed.values())
                 + num_graphs * OUT * 4)
    cost = pl.CostEstimate(flops=int(flops), transcendentals=int(transc),
                           bytes_accessed=int(bytes_acc))

    return pl.pallas_call(
        egnn_fused_kernel,
        out_shape=jax.ShapeDtypeStruct((num_graphs, OUT), jnp.float32),
        grid_spec=grid_spec,
        compiler_params=pltpu.CompilerParams(
            dimension_semantics=("arbitrary", "arbitrary"),
            vmem_limit_bytes=_vmem_limit_bytes()),
        cost_estimate=cost,
    )(node_features, edata, inv_deg, p_mean,
      packed["in_w"], packed["in_b"], packed["in_g"], packed["in_beta"],
      packed["e_w1i"], packed["e_w1j"], packed["e_w1e"], packed["e_b1"],
      packed["e_w2"], packed["e_b2"], packed["e_w3"], packed["e_b3"],
      packed["n_w1x"], packed["n_w1a"], packed["n_b1"],
      packed["n_w2"], packed["n_b2"], packed["ln_g"], packed["ln_b"],
      packed["o_w1"], packed["o_b1"], packed["o_g"], packed["o_beta"],
      packed["o_w2"], packed["o_b2"])


# ---------------------------------------------------------------------------
# parameter construction (deterministic, PyTorch-Linear-like init, fp32)
# ---------------------------------------------------------------------------
def _linear(key, fan_in, fan_out):
    kw, kb = jax.random.split(key)
    bound = 1.0 / math.sqrt(fan_in)
    w = jax.random.uniform(kw, (fan_in, fan_out), jnp.float32, -bound, bound)
    b = jax.random.uniform(kb, (1, fan_out), jnp.float32, -bound, bound)
    return w, b


def make_params(key, input_dim, hidden_dim, output_dim, n_layers, edge_dim):
    keys = jax.random.split(key, 2 + n_layers)
    H = hidden_dim
    w, b = _linear(keys[0], input_dim, H)
    params = {
        "input_proj": {"w": w, "b": b,
                       "gamma": jnp.ones((1, H), jnp.float32),
                       "beta": jnp.zeros((1, H), jnp.float32)},
        "layers": [],
    }
    for li in range(n_layers):
        lk = jax.random.split(keys[2 + li], 5)
        e_w1, e_b1 = _linear(lk[0], 2 * H + edge_dim, H)
        e_w2, e_b2 = _linear(lk[1], H, H)
        e_w3, e_b3 = _linear(lk[2], H, H)
        n_w1, n_b1 = _linear(lk[3], 2 * H, H)
        n_w2, n_b2 = _linear(lk[4], H, H)
        params["layers"].append({
            "e_w1i": e_w1[:H], "e_w1j": e_w1[H:2 * H], "e_w1e": e_w1[2 * H:],
            "e_b1": e_b1, "e_w2": e_w2, "e_b2": e_b2, "e_w3": e_w3, "e_b3": e_b3,
            "n_w1x": n_w1[:H], "n_w1a": n_w1[H:], "n_b1": n_b1,
            "n_w2": n_w2, "n_b2": n_b2,
            "ln_g": jnp.ones((1, H), jnp.float32),
            "ln_b": jnp.zeros((1, H), jnp.float32),
        })
    ok = jax.random.split(keys[1], 2)
    w1, b1 = _linear(ok[0], H, H)
    w2, b2 = _linear(ok[1], H, output_dim)
    params["output_proj"] = {"w1": w1, "b1": b1,
                             "gamma": jnp.ones((1, H), jnp.float32),
                             "beta": jnp.zeros((1, H), jnp.float32),
                             "w2": w2, "b2": b2}
    return params


def pack_params(params):
    """Stack per-layer weights on a leading layer axis; weights -> bf16, biases/LN fp32."""
    bf = lambda a: a.astype(jnp.bfloat16)
    f32 = lambda a: a.astype(jnp.float32)
    layers = params["layers"]

    def stk(k, cast):
        return cast(jnp.stack([lp[k] for lp in layers], axis=0))

    ip, op = params["input_proj"], params["output_proj"]
    return {
        "in_w": bf(ip["w"]), "in_b": f32(ip["b"]),
        "in_g": f32(ip["gamma"]), "in_beta": f32(ip["beta"]),
        "e_w1i": stk("e_w1i", bf), "e_w1j": stk("e_w1j", bf), "e_w1e": stk("e_w1e", bf),
        "e_b1": stk("e_b1", f32), "e_w2": stk("e_w2", bf), "e_b2": stk("e_b2", f32),
        "e_w3": stk("e_w3", bf), "e_b3": stk("e_b3", f32),
        "n_w1x": stk("n_w1x", bf), "n_w1a": stk("n_w1a", bf), "n_b1": stk("n_b1", f32),
        "n_w2": stk("n_w2", bf), "n_b2": stk("n_b2", f32),
        "ln_g": stk("ln_g", f32), "ln_b": stk("ln_b", f32),
        "o_w1": bf(op["w1"]), "o_b1": f32(op["b1"]),
        "o_g": f32(op["gamma"]), "o_beta": f32(op["beta"]),
        "o_w2": bf(op["w2"]), "o_b2": f32(op["b2"]),
    }


# ---------------------------------------------------------------------------
# pure-JAX fp32 reference (mirrors the PyTorch module) for a sanity check
# ---------------------------------------------------------------------------
def egnn_reference(params, node_features, edge_index, edge_attr, node_pos, batch,
                   num_graphs):
    del node_pos
    N = node_features.shape[0]
    src, dst = edge_index[0], edge_index[1]

    def silu(x):
        return x * jax.nn.sigmoid(x)

    def ln(x, g, b):
        mu = x.mean(-1, keepdims=True)
        var = ((x - mu) ** 2).mean(-1, keepdims=True)
        return (x - mu) / jnp.sqrt(var + EPS_LN) * g + b

    ip = params["input_proj"]
    x = silu(ln(node_features @ ip["w"] + ip["b"], ip["gamma"], ip["beta"]))

    for lp in params["layers"]:
        xi, xj = x[dst], x[src]
        h = silu(xi @ lp["e_w1i"] + xj @ lp["e_w1j"] + edge_attr @ lp["e_w1e"]
                 + lp["e_b1"])
        h = silu(h @ lp["e_w2"] + lp["e_b2"])
        msg = (h @ lp["e_w3"] + lp["e_b3"]) / (edge_attr[:, 0:1] + EPS_MSG)
        agg_sum = jax.ops.segment_sum(msg, dst, num_segments=N)
        deg = jax.ops.segment_sum(jnp.ones((msg.shape[0],), jnp.float32), dst,
                                  num_segments=N)
        agg = agg_sum / jnp.clip(deg, 1.0, None)[:, None]
        h = silu(x @ lp["n_w1x"] + agg @ lp["n_w1a"] + lp["n_b1"])
        y = h @ lp["n_w2"] + lp["n_b2"]
        x = ln(y + x, lp["ln_g"], lp["ln_b"])

    op = params["output_proj"]
    h = x @ op["w1"] + op["b1"]
    h = silu(ln(h, op["gamma"], op["beta"]))
    x = h @ op["w2"] + op["b2"]

    gsum = jax.ops.segment_sum(x, batch, num_segments=num_graphs)
    gcnt = jax.ops.segment_sum(jnp.ones((N,), jnp.float32), batch,
                               num_segments=num_graphs)
    return gsum / jnp.clip(gcnt, 1.0, None)[:, None]


# ---------------------------------------------------------------------------
if __name__ == "__main__":
    # small shapes consistent with the module's forward
    # (hidden/output = 128 keep the kernel output lane-dense; the module's real
    #  defaults 256/512 are already multiples of 128)
    N, E, B = 16, 32, 2
    INPUT_DIM, HIDDEN_DIM, OUTPUT_DIM = 64, 128, 128
    N_LAYERS, EDGE_DIM = 2, 4

    key = jax.random.PRNGKey(0)
    k_par, k_x, k_src, k_dst, k_ea, k_pos = jax.random.split(key, 6)

    params = make_params(k_par, INPUT_DIM, HIDDEN_DIM, OUTPUT_DIM,
                         N_LAYERS, EDGE_DIM)
    packed = pack_params(params)

    node_features = jax.random.normal(k_x, (N, INPUT_DIM), jnp.float32)
    src = jax.random.randint(k_src, (E,), 0, N, jnp.int32)
    dst = jax.random.randint(k_dst, (E,), 0, N, jnp.int32)
    edge_index = jnp.stack([src, dst], axis=0)                   # (2, E)
    edge_attr = jax.random.normal(k_ea, (E, EDGE_DIM), jnp.float32)
    edge_attr = edge_attr.at[:, 0].set(jnp.abs(edge_attr[:, 0]) + 0.5)  # dist > 0
    node_pos = jax.random.normal(k_pos, (N, 3), jnp.float32)     # unused (update_pos=False)
    batch = jnp.concatenate([jnp.zeros((N // 2,), jnp.int32),
                             jnp.ones((N - N // 2,), jnp.int32)])

    fwd = jax.jit(egnn_forward, static_argnums=(6,))
    out = fwd(packed, node_features, edge_index, edge_attr, node_pos, batch, B)
    out = jax.block_until_ready(out)

    ref = egnn_reference(params, node_features, edge_index, edge_attr,
                         node_pos, batch, B)
    ref = jax.block_until_ready(ref)

    assert out.shape == (B, OUTPUT_DIM)
    assert bool(jnp.all(jnp.isfinite(out)))
    max_diff = float(jnp.max(jnp.abs(out - ref)))
    # bf16 MXU path vs fp32 reference -> loosened tolerance
    assert bool(jnp.allclose(out, ref, rtol=5e-2, atol=5e-2)), f"max diff {max_diff}"

    print("KERNEL_OK")
</pallas_src>

<mosaic_0001>
module attributes {stable_mosaic.version = 11 : i64} {
  func.func private @main(%arg0: i32) attributes {dimension_semantics = [#tpu.dimension_semantics<core_parallel>], iteration_bounds = array<i64: 2>, tpu.core_type = #tpu.core_type<sc_scalar_subcore>, window_params = []} {
    return
  }
}

module attributes {stable_mosaic.version = 11 : i64} {
  func.func private @main(%arg0: i32) attributes {dimension_semantics = [#tpu.dimension_semantics<core_parallel>], iteration_bounds = array<i64: 2>, tpu.core_type = #tpu.core_type<sc_scalar_subcore>, window_params = []} {
    return
  }
}

module attributes {stable_mosaic.version = 11 : i64} {
  func.func @egnn_fused_kernel(%arg0: i32, %arg1: i32, %arg2: memref<16x64xf32, #tpu.memory_space<vmem>>, %arg3: memref<256x8xf32, #tpu.memory_space<vmem>>, %arg4: memref<16x1xf32, #tpu.memory_space<vmem>>, %arg5: memref<2x16xf32, #tpu.memory_space<vmem>>, %arg6: memref<64x128xbf16, #tpu.memory_space<vmem>>, %arg7: memref<1x128xf32, #tpu.memory_space<vmem>>, %arg8: memref<1x128xf32, #tpu.memory_space<vmem>>, %arg9: memref<1x128xf32, #tpu.memory_space<vmem>>, %arg10: memref<1x128x128xbf16, #tpu.memory_space<vmem>>, %arg11: memref<1x128x128xbf16, #tpu.memory_space<vmem>>, %arg12: memref<1x4x128xbf16, #tpu.memory_space<vmem>>, %arg13: memref<1x1x128xf32, #tpu.memory_space<vmem>>, %arg14: memref<1x128x128xbf16, #tpu.memory_space<vmem>>, %arg15: memref<1x1x128xf32, #tpu.memory_space<vmem>>, %arg16: memref<1x128x128xbf16, #tpu.memory_space<vmem>>, %arg17: memref<1x1x128xf32, #tpu.memory_space<vmem>>, %arg18: memref<1x128x128xbf16, #tpu.memory_space<vmem>>, %arg19: memref<1x128x128xbf16, #tpu.memory_space<vmem>>, %arg20: memref<1x1x128xf32, #tpu.memory_space<vmem>>, %arg21: memref<1x128x128xbf16, #tpu.memory_space<vmem>>, %arg22: memref<1x1x128xf32, #tpu.memory_space<vmem>>, %arg23: memref<1x1x128xf32, #tpu.memory_space<vmem>>, %arg24: memref<1x1x128xf32, #tpu.memory_space<vmem>>, %arg25: memref<128x128xbf16, #tpu.memory_space<vmem>>, %arg26: memref<1x128xf32, #tpu.memory_space<vmem>>, %arg27: memref<1x128xf32, #tpu.memory_space<vmem>>, %arg28: memref<1x128xf32, #tpu.memory_space<vmem>>, %arg29: memref<128x128xbf16, #tpu.memory_space<vmem>>, %arg30: memref<1x128xf32, #tpu.memory_space<vmem>>, %arg31: memref<2x128xf32, #tpu.memory_space<vmem>>, %arg32: memref<16x128xf32, #tpu.memory_space<vmem>>, %arg33: memref<16x128xbf16, #tpu.memory_space<vmem>>, %arg34: memref<16x128xbf16, #tpu.memory_space<vmem>>, %arg35: memref<16x128xf32, #tpu.memory_space<vmem>>) attributes {dimension_semantics = [#tpu.dimension_semantics<arbitrary>, #tpu.dimension_semantics<arbitrary>], iteration_bounds = array<i64: 2, 1>, scalar_prefetch = 0 : i64, scratch_operands = 4 : i64, tpu.core_type = #tpu.core_type<tc>, window_params = [{pipeline_mode = #tpu.pipeline_mode<synchronous>, transform_indices = @transform_0, window_bounds = array<i64: 16, 64>}, {transform_indices = @transform_1, window_bounds = array<i64: 256, 8>}, {pipeline_mode = #tpu.pipeline_mode<synchronous>, transform_indices = @transform_2, window_bounds = array<i64: 16, 1>}, {pipeline_mode = #tpu.pipeline_mode<synchronous>, transform_indices = @transform_3, window_bounds = array<i64: 2, 16>}, {pipeline_mode = #tpu.pipeline_mode<synchronous>, transform_indices = @transform_4, window_bounds = array<i64: 64, 128>}, {pipeline_mode = #tpu.pipeline_mode<synchronous>, transform_indices = @transform_5, window_bounds = array<i64: 1, 128>}, {pipeline_mode = #tpu.pipeline_mode<synchronous>, transform_indices = @transform_6, window_bounds = array<i64: 1, 128>}, {pipeline_mode = #tpu.pipeline_mode<synchronous>, transform_indices = @transform_7, window_bounds = array<i64: 1, 128>}, {transform_indices = @transform_8, window_bounds = array<i64: 1, 128, 128>}, {transform_indices = @transform_9, window_bounds = array<i64: 1, 128, 128>}, {transform_indices = @transform_10, window_bounds = array<i64: 1, 4, 128>}, {transform_indices = @transform_11, window_bounds = array<i64: 1, 1, 128>}, {transform_indices = @transform_12, window_bounds = array<i64: 1, 128, 128>}, {transform_indices = @transform_13, window_bounds = array<i64: 1, 1, 128>}, {transform_indices = @transform_14, window_bounds = array<i64: 1, 128, 128>}, {transform_indices = @transform_15, window_bounds = array<i64: 1, 1, 128>}, {transform_indices = @transform_16, window_bounds = array<i64: 1, 128, 128>}, {transform_indices = @transform_17, window_bounds = array<i64: 1, 128, 128>}, {transform_indices = @transform_18, window_bounds = array<i64: 1, 1, 128>}, {transform_indices = @transform_19, window_bounds = array<i64: 1, 128, 128>}, {transform_indices = @transform_20, window_bounds = array<i64: 1, 1, 128>}, {transform_indices = @transform_21, window_bounds = array<i64: 1, 1, 128>}, {transform_indices = @transform_22, window_bounds = array<i64: 1, 1, 128>}, {pipeline_mode = #tpu.pipeline_mode<synchronous>, transform_indices = @transform_23, window_bounds = array<i64: 128, 128>}, {pipeline_mode = #tpu.pipeline_mode<synchronous>, transform_indices = @transform_24, window_bounds = array<i64: 1, 128>}, {pipeline_mode = #tpu.pipeline_mode<synchronous>, transform_indices = @transform_25, window_bounds = array<i64: 1, 128>}, {pipeline_mode = #tpu.pipeline_mode<synchronous>, transform_indices = @transform_26, window_bounds = array<i64: 1, 128>}, {pipeline_mode = #tpu.pipeline_mode<synchronous>, transform_indices = @transform_27, window_bounds = array<i64: 128, 128>}, {pipeline_mode = #tpu.pipeline_mode<synchronous>, transform_indices = @transform_28, window_bounds = array<i64: 1, 128>}, {pipeline_mode = #tpu.pipeline_mode<synchronous>, transform_indices = @transform_29, window_bounds = array<i64: 2, 128>}]} {
    %c0_i32 = arith.constant 0 : i32
    %0 = arith.cmpi eq, %arg0, %c0_i32 : i32
    %c0_i32_0 = arith.constant 0 : i32
    %1 = arith.cmpi eq, %arg1, %c0_i32_0 : i32
    %2 = arith.andi %0, %1 : i1
    %3 = arith.extui %2 : i1 to i32
    %c0_i32_1 = arith.constant 0 : i32
    %4 = arith.cmpi ne, %3, %c0_i32_1 : i32
    scf.if %4 {
      %c0_42 = arith.constant 0 : index
      %c0_43 = arith.constant 0 : index
      %82 = vector.load %arg2[%c0_42, %c0_43] : memref<16x64xf32, #tpu.memory_space<vmem>>, vector<16x64xf32>
      %83 = arith.truncf %82 : vector<16x64xf32> to vector<16x64xbf16>
      %c0_44 = arith.constant 0 : index
      %c0_45 = arith.constant 0 : index
      %84 = vector.load %arg6[%c0_44, %c0_45] : memref<64x128xbf16, #tpu.memory_space<vmem>>, vector<64x128xbf16>
      %cst_46 = arith.constant dense<0.000000e+00> : vector<16x128xf32>
      %85 = tpu.matmul %83, %84, %cst_46 {dimension_numbers = #tpu.dot_dimension_numbers<[1], [0], [0], [1], [0, 0, 1, 1], [], []>} : vector<16x64xbf16>, vector<64x128xbf16>, vector<16x128xf32> -> vector<16x128xf32>
      %c0_47 = arith.constant 0 : index
      %c0_48 = arith.constant 0 : index
      %86 = vector.load %arg7[%c0_47, %c0_48] : memref<1x128xf32, #tpu.memory_space<vmem>>, vector<1x128xf32>
      %87 = vector.broadcast %86 : vector<1x128xf32> to vector<16x128xf32>
      %88 = arith.addf %85, %87 : vector<16x128xf32>
      %c0_49 = arith.constant 0 : index
      %c0_50 = arith.constant 0 : index
      %89 = vector.load %arg8[%c0_49, %c0_50] : memref<1x128xf32, #tpu.memory_space<vmem>>, vector<1x128xf32>
      %c0_51 = arith.constant 0 : index
      %c0_52 = arith.constant 0 : index
      %90 = vector.load %arg9[%c0_51, %c0_52] : memref<1x128xf32, #tpu.memory_space<vmem>>, vector<1x128xf32>
      %cst_53 = arith.constant dense<0.000000e+00> : vector<16xf32>
      %91 = vector.multi_reduction <add>, %88, %cst_53 [1] : vector<16x128xf32> to vector<16xf32>
      %92 = vector.shape_cast %91 : vector<16xf32> to vector<16x1xf32>
      %cst_54 = arith.constant 1.280000e+02 : f32
      %93 = vector.broadcast %cst_54 : f32 to vector<16x1xf32>
      %94 = arith.divf %92, %93 : vector<16x1xf32>
      %95 = vector.broadcast %94 : vector<16x1xf32> to vector<16x128xf32>
      %96 = arith.subf %88, %95 : vector<16x128xf32>
      %97 = arith.mulf %96, %96 : vector<16x128xf32>
      %cst_55 = arith.constant dense<0.000000e+00> : vector<16xf32>
      %98 = vector.multi_reduction <add>, %97, %cst_55 [1] : vector<16x128xf32> to vector<16xf32>
      %99 = vector.shape_cast %98 : vector<16xf32> to vector<16x1xf32>
      %cst_56 = arith.constant 1.280000e+02 : f32
      %100 = vector.broadcast %cst_56 : f32 to vector<16x1xf32>
      %101 = arith.divf %99, %100 : vector<16x1xf32>
      %102 = vector.broadcast %94 : vector<16x1xf32> to vector<16x128xf32>
      %103 = arith.subf %88, %102 : vector<16x128xf32>
      %cst_57 = arith.constant 9.99999974E-6 : f32
      %104 = vector.broadcast %cst_57 : f32 to vector<16x1xf32>
      %105 = arith.addf %101, %104 : vector<16x1xf32>
      %106 = math.rsqrt %105 : vector<16x1xf32>
      %107 = vector.broadcast %106 : vector<16x1xf32> to vector<16x128xf32>
      %108 = arith.mulf %103, %107 : vector<16x128xf32>
      %109 = vector.broadcast %89 : vector<1x128xf32> to vector<16x128xf32>
      %110 = arith.mulf %108, %109 : vector<16x128xf32>
      %111 = vector.broadcast %90 : vector<1x128xf32> to vector<16x128xf32>
      %112 = arith.addf %110, %111 : vector<16x128xf32>
      %113 = arith.negf %112 : vector<16x128xf32>
      %114 = math.exp %113 : vector<16x128xf32>
      %cst_58 = arith.constant 1.000000e+00 : f32
      %115 = vector.broadcast %cst_58 : f32 to vector<16x128xf32>
      %116 = arith.addf %115, %114 : vector<16x128xf32>
      %117 = arith.divf %115, %116 : vector<16x128xf32>
      %118 = arith.mulf %112, %117 : vector<16x128xf32>
      %c0_59 = arith.constant 0 : index
      %c0_60 = arith.constant 0 : index
      %119 = vector.load %arg32[%c0_59, %c0_60] : memref<16x128xf32, #tpu.memory_space<vmem>>, vector<16x128xf32>
      tpu.vector_store %arg32[%c0_59, %c0_60], %118 {strides = array<i32>} : memref<16x128xf32, #tpu.memory_space<vmem>>, vector<16x128xf32>,
    } else {
    }
    %c0_i32_2 = arith.constant 0 : i32
    %5 = arith.cmpi eq, %arg1, %c0_i32_2 : i32
    %6 = arith.extui %5 : i1 to i32
    %c0_i32_3 = arith.constant 0 : i32
    %7 = arith.cmpi ne, %6, %c0_i32_3 : i32
    scf.if %7 {
      %cst_42 = arith.constant 0.000000e+00 : f32
      %82 = vector.broadcast %cst_42 : f32 to vector<16x128xf32>
      %c0_43 = arith.constant 0 : index
      %c0_44 = arith.constant 0 : index
      %83 = vector.load %arg35[%c0_43, %c0_44] : memref<16x128xf32, #tpu.memory_space<vmem>>, vector<16x128xf32>
      tpu.vector_store %arg35[%c0_43, %c0_44], %82 {strides = array<i32>} : memref<16x128xf32, #tpu.memory_space<vmem>>, vector<16x128xf32>,
      %c0_45 = arith.constant 0 : index
      %c0_46 = arith.constant 0 : index
      %84 = vector.load %arg32[%c0_45, %c0_46] : memref<16x128xf32, #tpu.memory_space<vmem>>, vector<16x128xf32>
      %85 = arith.truncf %84 : vector<16x128xf32> to vector<16x128xbf16>
      %c0_47 = arith.constant 0 : index
      %c0_48 = arith.constant 0 : index
      %c0_49 = arith.constant 0 : index
      %86 = vector.load %arg10[%c0_47, %c0_48, %c0_49] : memref<1x128x128xbf16, #tpu.memory_space<vmem>>, vector<1x128x128xbf16>
      %87 = vector.shape_cast %86 : vector<1x128x128xbf16> to vector<128x128xbf16>
      %cst_50 = arith.constant dense<0.000000e+00> : vector<16x128xf32>
      %88 = tpu.matmul %85, %87, %cst_50 {dimension_numbers = #tpu.dot_dimension_numbers<[1], [0], [0], [1], [0, 0, 1, 1], [], []>} : vector<16x128xbf16>, vector<128x128xbf16>, vector<16x128xf32> -> vector<16x128xf32>
      %89 = arith.truncf %88 : vector<16x128xf32> to vector<16x128xbf16>
      %c0_51 = arith.constant 0 : index
      %c0_52 = arith.constant 0 : index
      %90 = vector.load %arg33[%c0_51, %c0_52] : memref<16x128xbf16, #tpu.memory_space<vmem>>, vector<16x128xbf16>
      tpu.vector_store %arg33[%c0_51, %c0_52], %89 {strides = array<i32>} : memref<16x128xbf16, #tpu.memory_space<vmem>>, vector<16x128xbf16>,
      %c0_53 = arith.constant 0 : index
      %c0_54 = arith.constant 0 : index
      %c0_55 = arith.constant 0 : index
      %91 = vector.load %arg11[%c0_53, %c0_54, %c0_55] : memref<1x128x128xbf16, #tpu.memory_space<vmem>>, vector<1x128x128xbf16>
      %92 = vector.shape_cast %91 : vector<1x128x128xbf16> to vector<128x128xbf16>
      %cst_56 = arith.constant dense<0.000000e+00> : vector<16x128xf32>
      %93 = tpu.matmul %85, %92, %cst_56 {dimension_numbers = #tpu.dot_dimension_numbers<[1], [0], [0], [1], [0, 0, 1, 1], [], []>} : vector<16x128xbf16>, vector<128x128xbf16>, vector<16x128xf32> -> vector<16x128xf32>
      %94 = arith.truncf %93 : vector<16x128xf32> to vector<16x128xbf16>
      %c0_57 = arith.constant 0 : index
      %c0_58 = arith.constant 0 : index
      %95 = vector.load %arg34[%c0_57, %c0_58] : memref<16x128xbf16, #tpu.memory_space<vmem>>, vector<16x128xbf16>
      tpu.vector_store %arg34[%c0_57, %c0_58], %94 {strides = array<i32>} : memref<16x128xbf16, #tpu.memory_space<vmem>>, vector<16x128xbf16>,
    } else {
    }
    %c0 = arith.constant 0 : index
    %c0_4 = arith.constant 0 : index
    %8 = vector.load %arg3[%c0, %c0_4] : memref<256x8xf32, #tpu.memory_space<vmem>>, vector<256x8xf32>
    %9 = vector.extract_strided_slice %8 {offsets = [0, 0], sizes = [256, 1], strides = [1, 1]} : vector<256x8xf32> to vector<256x1xf32>
    %10 = vector.extract_strided_slice %8 {offsets = [0, 1], sizes = [256, 1], strides = [1, 1]} : vector<256x8xf32> to vector<256x1xf32>
    %11 = vector.extract_strided_slice %8 {offsets = [0, 2], sizes = [256, 1], strides = [1, 1]} : vector<256x8xf32> to vector<256x1xf32>
    %12 = vector.extract_strided_slice %8 {offsets = [0, 3], sizes = [256, 4], strides = [1, 1]} : vector<256x8xf32> to vector<256x4xf32>
    %13 = arith.truncf %12 : vector<256x4xf32> to vector<256x4xbf16>
    %14 = tpu.iota {dimensions = array<i32: 1>} : vector<256x16xi32>
    %15 = arith.sitofp %14 : vector<256x16xi32> to vector<256x16xf32>
    %16 = vector.broadcast %9 : vector<256x1xf32> to vector<256x16xf32>
    %17 = arith.cmpf oeq, %16, %15 : vector<256x16xf32>
    %18 = arith.extui %17 : vector<256x16xi1> to vector<256x16xi32>
    %19 = arith.sitofp %18 : vector<256x16xi32> to vector<256x16xf32>
    %20 = arith.truncf %19 : vector<256x16xf32> to vector<256x16xbf16>
    %21 = vector.broadcast %10 : vector<256x1xf32> to vector<256x16xf32>
    %22 = arith.cmpf oeq, %21, %15 : vector<256x16xf32>
    %23 = arith.extui %22 : vector<256x16xi1> to vector<256x16xi32>
    %24 = arith.sitofp %23 : vector<256x16xi32> to vector<256x16xf32>
    %25 = arith.truncf %24 : vector<256x16xf32> to vector<256x16xbf16>
    %c0_5 = arith.constant 0 : index
    %c0_6 = arith.constant 0 : index
    %26 = vector.load %arg33[%c0_5, %c0_6] : memref<16x128xbf16, #tpu.memory_space<vmem>>, vector<16x128xbf16>
    %cst = arith.constant dense<0.000000e+00> : vector<256x128xf32>
    %27 = tpu.matmul %20, %26, %cst {dimension_numbers = #tpu.dot_dimension_numbers<[1], [0], [0], [1], [0, 0, 1, 1], [], []>} : vector<256x16xbf16>, vector<16x128xbf16>, vector<256x128xf32> -> vector<256x128xf32>
    %c0_7 = arith.constant 0 : index
    %c0_8 = arith.constant 0 : index
    %28 = vector.load %arg34[%c0_7, %c0_8] : memref<16x128xbf16, #tpu.memory_space<vmem>>, vector<16x128xbf16>
    %cst_9 = arith.constant dense<0.000000e+00> : vector<256x128xf32>
    %29 = tpu.matmul %25, %28, %cst_9 {dimension_numbers = #tpu.dot_dimension_numbers<[1], [0], [0], [1], [0, 0, 1, 1], [], []>} : vector<256x16xbf16>, vector<16x128xbf16>, vector<256x128xf32> -> vector<256x128xf32>
    %30 = arith.addf %27, %29 : vector<256x128xf32>
    %c0_10 = arith.constant 0 : index
    %c0_11 = arith.constant 0 : index
    %c0_12 = arith.constant 0 : index
    %31 = vector.load %arg12[%c0_10, %c0_11, %c0_12] : memref<1x4x128xbf16, #tpu.memory_space<vmem>>, vector<1x4x128xbf16>
    %32 = vector.shape_cast %31 : vector<1x4x128xbf16> to vector<4x128xbf16>
    %cst_13 = arith.constant dense<0.000000e+00> : vector<256x128xf32>
    %33 = tpu.matmul %13, %32, %cst_13 {dimension_numbers = #tpu.dot_dimension_numbers<[1], [0], [0], [1], [0, 0, 1, 1], [], []>} : vector<256x4xbf16>, vector<4x128xbf16>, vector<256x128xf32> -> vector<256x128xf32>
    %34 = arith.addf %30, %33 : vector<256x128xf32>
    %c0_14 = arith.constant 0 : index
    %c0_15 = arith.constant 0 : index
    %c0_16 = arith.constant 0 : index
    %35 = vector.load %arg13[%c0_14, %c0_15, %c0_16] : memref<1x1x128xf32, #tpu.memory_space<vmem>>, vector<1x1x128xf32>
    %36 = vector.shape_cast %35 : vector<1x1x128xf32> to vector<1x128xf32>
    %37 = vector.broadcast %36 : vector<1x128xf32> to vector<256x128xf32>
    %38 = arith.addf %34, %37 : vector<256x128xf32>
    %39 = arith.negf %38 : vector<256x128xf32>
    %40 = math.exp %39 : vector<256x128xf32>
    %cst_17 = arith.constant 1.000000e+00 : f32
    %41 = vector.broadcast %cst_17 : f32 to vector<256x128xf32>
    %42 = arith.addf %41, %40 : vector<256x128xf32>
    %43 = arith.divf %41, %42 : vector<256x128xf32>
    %44 = arith.mulf %38, %43 : vector<256x128xf32>
    %45 = arith.truncf %44 : vector<256x128xf32> to vector<256x128xbf16>
    %c0_18 = arith.constant 0 : index
    %c0_19 = arith.constant 0 : index
    %c0_20 = arith.constant 0 : index
    %46 = vector.load %arg14[%c0_18, %c0_19, %c0_20] : memref<1x128x128xbf16, #tpu.memory_space<vmem>>, vector<1x128x128xbf16>
    %47 = vector.shape_cast %46 : vector<1x128x128xbf16> to vector<128x128xbf16>
    %cst_21 = arith.constant dense<0.000000e+00> : vector<256x128xf32>
    %48 = tpu.matmul %45, %47, %cst_21 {dimension_numbers = #tpu.dot_dimension_numbers<[1], [0], [0], [1], [0, 0, 1, 1], [], []>} : vector<256x128xbf16>, vector<128x128xbf16>, vector<256x128xf32> -> vector<256x128xf32>
    %c0_22 = arith.constant 0 : index
    %c0_23 = arith.constant 0 : index
    %c0_24 = arith.constant 0 : index
    %49 = vector.load %arg15[%c0_22, %c0_23, %c0_24] : memref<1x1x128xf32, #tpu.memory_space<vmem>>, vector<1x1x128xf32>
    %50 = vector.shape_cast %49 : vector<1x1x128xf32> to vector<1x128xf32>
    %51 = vector.broadcast %50 : vector<1x128xf32> to vector<256x128xf32>
    %52 = arith.addf %48, %51 : vector<256x128xf32>
    %53 = arith.negf %52 : vector<256x128xf32>
    %54 = math.exp %53 : vector<256x128xf32>
    %cst_25 = arith.constant 1.000000e+00 : f32
    %55 = vector.broadcast %cst_25 : f32 to vector<256x128xf32>
    %56 = arith.addf %55, %54 : vector<256x128xf32>
    %57 = arith.divf %55, %56 : vector<256x128xf32>
    %58 = arith.mulf %52, %57 : vector<256x128xf32>
    %59 = arith.truncf %58 : vector<256x128xf32> to vector<256x128xbf16>
    %c0_26 = arith.constant 0 : index
    %c0_27 = arith.constant 0 : index
    %c0_28 = arith.constant 0 : index
    %60 = vector.load %arg16[%c0_26, %c0_27, %c0_28] : memref<1x128x128xbf16, #tpu.memory_space<vmem>>, vector<1x128x128xbf16>
    %61 = vector.shape_cast %60 : vector<1x128x128xbf16> to vector<128x128xbf16>
    %cst_29 = arith.constant dense<0.000000e+00> : vector<256x128xf32>
    %62 = tpu.matmul %59, %61, %cst_29 {dimension_numbers = #tpu.dot_dimension_numbers<[1], [0], [0], [1], [0, 0, 1, 1], [], []>} : vector<256x128xbf16>, vector<128x128xbf16>, vector<256x128xf32> -> vector<256x128xf32>
    %c0_30 = arith.constant 0 : index
    %c0_31 = arith.constant 0 : index
    %c0_32 = arith.constant 0 : index
    %63 = vector.load %arg17[%c0_30, %c0_31, %c0_32] : memref<1x1x128xf32, #tpu.memory_space<vmem>>, vector<1x1x128xf32>
    %64 = vector.shape_cast %63 : vector<1x1x128xf32> to vector<1x128xf32>
    %65 = vector.broadcast %64 : vector<1x128xf32> to vector<256x128xf32>
    %66 = arith.addf %62, %65 : vector<256x128xf32>
    %67 = vector.broadcast %11 : vector<256x1xf32> to vector<256x128xf32>
    %68 = arith.mulf %66, %67 : vector<256x128xf32>
    %c0_33 = arith.constant 0 : index
    %c0_34 = arith.constant 0 : index
    %69 = vector.load %arg35[%c0_33, %c0_34] : memref<16x128xf32, #tpu.memory_space<vmem>>, vector<16x128xf32>
    %70 = arith.truncf %68 : vector<256x128xf32> to vector<256x128xbf16>
    %cst_35 = arith.constant dense<0.000000e+00> : vector<16x128xf32>
    %71 = tpu.matmul %20, %70, %cst_35 {dimension_numbers = #tpu.dot_dimension_numbers<[0], [0], [1], [1], [0, 1, 1, 1], [], []>} : vector<256x16xbf16>, vector<256x128xbf16>, vector<16x128xf32> -> vector<16x128xf32>
    %72 = arith.addf %69, %71 : vector<16x128xf32>
    %c0_36 = arith.constant 0 : index
    %c0_37 = arith.constant 0 : index
    %73 = vector.load %arg35[%c0_36, %c0_37] : memref<16x128xf32, #tpu.memory_space<vmem>>, vector<16x128xf32>
    tpu.vector_store %arg35[%c0_36, %c0_37], %72 {strides = array<i32>} : memref<16x128xf32, #tpu.memory_space<vmem>>, vector<16x128xf32>,
    %c0_i32_38 = arith.constant 0 : i32
    %74 = arith.cmpi eq, %arg1, %c0_i32_38 : i32
    %75 = arith.extui %74 : i1 to i32
    %c0_i32_39 = arith.constant 0 : i32
    %76 = arith.cmpi ne, %75, %c0_i32_39 : i32
    scf.if %76 {
      %c0_42 = arith.constant 0 : index
      %c0_43 = arith.constant 0 : index
      %82 = vector.load %arg32[%c0_42, %c0_43] : memref<16x128xf32, #tpu.memory_space<vmem>>, vector<16x128xf32>
      %c0_44 = arith.constant 0 : index
      %c0_45 = arith.constant 0 : index
      %83 = vector.load %arg35[%c0_44, %c0_45] : memref<16x128xf32, #tpu.memory_space<vmem>>, vector<16x128xf32>
      %c0_46 = arith.constant 0 : index
      %c0_47 = arith.constant 0 : index
      %84 = vector.load %arg4[%c0_46, %c0_47] : memref<16x1xf32, #tpu.memory_space<vmem>>, vector<16x1xf32>
      %85 = vector.broadcast %84 : vector<16x1xf32> to vector<16x128xf32>
      %86 = arith.mulf %83, %85 : vector<16x128xf32>
      %87 = arith.truncf %82 : vector<16x128xf32> to vector<16x128xbf16>
      %c0_48 = arith.constant 0 : index
      %c0_49 = arith.constant 0 : index
      %c0_50 = arith.constant 0 : index
      %88 = vector.load %arg18[%c0_48, %c0_49, %c0_50] : memref<1x128x128xbf16, #tpu.memory_space<vmem>>, vector<1x128x128xbf16>
      %89 = vector.shape_cast %88 : vector<1x128x128xbf16> to vector<128x128xbf16>
      %cst_51 = arith.constant dense<0.000000e+00> : vector<16x128xf32>
      %90 = tpu.matmul %87, %89, %cst_51 {dimension_numbers = #tpu.dot_dimension_numbers<[1], [0], [0], [1], [0, 0, 1, 1], [], []>} : vector<16x128xbf16>, vector<128x128xbf16>, vector<16x128xf32> -> vector<16x128xf32>
      %91 = arith.truncf %86 : vector<16x128xf32> to vector<16x128xbf16>
      %c0_52 = arith.constant 0 : index
      %c0_53 = arith.constant 0 : index
      %c0_54 = arith.constant 0 : index
      %92 = vector.load %arg19[%c0_52, %c0_53, %c0_54] : memref<1x128x128xbf16, #tpu.memory_space<vmem>>, vector<1x128x128xbf16>
      %93 = vector.shape_cast %92 : vector<1x128x128xbf16> to vector<128x128xbf16>
      %cst_55 = arith.constant dense<0.000000e+00> : vector<16x128xf32>
      %94 = tpu.matmul %91, %93, %cst_55 {dimension_numbers = #tpu.dot_dimension_numbers<[1], [0], [0], [1], [0, 0, 1, 1], [], []>} : vector<16x128xbf16>, vector<128x128xbf16>, vector<16x128xf32> -> vector<16x128xf32>
      %95 = arith.addf %90, %94 : vector<16x128xf32>
      %c0_56 = arith.constant 0 : index
      %c0_57 = arith.constant 0 : index
      %c0_58 = arith.constant 0 : index
      %96 = vector.load %arg20[%c0_56, %c0_57, %c0_58] : memref<1x1x128xf32, #tpu.memory_space<vmem>>, vector<1x1x128xf32>
      %97 = vector.shape_cast %96 : vector<1x1x128xf32> to vector<1x128xf32>
      %98 = vector.broadcast %97 : vector<1x128xf32> to vector<16x128xf32>
      %99 = arith.addf %95, %98 : vector<16x128xf32>
      %100 = arith.negf %99 : vector<16x128xf32>
      %101 = math.exp %100 : vector<16x128xf32>
      %cst_59 = arith.constant 1.000000e+00 : f32
      %102 = vector.broadcast %cst_59 : f32 to vector<16x128xf32>
      %103 = arith.addf %102, %101 : vector<16x128xf32>
      %104 = arith.divf %102, %103 : vector<16x128xf32>
      %105 = arith.mulf %99, %104 : vector<16x128xf32>
      %106 = arith.truncf %105 : vector<16x128xf32> to vector<16x128xbf16>
      %c0_60 = arith.constant 0 : index
      %c0_61 = arith.constant 0 : index
      %c0_62 = arith.constant 0 : index
      %107 = vector.load %arg21[%c0_60, %c0_61, %c0_62] : memref<1x128x128xbf16, #tpu.memory_space<vmem>>, vector<1x128x128xbf16>
      %108 = vector.shape_cast %107 : vector<1x128x128xbf16> to vector<128x128xbf16>
      %cst_63 = arith.constant dense<0.000000e+00> : vector<16x128xf32>
      %109 = tpu.matmul %106, %108, %cst_63 {dimension_numbers = #tpu.dot_dimension_numbers<[1], [0], [0], [1], [0, 0, 1, 1], [], []>} : vector<16x128xbf16>, vector<128x128xbf16>, vector<16x128xf32> -> vector<16x128xf32>
      %c0_64 = arith.constant 0 : index
      %c0_65 = arith.constant 0 : index
      %c0_66 = arith.constant 0 : index
      %110 = vector.load %arg22[%c0_64, %c0_65, %c0_66] : memref<1x1x128xf32, #tpu.memory_space<vmem>>, vector<1x1x128xf32>
      %111 = vector.shape_cast %110 : vector<1x1x128xf32> to vector<1x128xf32>
      %112 = vector.broadcast %111 : vector<1x128xf32> to vector<16x128xf32>
      %113 = arith.addf %109, %112 : vector<16x128xf32>
      %114 = arith.addf %113, %82 : vector<16x128xf32>
      %c0_67 = arith.constant 0 : index
      %c0_68 = arith.constant 0 : index
      %c0_69 = arith.constant 0 : index
      %115 = vector.load %arg23[%c0_67, %c0_68, %c0_69] : memref<1x1x128xf32, #tpu.memory_space<vmem>>, vector<1x1x128xf32>
      %116 = vector.shape_cast %115 : vector<1x1x128xf32> to vector<1x128xf32>
      %c0_70 = arith.constant 0 : index
      %c0_71 = arith.constant 0 : index
      %c0_72 = arith.constant 0 : index
      %117 = vector.load %arg24[%c0_70, %c0_71, %c0_72] : memref<1x1x128xf32, #tpu.memory_space<vmem>>, vector<1x1x128xf32>
      %118 = vector.shape_cast %117 : vector<1x1x128xf32> to vector<1x128xf32>
      %cst_73 = arith.constant dense<0.000000e+00> : vector<16xf32>
      %119 = vector.multi_reduction <add>, %114, %cst_73 [1] : vector<16x128xf32> to vector<16xf32>
      %120 = vector.shape_cast %119 : vector<16xf32> to vector<16x1xf32>
      %cst_74 = arith.constant 1.280000e+02 : f32
      %121 = vector.broadcast %cst_74 : f32 to vector<16x1xf32>
      %122 = arith.divf %120, %121 : vector<16x1xf32>
      %123 = vector.broadcast %122 : vector<16x1xf32> to vector<16x128xf32>
      %124 = arith.subf %114, %123 : vector<16x128xf32>
      %125 = arith.mulf %124, %124 : vector<16x128xf32>
      %cst_75 = arith.constant dense<0.000000e+00> : vector<16xf32>
      %126 = vector.multi_reduction <add>, %125, %cst_75 [1] : vector<16x128xf32> to vector<16xf32>
      %127 = vector.shape_cast %126 : vector<16xf32> to vector<16x1xf32>
      %cst_76 = arith.constant 1.280000e+02 : f32
      %128 = vector.broadcast %cst_76 : f32 to vector<16x1xf32>
      %129 = arith.divf %127, %128 : vector<16x1xf32>
      %130 = vector.broadcast %122 : vector<16x1xf32> to vector<16x128xf32>
      %131 = arith.subf %114, %130 : vector<16x128xf32>
      %cst_77 = arith.constant 9.99999974E-6 : f32
      %132 = vector.broadcast %cst_77 : f32 to vector<16x1xf32>
      %133 = arith.addf %129, %132 : vector<16x1xf32>
      %134 = math.rsqrt %133 : vector<16x1xf32>
      %135 = vector.broadcast %134 : vector<16x1xf32> to vector<16x128xf32>
      %136 = arith.mulf %131, %135 : vector<16x128xf32>
      %137 = vector.broadcast %116 : vector<1x128xf32> to vector<16x128xf32>
      %138 = arith.mulf %136, %137 : vector<16x128xf32>
      %139 = vector.broadcast %118 : vector<1x128xf32> to vector<16x128xf32>
      %140 = arith.addf %138, %139 : vector<16x128xf32>
      %c0_78 = arith.constant 0 : index
      %c0_79 = arith.constant 0 : index
      %141 = vector.load %arg32[%c0_78, %c0_79] : memref<16x128xf32, #tpu.memory_space<vmem>>, vector<16x128xf32>
      tpu.vector_store %arg32[%c0_78, %c0_79], %140 {strides = array<i32>} : memref<16x128xf32, #tpu.memory_space<vmem>>, vector<16x128xf32>,
    } else {
    }
    %c0_i32_40 = arith.constant 0 : i32
    %77 = arith.cmpi eq, %arg1, %c0_i32_40 : i32
    %c1_i32 = arith.constant 1 : i32
    %78 = arith.cmpi eq, %arg0, %c1_i32 : i32
    %79 = arith.andi %77, %78 : i1
    %80 = arith.extui %79 : i1 to i32
    %c0_i32_41 = arith.constant 0 : i32
    %81 = arith.cmpi ne, %80, %c0_i32_41 : i32
    scf.if %81 {
      %c0_42 = arith.constant 0 : index
      %c0_43 = arith.constant 0 : index
      %82 = vector.load %arg32[%c0_42, %c0_43] : memref<16x128xf32, #tpu.memory_space<vmem>>, vector<16x128xf32>
      %83 = arith.truncf %82 : vector<16x128xf32> to vector<16x128xbf16>
      %c0_44 = arith.constant 0 : index
      %c0_45 = arith.constant 0 : index
      %84 = vector.load %arg25[%c0_44, %c0_45] : memref<128x128xbf16, #tpu.memory_space<vmem>>, vector<128x128xbf16>
      %cst_46 = arith.constant dense<0.000000e+00> : vector<16x128xf32>
      %85 = tpu.matmul %83, %84, %cst_46 {dimension_numbers = #tpu.dot_dimension_numbers<[1], [0], [0], [1], [0, 0, 1, 1], [], []>} : vector<16x128xbf16>, vector<128x128xbf16>, vector<16x128xf32> -> vector<16x128xf32>
      %c0_47 = arith.constant 0 : index
      %c0_48 = arith.constant 0 : index
      %86 = vector.load %arg26[%c0_47, %c0_48] : memref<1x128xf32, #tpu.memory_space<vmem>>, vector<1x128xf32>
      %87 = vector.broadcast %86 : vector<1x128xf32> to vector<16x128xf32>
      %88 = arith.addf %85, %87 : vector<16x128xf32>
      %c0_49 = arith.constant 0 : index
      %c0_50 = arith.constant 0 : index
      %89 = vector.load %arg27[%c0_49, %c0_50] : memref<1x128xf32, #tpu.memory_space<vmem>>, vector<1x128xf32>
      %c0_51 = arith.constant 0 : index
      %c0_52 = arith.constant 0 : index
      %90 = vector.load %arg28[%c0_51, %c0_52] : memref<1x128xf32, #tpu.memory_space<vmem>>, vector<1x128xf32>
      %cst_53 = arith.constant dense<0.000000e+00> : vector<16xf32>
      %91 = vector.multi_reduction <add>, %88, %cst_53 [1] : vector<16x128xf32> to vector<16xf32>
      %92 = vector.shape_cast %91 : vector<16xf32> to vector<16x1xf32>
      %cst_54 = arith.constant 1.280000e+02 : f32
      %93 = vector.broadcast %cst_54 : f32 to vector<16x1xf32>
      %94 = arith.divf %92, %93 : vector<16x1xf32>
      %95 = vector.broadcast %94 : vector<16x1xf32> to vector<16x128xf32>
      %96 = arith.subf %88, %95 : vector<16x128xf32>
      %97 = arith.mulf %96, %96 : vector<16x128xf32>
      %cst_55 = arith.constant dense<0.000000e+00> : vector<16xf32>
      %98 = vector.multi_reduction <add>, %97, %cst_55 [1] : vector<16x128xf32> to vector<16xf32>
      %99 = vector.shape_cast %98 : vector<16xf32> to vector<16x1xf32>
      %cst_56 = arith.constant 1.280000e+02 : f32
      %100 = vector.broadcast %cst_56 : f32 to vector<16x1xf32>
      %101 = arith.divf %99, %100 : vector<16x1xf32>
      %102 = vector.broadcast %94 : vector<16x1xf32> to vector<16x128xf32>
      %103 = arith.subf %88, %102 : vector<16x128xf32>
      %cst_57 = arith.constant 9.99999974E-6 : f32
      %104 = vector.broadcast %cst_57 : f32 to vector<16x1xf32>
      %105 = arith.addf %101, %104 : vector<16x1xf32>
      %106 = math.rsqrt %105 : vector<16x1xf32>
      %107 = vector.broadcast %106 : vector<16x1xf32> to vector<16x128xf32>
      %108 = arith.mulf %103, %107 : vector<16x128xf32>
      %109 = vector.broadcast %89 : vector<1x128xf32> to vector<16x128xf32>
      %110 = arith.mulf %108, %109 : vector<16x128xf32>
      %111 = vector.broadcast %90 : vector<1x128xf32> to vector<16x128xf32>
      %112 = arith.addf %110, %111 : vector<16x128xf32>
      %113 = arith.negf %112 : vector<16x128xf32>
      %114 = math.exp %113 : vector<16x128xf32>
      %cst_58 = arith.constant 1.000000e+00 : f32
      %115 = vector.broadcast %cst_58 : f32 to vector<16x128xf32>
      %116 = arith.addf %115, %114 : vector<16x128xf32>
      %117 = arith.divf %115, %116 : vector<16x128xf32>
      %118 = arith.mulf %112, %117 : vector<16x128xf32>
      %119 = arith.truncf %118 : vector<16x128xf32> to vector<16x128xbf16>
      %c0_59 = arith.constant 0 : index
      %c0_60 = arith.constant 0 : index
      %120 = vector.load %arg29[%c0_59, %c0_60] : memref<128x128xbf16, #tpu.memory_space<vmem>>, vector<128x128xbf16>
      %cst_61 = arith.constant dense<0.000000e+00> : vector<16x128xf32>
      %121 = tpu.matmul %119, %120, %cst_61 {dimension_numbers = #tpu.dot_dimension_numbers<[1], [0], [0], [1], [0, 0, 1, 1], [], []>} : vector<16x128xbf16>, vector<128x128xbf16>, vector<16x128xf32> -> vector<16x128xf32>
      %c0_62 = arith.constant 0 : index
      %c0_63 = arith.constant 0 : index
      %122 = vector.load %arg30[%c0_62, %c0_63] : memref<1x128xf32, #tpu.memory_space<vmem>>, vector<1x128xf32>
      %123 = vector.broadcast %122 : vector<1x128xf32> to vector<16x128xf32>
      %124 = arith.addf %121, %123 : vector<16x128xf32>
      %c0_64 = arith.constant 0 : index
      %c0_65 = arith.constant 0 : index
      %125 = vector.load %arg5[%c0_64, %c0_65] : memref<2x16xf32, #tpu.memory_space<vmem>>, vector<2x16xf32>
      %cst_66 = arith.constant dense<0.000000e+00> : vector<2x128xf32>
      %126 = tpu.matmul %125, %124, %cst_66 {dimension_numbers = #tpu.dot_dimension_numbers<[1], [0], [0], [1], [0, 0, 1, 1], [], []>} : vector<2x16xf32>, vector<16x128xf32>, vector<2x128xf32> -> vector<2x128xf32>
      %c0_67 = arith.constant 0 : index
      %c0_68 = arith.constant 0 : index
      %127 = vector.load %arg31[%c0_67, %c0_68] : memref<2x128xf32, #tpu.memory_space<vmem>>, vector<2x128xf32>
      tpu.vector_store %arg31[%c0_67, %c0_68], %126 {strides = array<i32>} : memref<2x128xf32, #tpu.memory_space<vmem>>, vector<2x128xf32>,
    } else {
    }
    return
  }
  func.func @transform_0(%arg0: i32, %arg1: i32) -> (i32, i32) {
    %c0_i32 = arith.constant 0 : i32
    %c0_i32_0 = arith.constant 0 : i32
    %c0_i32_1 = arith.constant 0 : i32
    return %c0_i32, %c0_i32_0 : i32, i32
  }
  func.func @transform_1(%arg0: i32, %arg1: i32) -> (i32, i32) {
    %c0_i32 = arith.constant 0 : i32
    %c0_i32_0 = arith.constant 0 : i32
    return %arg1, %c0_i32 : i32, i32
  }
  func.func @transform_2(%arg0: i32, %arg1: i32) -> (i32, i32) {
    %c0_i32 = arith.constant 0 : i32
    %c0_i32_0 = arith.constant 0 : i32
    %c0_i32_1 = arith.constant 0 : i32
    return %c0_i32, %c0_i32_0 : i32, i32
  }
  func.func @transform_3(%arg0: i32, %arg1: i32) -> (i32, i32) {
    %c0_i32 = arith.constant 0 : i32
    %c0_i32_0 = arith.constant 0 : i32
    %c0_i32_1 = arith.constant 0 : i32
    return %c0_i32, %c0_i32_0 : i32, i32
  }
  func.func @transform_4(%arg0: i32, %arg1: i32) -> (i32, i32) {
    %c0_i32 = arith.constant 0 : i32
    %c0_i32_0 = arith.constant 0 : i32
    %c0_i32_1 = arith.constant 0 : i32
    return %c0_i32, %c0_i32_0 : i32, i32
  }
  func.func @transform_5(%arg0: i32, %arg1: i32) -> (i32, i32) {
    %c0_i32 = arith.constant 0 : i32
    %c0_i32_0 = arith.constant 0 : i32
    %c0_i32_1 = arith.constant 0 : i32
    return %c0_i32, %c0_i32_0 : i32, i32
  }
  func.func @transform_6(%arg0: i32, %arg1: i32) -> (i32, i32) {
    %c0_i32 = arith.constant 0 : i32
    %c0_i32_0 = arith.constant 0 : i32
    %c0_i32_1 = arith.constant 0 : i32
    return %c0_i32, %c0_i32_0 : i32, i32
  }
  func.func @transform_7(%arg0: i32, %arg1: i32) -> (i32, i32) {
    %c0_i32 = arith.constant 0 : i32
    %c0_i32_0 = arith.constant 0 : i32
    %c0_i32_1 = arith.constant 0 : i32
    return %c0_i32, %c0_i32_0 : i32, i32
  }
  func.func @transform_8(%arg0: i32, %arg1: i32) -> (i32, i32, i32) {
    %c0_i32 = arith.constant 0 : i32
    %c0_i32_0 = arith.constant 0 : i32
    %c0_i32_1 = arith.constant 0 : i32
    return %arg0, %c0_i32, %c0_i32_0 : i32, i32, i32
  }
  func.func @transform_9(%arg0: i32, %arg1: i32) -> (i32, i32, i32) {
    %c0_i32 = arith.constant 0 : i32
    %c0_i32_0 = arith.constant 0 : i32
    %c0_i32_1 = arith.constant 0 : i32
    return %arg0, %c0_i32, %c0_i32_0 : i32, i32, i32
  }
  func.func @transform_10(%arg0: i32, %arg1: i32) -> (i32, i32, i32) {
    %c0_i32 = arith.constant 0 : i32
    %c0_i32_0 = arith.constant 0 : i32
    %c0_i32_1 = arith.constant 0 : i32
    return %arg0, %c0_i32, %c0_i32_0 : i32, i32, i32
  }
  func.func @transform_11(%arg0: i32, %arg1: i32) -> (i32, i32, i32) {
    %c0_i32 = arith.constant 0 : i32
    %c0_i32_0 = arith.constant 0 : i32
    %c0_i32_1 = arith.constant 0 : i32
    return %arg0, %c0_i32, %c0_i32_0 : i32, i32, i32
  }
  func.func @transform_12(%arg0: i32, %arg1: i32) -> (i32, i32, i32) {
    %c0_i32 = arith.constant 0 : i32
    %c0_i32_0 = arith.constant 0 : i32
    %c0_i32_1 = arith.constant 0 : i32
    return %arg0, %c0_i32, %c0_i32_0 : i32, i32, i32
  }
  func.func @transform_13(%arg0: i32, %arg1: i32) -> (i32, i32, i32) {
    %c0_i32 = arith.constant 0 : i32
    %c0_i32_0 = arith.constant 0 : i32
    %c0_i32_1 = arith.constant 0 : i32
    return %arg0, %c0_i32, %c0_i32_0 : i32, i32, i32
  }
  func.func @transform_14(%arg0: i32, %arg1: i32) -> (i32, i32, i32) {
    %c0_i32 = arith.constant 0 : i32
    %c0_i32_0 = arith.constant 0 : i32
    %c0_i32_1 = arith.constant 0 : i32
    return %arg0, %c0_i32, %c0_i32_0 : i32, i32, i32
  }
  func.func @transform_15(%arg0: i32, %arg1: i32) -> (i32, i32, i32) {
    %c0_i32 = arith.constant 0 : i32
    %c0_i32_0 = arith.constant 0 : i32
    %c0_i32_1 = arith.constant 0 : i32
    return %arg0, %c0_i32, %c0_i32_0 : i32, i32, i32
  }
  func.func @transform_16(%arg0: i32, %arg1: i32) -> (i32, i32, i32) {
    %c0_i32 = arith.constant 0 : i32
    %c0_i32_0 = arith.constant 0 : i32
    %c0_i32_1 = arith.constant 0 : i32
    return %arg0, %c0_i32, %c0_i32_0 : i32, i32, i32
  }
  func.func @transform_17(%arg0: i32, %arg1: i32) -> (i32, i32, i32) {
    %c0_i32 = arith.constant 0 : i32
    %c0_i32_0 = arith.constant 0 : i32
    %c0_i32_1 = arith.constant 0 : i32
    return %arg0, %c0_i32, %c0_i32_0 : i32, i32, i32
  }
  func.func @transform_18(%arg0: i32, %arg1: i32) -> (i32, i32, i32) {
    %c0_i32 = arith.constant 0 : i32
    %c0_i32_0 = arith.constant 0 : i32
    %c0_i32_1 = arith.constant 0 : i32
    return %arg0, %c0_i32, %c0_i32_0 : i32, i32, i32
  }
  func.func @transform_19(%arg0: i32, %arg1: i32) -> (i32, i32, i32) {
    %c0_i32 = arith.constant 0 : i32
    %c0_i32_0 = arith.constant 0 : i32
    %c0_i32_1 = arith.constant 0 : i32
    return %arg0, %c0_i32, %c0_i32_0 : i32, i32, i32
  }
  func.func @transform_20(%arg0: i32, %arg1: i32) -> (i32, i32, i32) {
    %c0_i32 = arith.constant 0 : i32
    %c0_i32_0 = arith.constant 0 : i32
    %c0_i32_1 = arith.constant 0 : i32
    return %arg0, %c0_i32, %c0_i32_0 : i32, i32, i32
  }
  func.func @transform_21(%arg0: i32, %arg1: i32) -> (i32, i32, i32) {
    %c0_i32 = arith.constant 0 : i32
    %c0_i32_0 = arith.constant 0 : i32
    %c0_i32_1 = arith.constant 0 : i32
    return %arg0, %c0_i32, %c0_i32_0 : i32, i32, i32
  }
  func.func @transform_22(%arg0: i32, %arg1: i32) -> (i32, i32, i32) {
    %c0_i32 = arith.constant 0 : i32
    %c0_i32_0 = arith.constant 0 : i32
    %c0_i32_1 = arith.constant 0 : i32
    return %arg0, %c0_i32, %c0_i32_0 : i32, i32, i32
  }
  func.func @transform_23(%arg0: i32, %arg1: i32) -> (i32, i32) {
    %c0_i32 = arith.constant 0 : i32
    %c0_i32_0 = arith.constant 0 : i32
    %c0_i32_1 = arith.constant 0 : i32
    return %c0_i32, %c0_i32_0 : i32, i32
  }
  func.func @transform_24(%arg0: i32, %arg1: i32) -> (i32, i32) {
    %c0_i32 = arith.constant 0 : i32
    %c0_i32_0 = arith.constant 0 : i32
    %c0_i32_1 = arith.constant 0 : i32
    return %c0_i32, %c0_i32_0 : i32, i32
  }
  func.func @transform_25(%arg0: i32, %arg1: i32) -> (i32, i32) {
    %c0_i32 = arith.constant 0 : i32
    %c0_i32_0 = arith.constant 0 : i32
    %c0_i32_1 = arith.constant 0 : i32
    return %c0_i32, %c0_i32_0 : i32, i32
  }
  func.func @transform_26(%arg0: i32, %arg1: i32) -> (i32, i32) {
    %c0_i32 = arith.constant 0 : i32
    %c0_i32_0 = arith.constant 0 : i32
    %c0_i32_1 = arith.constant 0 : i32
    return %c0_i32, %c0_i32_0 : i32, i32
  }
  func.func @transform_27(%arg0: i32, %arg1: i32) -> (i32, i32) {
    %c0_i32 = arith.constant 0 : i32
    %c0_i32_0 = arith.constant 0 : i32
    %c0_i32_1 = arith.constant 0 : i32
    return %c0_i32, %c0_i32_0 : i32, i32
  }
  func.func @transform_28(%arg0: i32, %arg1: i32) -> (i32, i32) {
    %c0_i32 = arith.constant 0 : i32
    %c0_i32_0 = arith.constant 0 : i32
    %c0_i32_1 = arith.constant 0 : i32
    return %c0_i32, %c0_i32_0 : i32, i32
  }
  func.func @transform_29(%arg0: i32, %arg1: i32) -> (i32, i32) {
    %c0_i32 = arith.constant 0 : i32
    %c0_i32_0 = arith.constant 0 : i32
    %c0_i32_1 = arith.constant 0 : i32
    return %c0_i32, %c0_i32_0 : i32, i32
  }
}

</mosaic_0001>

<bundles_post_ra>
// kernel: egnn_forward.1
= control target key start
LH: loop header
LB: loop body
LE: loop exit
PB: predicated region body
PF: predicated region fallthrough
CT: control target
= control target key end

     0   :  { %s6480_s6 = smov 1   ;;  %s6481_s10 = smov 2   ;;  %s8299_s0 = inlined_call_operand.smem [shape: u32[30], index: -1, kind: input, shape index: {}] }
   0x1   :  { %s6528_s5 = sld [smem:[%s8299_s0]]   ;;  %s6482_s14 = smov 3  }
   0x2   :  { %s6533_s9 = sld [smem:[%s8299_s0 + %s6480_s6]]   ;;  %s6483_s18 = smov 4  }
   0x3   :  { %s6538_s13 = sld [smem:[%s8299_s0 + %s6481_s10]]   ;;  %s6484_s22 = smov 5  }
   0x4   :  { %s6543_s17 = sld [smem:[%s8299_s0 + %s6482_s14]]   ;;  %s6485_s26 = smov 6  }
   0x5   :  { %s6548_s21 = sld [smem:[%s8299_s0 + %s6483_s18]]   ;;  %s6486_s30 = smov 7  }
   0x6   :  { %s6553_s25 = sld [smem:[%s8299_s0 + %s6484_s22]]   ;;  %s6487_s4 = smov 8  }
   0x7   :  { %8318 = sst [smem:[#allocation9_spill]] %s6528_s5  ;;  %s6488_s10 = smov 9  }
   0x8   :  { %8319 = sst [smem:[#allocation10_spill]] %s6533_s9  ;;  %s6489_s15 = smov 10  }
   0x9   :  { %8320 = sst [smem:[#allocation11_spill]] %s6538_s13  ;;  %s6490_s20 = smov 11  }
   0xa   :  { %8321 = sst [smem:[#allocation12_spill]] %s6543_s17  ;;  %s6492_s1 = smov 13  }
   0xb   :  { %8322 = sst [smem:[#allocation13_spill]] %s6548_s21  ;;  %s6493_s7 = smov 14  }
   0xc   :  { %8323 = sst [smem:[#allocation14_spill]] %s6553_s25  ;;  %s6495_s22 = smov 16  }
   0xd   :  { %s6558_s29 = sld [smem:[%s8299_s0 + %s6485_s26]]   ;;  %s6491_s26 = smov 12  }
   0xe   :  { %s6563_s3 = sld [smem:[%s8299_s0 + %s6486_s30]]   ;;  %s6496_s28 = smov 17  }
   0xf   :  { %s6568_s8 = sld [smem:[%s8299_s0 + %s6487_s4]]  }
  0x10   :  { %s6573_s14 = sld [smem:[%s8299_s0 + %s6488_s10]]  }
  0x11   :  { %s6578_s19 = sld [smem:[%s8299_s0 + %s6489_s15]]   ;;  %s6494_s15 = smov 15  }
  0x12   :  { %s6583_s24 = sld [smem:[%s8299_s0 + %s6490_s20]]  }
  0x13   :  { %8324 = sst [smem:[#allocation15_spill]] %s6558_s29 }
  0x14   :  { %8325 = sst [smem:[#allocation16_spill]] %s6563_s3 }
  0x15   :  { %8326 = sst [smem:[#allocation17_spill]] %s6568_s8 }
  0x16   :  { %8327 = sst [smem:[#allocation18_spill]] %s6573_s14 }
  0x17   :  { %s6588_s30 = sld [smem:[%s8299_s0 + %s6491_s26]]  }
  0x18   :  { %s6593_s6 = sld [smem:[%s8299_s0 + %s6492_s1]]  }
  0x19   :  { %s6598_s12 = sld [smem:[%s8299_s0 + %s6493_s7]]   ;;  %s6497_s7 = smov 18  }
  0x1a   :  { %s6603_s20 = sld [smem:[%s8299_s0 + %s6494_s15]]   ;;  %s6498_s15 = smov 19  }
  0x1b   :  { %s6608_s27 = sld [smem:[%s8299_s0 + %s6495_s22]]   ;;  %s6499_s22 = smov 20  }
  0x1c   :  { %s6613_s4 = sld [smem:[%s8299_s0 + %s6496_s28]]   ;;  %s6500_s28 = smov 21  }
  0x1d   :  { %s6618_s17 = sld [smem:[%s8299_s0 + %s6497_s7]]   ;;  %s6501_s7 = smov 22  }
  0x1e   :  { %s6623_s13 = sld [smem:[%s8299_s0 + %s6498_s15]]   ;;  %s6502_s15 = smov 23  }
  0x1f   :  { %s6628_s9 = sld [smem:[%s8299_s0 + %s6499_s22]]   ;;  %s6503_s22 = smov 24  }
  0x20   :  { %s6633_s3 = sld [smem:[%s8299_s0 + %s6500_s28]]   ;;  %s6504_s28 = smov 25  }
  0x21   :  { %s6638_s29 = sld [smem:[%s8299_s0 + %s6501_s7]]   ;;  %s6505_s7 = smov 26  }
  0x22   :  { %s6643_s25 = sld [smem:[%s8299_s0 + %s6502_s15]]   ;;  %s6506_s15 = smov 27  }
  0x23   :  { %s6648_s5 = sld [smem:[%s8299_s0 + %s6503_s22]]   ;;  %s6507_s22 = smov 28  }
  0x24   :  { %s6653_s21 = sld [smem:[%s8299_s0 + %s6504_s28]]   ;;  %s6508_s28 = smov 29  }
  0x27   :  { %8328 = sst [smem:[#allocation19_spill]] %s6638_s29 }
  0x28   :  { %8329 = sst [smem:[#allocation20_spill]] %s6643_s25 }
  0x29   :  { %8330 = sst [smem:[#allocation21_spill]] %s6648_s5 }
  0x2a   :  { %8331 = sst [smem:[#allocation22_spill]] %s6653_s21 }
  0x2b   :  { %s6658_s29 = sld [smem:[%s8299_s0 + %s6505_s7]]  }
  0x2c   :  { %s6663_s25 = sld [smem:[%s8299_s0 + %s6506_s15]]  }
  0x2d   :  { %s6668_s5 = sld [smem:[%s8299_s0 + %s6507_s22]]  }
  0x2e   :  { %s6673_s21 = sld [smem:[%s8299_s0 + %s6508_s28]]  }
  0x31   :  { %8332 = sst [smem:[#allocation23_spill]] %s6658_s29 }
  0x32   :  { %8333 = sst [smem:[#allocation24_spill]] %s6663_s25 }
  0x33   :  { %8334 = sst [smem:[#allocation25_spill]] %s6668_s5 }
  0x34   :  { %8335 = sst [smem:[#allocation26_spill]] %s6673_s21 }
  0x35   :  { %64 = vsyncpa [#allocation7], 0  ;;  %s6675_s7 = smov 0   ;;  %s6677_s10 = smov 0  }
  0x36   :  { %s6679_s11 = smov 0  }
  0x37 LB: > { %8336 = sst [smem:[#allocation27_spill]] %s6474_s10  ;;  %s82_s15 = sadd.s32 1, %s6474_s10  ;;  %s6478_s11 = sphi %s6679_s11, %s70_s11   ;;  %s6474_s10 = sphi %s6677_s10, %s8389_s10   ;;  %s6470_s7 = sphi %s6675_s7, %s8388_s7  }
  0x38   : > { %8337 = sst [smem:[#allocation28_spill]] %s6478_s11  ;;  %p84_p0 = scmp.ge.s32.totalorder %s82_s15, 2 }
  0x39   : > { %p5105_p1 = scmp.ge.s32.totalorder %s6478_s11, 1  ;;  %p961_p2 = scmp.lt.s32.totalorder %s6478_s11, 3 }
  0x3a   : > { %s8391_s15 = smov (%p84_p0, %s82_s15), 0 }
  0x3b   : > { %8338 = sst [smem:[#allocation29_spill]] %s8391_s15  ;;  %p962_p3 = pnand %p5105_p1, %p961_p2 }
  0x3d   : > { %965 = sbr.rel (%p962_p3) target bundleno = 3646 (0xe3e), region = 136 }
  0x42   : > { %s8339_s8 = sld [smem:[#allocation17_spill]]  ;;  %p1098_p4 = scmp.lt.s32.totalorder %s6470_s7, 1 }
  0x43   : > { %s8340_s14 = sld [smem:[#allocation18_spill]]  ;;  %p1159_p5 = scmp.eq.s32.totalorder %s6470_s7, 0 }
  0x44   : > { %s6699_s16 = scalar_select %p1098_p4, %s6470_s7, 1  ;;  %v6509_v1 = vmov (%p1159_p5), 0.0   ;;  %vm6510_vm0 = vmmov (%p1159_p5), 0   ;;  %vm1207_vm1 = vcmask (%p1159_p5), 523264  }
  0x45   : > { %s8341_s22 = sld [smem:[#allocation19_spill]]  ;;  %5622 = vmatprep.subr.bf16.mxu0 (%p1159_p5), %v6509_v1  ;;  %5630 = vmatprep.mubr.msk.bf16.mxu0 (%p1159_p5), %vm6510_vm0, %v6509_v1 }
  0x46   : > { %s5407_s18 = sshll.u32 %s6699_s16, 6  ;;  %s5110_s23 = sshll.u32 %s6699_s16, 1 }
  0x47   : > { %s6710_s1 = scalar_lea.vmem %s6578_s19, %s5110_s23  ;;  %s1114_s2 = scalar_lea.vmem %s6583_s24, %s6699_s16 }
  0x48   : > { %s6704_s26 = scalar_lea.vmem %s8339_s8, %s5407_s18  ;;  %s6715_s0 = scalar_lea.vmem %s6588_s30, %s5407_s18 }
  0x49   : > { %8342 = sst [smem:[#allocation30_spill]] %s6704_s26  ;;  %s6707_s28 = scalar_lea.vmem %s8340_s14, %s5407_s18 }
  0x4a   : > { %s6720_s10 = scalar_lea.vmem %s6598_s12, %s5407_s18  ;;  %s1130_s21 = scalar_lea.vmem %s6603_s20, %s6699_s16 }
  0x4b   : > { %s6725_s11 = scalar_lea.vmem %s6608_s27, %s5407_s18  ;;  %s6728_s5 = scalar_lea.vmem %s6613_s4, %s5407_s18 }
  0x4c   : > { %s6733_s25 = scalar_lea.vmem %s6623_s13, %s5407_s18  ;;  %s1151_s8 = scalar_lea.vmem %s6628_s9, %s6699_s16 }
  0x4d   : > { %s1154_s26 = scalar_lea.vmem %s6633_s3, %s6699_s16  ;;  %s1157_s14 = scalar_lea.vmem %s8341_s22, %s6699_s16 }
  0x4e   : > { %1164 = sbr.rel (!%p1159_p5) target bundleno = 640 (0x280), region = 140  ;;  %s8343_s23 = sld [smem:[#allocation13_spill]] (%p1159_p5) }
  0x4f   : > { %s8344_s15 = sld [smem:[#allocation9_spill]] (%p1159_p5) }
  0x50   : > { %s8345_s29 = sld [smem:[#allocation14_spill]] (%p1159_p5) }
  0x51   : > { %s8346_s18 = sld [smem:[#allocation15_spill]] (%p1159_p5) }
  0x52   : > { %s8347_s22 = sld [smem:[#allocation16_spill]] (%p1159_p5) }
  0x54   : > { %v6050_v0 = vld [vmem:[%s8343_s23 + $0x18] sm:$0xff]   ;;  %v6051_v2 = vld [vmem:[%s8343_s23 + $0x10] sm:$0xff]   ;;  %v6052_v3 = vld [vmem:[%s8343_s23 + $0x8] sm:$0xff]  }
  0x55   : > { %5623 = vmatpush3.bf16.msra.mxu0 %v6050_v0  ;;  %v6053_v4 = vld [vmem:[%s8343_s23] sm:$0xff]   ;;  %v1166_v6 = vld [vmem:[%s8344_s15 + $0x8] sm:$0xff] }
  0x56   : > { %5624 = vmatprep.subr.bf16.mxu0 %v6509_v1  ;;  %v1165_v5 = vld [vmem:[%s8344_s15] sm:$0xff] }
  0x57   : > { %v1167_v7 = vpack.c.bf16 %v1166_v6, %v1165_v5  ;;  %v5122_v8 = vld [vmem:[%s8345_s29] ss:$0 sm:$0xff] }
  0x58   : > { %v5128_v30 = vld [vmem:[%s8346_s18] ss:$0 sm:$0xff] }
  0x59   : > { %5625 = vmatpush3.bf16.msra.mxu0 %v6051_v2  ;;  %v5129_v32 = vld [vmem:[%s8347_s22] ss:$0 sm:$0xff] }
  0x5a   : > { %5626 = vmatprep.subr.bf16.mxu0 %v6509_v1 }
  0x5d   : > { %5627 = vmatpush3.bf16.msra.mxu0 %v6052_v3 }
  0x5e   : > { %5628 = vmatprep.subr.bf16.mxu0 %v6509_v1 }
  0x61   : > { %5629 = vmatpush3.bf16.msra.mxu0 %v6053_v4 }
  0x64   : > { %5631 = vmatmul.mubr.msk.bf16.vlgmr.msra.gmra.mxu0 %vm1207_vm1, %v1167_v7 }
 0x124   : > { %v1245_v9 = vpop.f32.mrf.mxu0 }
 0x125   : > { %v1246_v10 = vadd.f32 %v5122_v8, %v1245_v9 }
 0x126   : > { %v5632_v11 = vpop.f32.mrf.mxu0 }
 0x127   : > { %1254 = vadd.xlane.f32.xlu0 %v1246_v10 }
 0x128   : > { %v1248_v12 = vpop.f32.mrf.mxu0 }
 0x129   : > { %v1249_v13 = vadd.f32 %v5122_v8, %v1248_v12 }
 0x12a   : > { %v5633_v14 = vpop.f32.mrf.mxu0 }
 0x12b   : > { %1256 = vadd.xlane.f32.xlu0 %v1249_v13 }
 0x1b0   : > { %v1255_v15 = vpop.xlane.xlu0 %1254 }
 0x1b1   : > { %v1259_v16 = vmul.f32 0.0078125, %v1255_v15 }
 0x1b3   : > { %v1261_v17 = vsub.f32 %v1246_v10, %v1259_v16 }
 0x1b4   : > { %v1257_v18 = vpop.xlane.xlu0 %1256 }
 0x1b5   : > { %v1260_v19 = vmul.f32 0.0078125, %v1257_v18  ;;  %v1263_v20 = vmul.f32 %v1261_v17, %v1261_v17 }
 0x1b7   : > { %v1262_v21 = vsub.f32 %v1249_v13, %v1260_v19  ;;  %1265 = vadd.xlane.f32.xlu1 %v1263_v20 }
 0x1b9   : > { %v1264_v22 = vmul.f32 %v1262_v21, %v1262_v21 }
 0x1bb   : > { %1267 = vadd.xlane.f32.xlu1 %v1264_v22 }
 0x240   : > { %v1266_v23 = vpop.xlane.xlu1 %1265 }
 0x241   : > { %v1269_v24 = vmul.f32 0.0078125, %v1266_v23 }
 0x243   : > { %v1271_v25 = vadd.f32 1e-05, %v1269_v24 }
 0x244   : > { %v1268_v26 = vpop.xlane.xlu1 %1267 }
 0x245   : > { %6054 = vrsqrt.f32 %v1271_v25  ;;  %v1270_v27 = vmul.f32 0.0078125, %v1268_v26 }
 0x247   : > { %v1272_v28 = vadd.f32 1e-05, %v1270_v27 }
 0x249   : > { %6056 = vrsqrt.f32 %v1272_v28 }
 0x252   : > { %v6055_v29 = vpop.eup %6054 }
 0x253   : > { %v1275_v31 = vmul.f32 %v6055_v29, %v1261_v17 }
 0x255   : > { %v1283_v33 = vmul.f32 %v5128_v30, %v1275_v31 }
 0x256   : > { %v6057_v34 = vpop.eup %6056 }
 0x257   : > { %v1291_v35 = vadd.f32 %v5129_v32, %v1283_v33  ;;  %v1276_v36 = vmul.f32 %v6057_v34, %v1262_v21 }
 0x259   : > { %v5130_v37 = vmul.f32 -1.442695, %v1291_v35  ;;  %v1284_v38 = vmul.f32 %v5128_v30, %v1276_v36 }
 0x25b   : > { %6058 = vpow2.f32 %v5130_v37  ;;  %v1292_v39 = vadd.f32 %v5129_v32, %v1284_v38 }
 0x25d   : > { %v5131_v40 = vmul.f32 -1.442695, %v1292_v39 }
 0x25f   : > { %6060 = vpow2.f32 %v5131_v40 }
 0x268   : > { %v6059_v41 = vpop.eup %6058 }
 0x269   : > { %v1299_v42 = vadd.f32 1.0, %v6059_v41 }
 0x26b   : > { %6062 = vrcp.f32 %v1299_v42 }
 0x26c   : > { %v6061_v43 = vpop.eup %6060 }
 0x26d   : > { %v1300_v44 = vadd.f32 1.0, %v6061_v43 }
 0x26f   : > { %6064 = vrcp.f32 %v1300_v44 }
 0x278   : > { %v6063_v45 = vpop.eup %6062 }
 0x279   : > { %v1305_v46 = vmul.f32 %v6063_v45, %v1291_v35 }
 0x27b   : > { %1307 = vst [vmem:[#allocation2] sm:$0xff] %v1305_v46 }
 0x27c   : > { %v6065_v47 = vpop.eup %6064 }
 0x27d   : > { %v1306_v48 = vmul.f32 %v6065_v47, %v1292_v39 }
 0x27f   : > { %1308 = vst [vmem:[#allocation2 + $0x8] sm:$0xff] %v1306_v48 }
 0x280 PF: > { %s8348_s29 = sld [smem:[#allocation10_spill]]  ;;  %v6511_v51 = vmov 1   ;;  %v6075_v53 = vld [vmem:[%s6707_s28 + $0x38] sm:$0xff]   ;;  %v8311_v55 = vmov 0.0   ;;  %v6077_v58 = vld [vmem:[%s6707_s28 + $0x30] sm:$0xff]   ;;  %vm6513_vm2 = vmmov 0   ;;  %v1595_v45 = vlaneseq }
 0x281   : > { %s8349_s18 = sld [smem:[#allocation30_spill]]  ;;  %6067 = vset.pattern.permute.xlu1 %v6511_v51  ;;  %6066 = vset.pattern.permute.xlu0 %v6511_v51  ;;  %v6079_v62 = vld [vmem:[%s6707_s28 + $0x28] sm:$0xff]   ;;  %v6081_v2 = vld [vmem:[%s6707_s28 + $0x20] sm:$0xff]   ;;  %v6083_v6 = vld [vmem:[%s6707_s28 + $0x18] sm:$0xff]   ;;  %v8309_v38 = vmov 0   ;;  %vm2120_vm5 = vcmask 130048  }
 0x282   : > { %5634 = vmatprep.subr.bf16.mxu0 %v8311_v55  ;;  %5654 = vmatprep.subr.bf16.mxu1 %v8311_v55  ;;  %v6085_v10 = vld [vmem:[%s6707_s28 + $0x10] sm:$0xff]   ;;  %v6087_v14 = vld [vmem:[%s6707_s28 + $0x8] sm:$0xff]   ;;  %v6089_v18 = vld [vmem:[%s6707_s28] sm:$0xff]   ;;  %s6515_s28 = smov 125   ;;  %v1596_v48 = vand.u32 127, %v1595_v45  ;;  %p4492_p6 = scmp.eq.s32.totalorder %s6470_s7, 1 }
 0x283   : > { %5655 = vmatpush3.bf16.msra.mxu1 %v6075_v53  ;;  %5650 = vmatprep.mubr.msk.bf16.mxu0 %vm6513_vm2, %v8311_v55  ;;  %v1314_v19 = vld [vmem:[#allocation2] sm:$0xff]  ;;  %s8379_s7 = sld [smem:[#allocation22_spill]] (%p4492_p6) }
 0x284   : > { %5656 = vmatprep.subr.bf16.mxu1 %v8311_v55  ;;  %5670 = vmatprep.mubr.msk.bf16.mxu1 %vm6513_vm2, %v8311_v55  ;;  %v6962_v51 = vcvt.s32.f32 %v1596_v48 }
 0x286   : > { %v6753_v49 = vld [vmem:[%s8348_s29 + $0x10] sm:$0xff]  ;;  %v6756_v50 = vld [vmem:[%s8348_s29] sm:$0xff]  ;;  %v6763_v54 = vld [vmem:[%s8348_s29 + $0x18] sm:$0xff] }
 0x287   : > { %v6074_v52 = vld [vmem:[%s8349_s18 + $0x38] sm:$0xff]   ;;  %1879 = vperm.xlu1 %6067, %v6753_v49   ;;  %1871 = vperm.xlu0 %6066, %v6756_v50   ;;  %v6768_v56 = vld [vmem:[%s8348_s29 + $0x8] sm:$0xff]  ;;  %v6076_v57 = vld [vmem:[%s8349_s18 + $0x30] sm:$0xff]   ;;  %v1580_v39 = vpack.c.bf16 %v6763_v54, %v6753_v49 }
 0x288   : > { %5635 = vmatpush3.bf16.msra.mxu0 %v6074_v52  ;;  %v6777_v59 = vld [vmem:[%s8348_s29 + $0x28] sm:$0xff]  ;;  %v6780_v60 = vld [vmem:[%s8348_s29 + $0x20] sm:$0xff]  ;;  %5657 = vmatpush3.bf16.msra.mxu1 %v6077_v58  ;;  %v6793_v63 = vld [vmem:[%s8348_s29 + $0x38] sm:$0xff]  ;;  %v1579_v40 = vpack.c.bf16 %v6768_v56, %v6756_v50 }
 0x289   : > { %5636 = vmatprep.subr.bf16.mxu0 %v8311_v55  ;;  %v6078_v61 = vld [vmem:[%s8349_s18 + $0x28] sm:$0xff]   ;;  %5658 = vmatprep.subr.bf16.mxu1 %v8311_v55  ;;  %v6796_v0 = vld [vmem:[%s8348_s29 + $0x30] sm:$0xff]  ;;  %v6080_v1 = vld [vmem:[%s8349_s18 + $0x20] sm:$0xff]   ;;  %v1581_v42 = vpack.c.bf16 %v6777_v59, %v6780_v60 }
 0x28a   : > { %v6805_v3 = vld [vmem:[%s8348_s29 + $0x48] sm:$0xff]  ;;  %v6808_v4 = vld [vmem:[%s8348_s29 + $0x40] sm:$0xff]  ;;  %v6082_v5 = vld [vmem:[%s8349_s18 + $0x18] sm:$0xff]   ;;  %v1582_v41 = vpack.c.bf16 %v6793_v63, %v6796_v0 }
 0x28b   : > { %1883 = vperm.xlu1 %6067, %v6763_v54   ;;  %1875 = vperm.xlu0 %6066, %v6768_v56   ;;  %v6817_v7 = vld [vmem:[%s8348_s29 + $0x58] sm:$0xff]  ;;  %v6820_v8 = vld [vmem:[%s8348_s29 + $0x50] sm:$0xff]  ;;  %v6829_v11 = vld [vmem:[%s8348_s29 + $0x68] sm:$0xff]  ;;  %v1583_v44 = vpack.c.bf16 %v6805_v3, %v6808_v4 }
 0x28c   : > { %5637 = vmatpush3.bf16.msra.mxu0 %v6076_v57  ;;  %5659 = vmatpush3.bf16.msra.mxu1 %v6079_v62  ;;  %v6084_v9 = vld [vmem:[%s8349_s18 + $0x10] sm:$0xff]   ;;  %v6832_v12 = vld [vmem:[%s8348_s29 + $0x60] sm:$0xff]  ;;  %v6086_v13 = vld [vmem:[%s8349_s18 + $0x8] sm:$0xff]   ;;  %v1584_v43 = vpack.c.bf16 %v6817_v7, %v6820_v8 }
 0x28d   : > { %5638 = vmatprep.subr.bf16.mxu0 %v8311_v55  ;;  %5660 = vmatprep.subr.bf16.mxu1 %v8311_v55  ;;  %v6839_v15 = vld [vmem:[%s8348_s29 + $0x78] sm:$0xff]  ;;  %v6842_v16 = vld [vmem:[%s8348_s29 + $0x70] sm:$0xff]  ;;  %v6088_v17 = vld [vmem:[%s8349_s18] sm:$0xff]   ;;  %v1585_v47 = vpack.c.bf16 %v6829_v11, %v6832_v12 }
 0x28e   : > { %v1315_v20 = vld [vmem:[#allocation2 + $0x8] sm:$0xff]  ;;  %v6854_v22 = vld [vmem:[%s8348_s29 + $0x80] sm:$0xff]  ;;  %v6859_v24 = vld [vmem:[%s8348_s29 + $0x98] sm:$0xff]  ;;  %v1586_v46 = vpack.c.bf16 %v6839_v15, %v6842_v16 }
 0x28f   : > { %1891 = vperm.xlu1 %6067, %v6777_v59   ;;  %1887 = vperm.xlu0 %6066, %v6780_v60   ;;  %v6851_v21 = vld [vmem:[%s8348_s29 + $0x88] sm:$0xff]  ;;  %v1316_v23 = vpack.c.bf16 %v1315_v20, %v1314_v19  ;;  %v6864_v25 = vld [vmem:[%s8348_s29 + $0x90] sm:$0xff]  ;;  %v6870_v27 = vld [vmem:[%s8348_s29 + $0xa0] sm:$0xff] }
 0x290   : > { %5639 = vmatpush3.bf16.msra.mxu0 %v6078_v61  ;;  %5661 = vmatpush3.bf16.msra.mxu1 %v6081_v2  ;;  %v6867_v26 = vld [vmem:[%s8348_s29 + $0xa8] sm:$0xff]  ;;  %v6875_v28 = vld [vmem:[%s8348_s29 + $0xb8] sm:$0xff]  ;;  %v6878_v29 = vld [vmem:[%s8348_s29 + $0xb0] sm:$0xff]  ;;  %v1588_v57 = vpack.c.bf16 %v6859_v24, %v6864_v25  ;;  %v1587_v58 = vpack.c.bf16 %v6851_v21, %v6854_v22 }
 0x291   : > { %5640 = vmatprep.subr.bf16.mxu0 %v8311_v55  ;;  %5662 = vmatprep.subr.bf16.mxu1 %v8311_v55  ;;  %v6883_v30 = vld [vmem:[%s8348_s29 + $0xc8] sm:$0xff]  ;;  %v6886_v31 = vld [vmem:[%s8348_s29 + $0xc0] sm:$0xff]  ;;  %v6891_v32 = vld [vmem:[%s8348_s29 + $0xd8] sm:$0xff] }
 0x292   : > { %v6894_v33 = vld [vmem:[%s8348_s29 + $0xd0] sm:$0xff]  ;;  %v6901_v34 = vld [vmem:[%s8348_s29 + $0xe8] sm:$0xff]  ;;  %v6904_v35 = vld [vmem:[%s8348_s29 + $0xe0] sm:$0xff] }
 0x293   : > { %1899 = vperm.xlu1 %6067, %v6793_v63   ;;  %1895 = vperm.xlu0 %6066, %v6796_v0   ;;  %v6909_v36 = vld [vmem:[%s8348_s29 + $0xf8] sm:$0xff]  ;;  %v6912_v37 = vld [vmem:[%s8348_s29 + $0xf0] sm:$0xff]  ;;  %v1593_v45 = vpack.c.bf16 %v6901_v34, %v6904_v35 }
 0x294   : > { %5641 = vmatpush3.bf16.msra.mxu0 %v6080_v1  ;;  %5663 = vmatpush3.bf16.msra.mxu1 %v6083_v6 }
 0x295   : > { %5642 = vmatprep.subr.bf16.mxu0 %v8311_v55  ;;  %5664 = vmatprep.subr.bf16.mxu1 %v8311_v55 }
 0x297   : > { %1907 = vperm.xlu1 %6067, %v6805_v3   ;;  %1903 = vperm.xlu0 %6066, %v6808_v4  }
 0x298   : > { %5643 = vmatpush3.bf16.msra.mxu0 %v6082_v5  ;;  %5665 = vmatpush3.bf16.msra.mxu1 %v6085_v10 }
 0x299   : > { %5644 = vmatprep.subr.bf16.mxu0 %v8311_v55  ;;  %5666 = vmatprep.subr.bf16.mxu1 %v8311_v55 }
 0x29b   : > { %1915 = vperm.xlu1 %6067, %v6817_v7   ;;  %1911 = vperm.xlu0 %6066, %v6820_v8  }
 0x29c   : > { %5645 = vmatpush3.bf16.msra.mxu0 %v6084_v9  ;;  %5667 = vmatpush3.bf16.msra.mxu1 %v6087_v14  ;;  %v1590_v14 = vpack.c.bf16 %v6875_v28, %v6878_v29 }
 0x29d   : > { %5646 = vmatprep.subr.bf16.mxu0 %v8311_v55  ;;  %5668 = vmatprep.subr.bf16.mxu1 %v8311_v55 }
 0x29f   : > { %1923 = vperm.xlu1 %6067, %v6829_v11   ;;  %1919 = vperm.xlu0 %6066, %v6832_v12  }
 0x2a0   : > { %5647 = vmatpush3.bf16.msra.mxu0 %v6086_v13  ;;  %5669 = vmatpush3.bf16.msra.mxu1 %v6089_v18 }
 0x2a1   : > { %5648 = vmatprep.subr.bf16.mxu0 %v8311_v55 }
 0x2a3   : > { %1931 = vperm.xlu1 %6067, %v6839_v15   ;;  %1927 = vperm.xlu0 %6066, %v6842_v16  }
 0x2a4   : > { %5649 = vmatpush3.bf16.msra.mxu0 %v6088_v17  ;;  %5671 = vmatmul.mubr.bf16.vlgmr.msra.gmra.mxu1 %v1316_v23  ;;  %v1589_v17 = vpack.c.bf16 %v6867_v26, %v6870_v27 }
 0x2a7   : > { %1939 = vperm.xlu1 %6067, %v6851_v21   ;;  %1935 = vperm.xlu0 %6066, %v6854_v22  }
 0x2a8   : > { %5651 = vmatmul.mubr.bf16.vlgmr.msra.gmra.mxu0 %v1316_v23 }
 0x2ab   : > { %1947 = vperm.xlu1 %6067, %v6859_v24   ;;  %1943 = vperm.xlu0 %6066, %v6864_v25  }
 0x2af   : > { %1955 = vperm.xlu1 %6067, %v6867_v26   ;;  %1951 = vperm.xlu0 %6066, %v6870_v27  }
 0x2b3   : > { %1963 = vperm.xlu1 %6067, %v6875_v28   ;;  %1959 = vperm.xlu0 %6066, %v6878_v29  }
 0x2b7   : > { %1971 = vperm.xlu1 %6067, %v6883_v30   ;;  %1967 = vperm.xlu0 %6066, %v6886_v31  }
 0x2bb   : > { %1979 = vperm.xlu1 %6067, %v6891_v32   ;;  %1975 = vperm.xlu0 %6066, %v6894_v33  }
 0x2bf   : > { %1987 = vperm.xlu1 %6067, %v6901_v34   ;;  %1983 = vperm.xlu0 %6066, %v6904_v35  }
 0x2c3   : > { %1995 = vperm.xlu1 %6067, %v6909_v36   ;;  %1991 = vperm.xlu0 %6066, %v6912_v37  }
 0x2c7   : > { %6069 = vset.pattern.permute.xlu1 %v8309_v38  ;;  %6068 = vset.pattern.permute.xlu0 %v8309_v38 }
 0x2c8   : > { %1605 = vperm.xlu1 %6069, %v6768_v56   ;;  %1600 = vperm.xlu0 %6068, %v6756_v50  }
 0x2cc   : > { %1610 = vperm.xlu1 %6069, %v6753_v49   ;;  %1615 = vperm.xlu0 %6068, %v6763_v54  }
 0x2d0   : > { %1620 = vperm.xlu1 %6069, %v6780_v60   ;;  %1625 = vperm.xlu0 %6068, %v6777_v59  }
 0x2d4   : > { %1630 = vperm.xlu1 %6069, %v6796_v0   ;;  %1635 = vperm.xlu0 %6068, %v6793_v63  }
 0x2d8   : > { %2564 = vrot.lane.b32.xlu0 %v1580_v39, %s6515_s28  ;;  %2562 = vrot.lane.b32.xlu1 %v1579_v40, %s6515_s28 }
 0x2dc   : > { %1645 = vperm.xlu0 %6068, %v6805_v3   ;;  %1640 = vperm.xlu1 %6069, %v6808_v4  }
 0x2e0   : > { %1655 = vperm.xlu0 %6068, %v6817_v7   ;;  %1650 = vperm.xlu1 %6069, %v6820_v8  }
 0x2e4   : > { %2568 = vrot.lane.b32.xlu0 %v1582_v41, %s6515_s28  ;;  %2566 = vrot.lane.b32.xlu1 %v1581_v42, %s6515_s28  ;;  %v1591_v41 = vpack.c.bf16 %v6883_v30, %v6886_v31  ;;  %v1592_v42 = vpack.c.bf16 %v6891_v32, %v6894_v33 }
 0x2e8   : > { %1665 = vperm.xlu0 %6068, %v6829_v11   ;;  %1660 = vperm.xlu1 %6069, %v6832_v12  }
 0x2ec   : > { %1675 = vperm.xlu0 %6068, %v6839_v15   ;;  %1670 = vperm.xlu1 %6069, %v6842_v16  }
 0x2f0   : > { %2572 = vrot.lane.b32.xlu0 %v1584_v43, %s6515_s28  ;;  %2570 = vrot.lane.b32.xlu1 %v1583_v44, %s6515_s28 }
 0x2f4   : > { %1685 = vperm.xlu0 %6068, %v6851_v21   ;;  %1680 = vperm.xlu1 %6069, %v6854_v22  }
 0x2f8   : > { %1695 = vperm.xlu0 %6068, %v6859_v24   ;;  %1690 = vperm.xlu1 %6069, %v6864_v25  }
 0x2fc   : > { %2576 = vrot.lane.b32.xlu0 %v1586_v46, %s6515_s28  ;;  %2574 = vrot.lane.b32.xlu1 %v1585_v47, %s6515_s28  ;;  %v1594_v46 = vpack.c.bf16 %v6909_v36, %v6912_v37  ;;  %v6516_v47 = vmov 2  }
 0x300   : > { %1705 = vperm.xlu0 %6068, %v6867_v26   ;;  %1700 = vperm.xlu1 %6069, %v6870_v27  }
 0x302   : > { %v6966_v52 = vpop.permute.xlu1 %1879  ;;  %v1872_v53 = vpop.permute.xlu0 %1871 }
 0x303   : > { %vm1998_vm3 = vcmp.eq.f32.partialorder %v1872_v53, %v6962_v51 }
 0x304   : > { %1715 = vperm.xlu0 %6068, %v6875_v28   ;;  %1710 = vperm.xlu1 %6069, %v6878_v29   ;;  %v5184_v61 = vsel %vm1998_vm3, 1.0, %v8311_v55  ;;  %vm2000_vm3 = vcmp.eq.f32.partialorder %v6966_v52, %v6962_v51 }
 0x306   : > { %v6976_v62 = vpop.permute.xlu1 %1883  ;;  %v1876_v1 = vpop.permute.xlu0 %1875 }
 0x307   : > { %vm1999_vm4 = vcmp.eq.f32.partialorder %v1876_v1, %v6962_v51 }
 0x308   : > { %v5185_v2 = vsel %vm1999_vm4, 1.0, %v8311_v55  ;;  %2580 = vrot.lane.b32.xlu0 %v1588_v57, %s6515_s28  ;;  %2578 = vrot.lane.b32.xlu1 %v1587_v58, %s6515_s28  ;;  %vm2001_vm4 = vcmp.eq.f32.partialorder %v6976_v62, %v6962_v51 }
 0x309   : > { %v2094_v5 = vpack.c.bf16 %v5185_v2, %v5184_v61 }
 0x30a   : > { %v6982_v6 = vpop.permute.xlu1 %1891  ;;  %v6984_v9 = vpop.permute.xlu0 %1887 }
 0x30b   : > { %5676 = vmatprep.mubr.msk.bf16.mxu0 %vm2120_vm5, %v2094_v5 }
 0x30c   : > { %1725 = vperm.xlu0 %6068, %v6883_v30   ;;  %1720 = vperm.xlu1 %6069, %v6886_v31  }
 0x30e   : > { %v6989_v10 = vpop.permute.xlu1 %1899  ;;  %v6991_v13 = vpop.permute.xlu0 %1895 }
 0x310   : > { %1735 = vperm.xlu0 %6068, %v6891_v32   ;;  %1730 = vperm.xlu1 %6069, %v6894_v33  }
 0x312   : > { %v6999_v18 = vpop.permute.xlu1 %1907  ;;  %v7001_v19 = vpop.permute.xlu0 %1903 }
 0x314   : > { %2584 = vrot.lane.b32.xlu0 %v1590_v14, %s6515_s28  ;;  %2582 = vrot.lane.b32.xlu1 %v1589_v17, %s6515_s28 }
 0x316   : > { %v7005_v20 = vpop.permute.xlu1 %1915  ;;  %v7007_v23 = vpop.permute.xlu0 %1911 }
 0x318   : > { %1745 = vperm.xlu0 %6068, %v6901_v34   ;;  %1740 = vperm.xlu1 %6069, %v6904_v35  }
 0x31a   : > { %v7011_v39 = vpop.permute.xlu1 %1923  ;;  %v7013_v40 = vpop.permute.xlu0 %1919 }
 0x31c   : > { %1755 = vperm.xlu0 %6068, %v6909_v36   ;;  %1750 = vperm.xlu1 %6069, %v6912_v37  }
 0x31e   : > { %v7021_v43 = vpop.permute.xlu1 %1931  ;;  %v7023_v44 = vpop.permute.xlu0 %1927 }
 0x320   : > { %2586 = vrot.lane.b32.xlu1 %v1591_v41, %s6515_s28  ;;  %2588 = vrot.lane.b32.xlu0 %v1592_v42, %s6515_s28 }
 0x321   : > { %6070 = vset.pattern.permute.xlu1 %v6516_v47  ;;  %6071 = vset.pattern.permute.xlu0 %v6516_v47 }
 0x322   : > { %v7031_v48 = vpop.permute.xlu1 %1939  ;;  %v7033_v53 = vpop.permute.xlu0 %1935 }
 0x324   : > { %2590 = vrot.lane.b32.xlu1 %v1593_v45, %s6515_s28  ;;  %2592 = vrot.lane.b32.xlu0 %v1594_v46, %s6515_s28 }
 0x326   : > { %v7037_v57 = vpop.permute.xlu1 %1947  ;;  %v7039_v58 = vpop.permute.xlu0 %1943 }
 0x328   : > { %3944 = vperm.xlu1 %6070, %v6912_v37   ;;  %3948 = vperm.xlu0 %6071, %v6909_v36  }
 0x32a   : > { %v7043_v61 = vpop.permute.xlu1 %1955  ;;  %v7045_v1 = vpop.permute.xlu0 %1951 }
 0x32c   : > { %3880 = vperm.xlu1 %6070, %v6842_v16   ;;  %3936 = vperm.xlu0 %6071, %v6904_v35  }
 0x32e   : > { %v1964_v2 = vpop.permute.xlu1 %1963  ;;  %v1960_v5 = vpop.permute.xlu0 %1959 }
 0x32f   : > { %vm2021_vm6 = vcmp.eq.f32.partialorder %v1964_v2, %v6962_v51  ;;  %vm2020_vm7 = vcmp.eq.f32.partialorder %v1960_v5, %v6962_v51 }
 0x330   : > { %v7052_v14 = vsel %vm2021_vm6, 1.0, %v8311_v55  ;;  %v7055_v37 = vsel %vm2020_vm7, 1.0, %v8311_v55  ;;  %3884 = vperm.xlu1 %6070, %v6839_v15   ;;  %3872 = vperm.xlu0 %6071, %v6832_v12   ;;  %vm2003_vm6 = vcmp.eq.f32.partialorder %v6982_v6, %v6962_v51  ;;  %vm2002_vm7 = vcmp.eq.f32.partialorder %v6984_v9, %v6962_v51 }
 0x332   : > { %v1972_v35 = vpop.permute.xlu1 %1971  ;;  %v1968_v36 = vpop.permute.xlu0 %1967 }
 0x333   : > { %vm2023_vm8 = vcmp.eq.f32.partialorder %v1972_v35, %v6962_v51  ;;  %vm2022_vm9 = vcmp.eq.f32.partialorder %v1968_v36, %v6962_v51 }
 0x334   : > { %v7064_v17 = vsel %vm2023_vm8, 1.0, %v8311_v55  ;;  %v7067_v41 = vsel %vm2022_vm9, 1.0, %v8311_v55  ;;  %3940 = vperm.xlu1 %6070, %v6901_v34   ;;  %3928 = vperm.xlu0 %6071, %v6894_v33  }
 0x336   : > { %v1980_v15 = vpop.permute.xlu1 %1979  ;;  %v1976_v42 = vpop.permute.xlu0 %1975 }
 0x337   : > { %vm2025_vm10 = vcmp.eq.f32.partialorder %v1980_v15, %v6962_v51  ;;  %vm2024_vm11 = vcmp.eq.f32.partialorder %v1976_v42, %v6962_v51 }
 0x338   : > { %v7076_v45 = vsel %vm2025_vm10, 1.0, %v8311_v55  ;;  %v7079_v46 = vsel %vm2024_vm11, 1.0, %v8311_v55  ;;  %3876 = vperm.xlu1 %6070, %v6829_v11   ;;  %3864 = vperm.xlu0 %6071, %v6820_v8  }
 0x33a   : > { %v1988_v34 = vpop.permute.xlu1 %1987  ;;  %v1984_v47 = vpop.permute.xlu0 %1983 }
 0x33b   : > { %vm2027_vm12 = vcmp.eq.f32.partialorder %v1988_v34, %v6962_v51  ;;  %vm2026_vm13 = vcmp.eq.f32.partialorder %v1984_v47, %v6962_v51 }
 0x33c   : > { %v7088_v2 = vsel %vm2027_vm12, 1.0, %v8311_v55  ;;  %v7091_v5 = vsel %vm2026_vm13, 1.0, %v8311_v55  ;;  %3932 = vperm.xlu1 %6070, %v6891_v32   ;;  %3920 = vperm.xlu0 %6071, %v6886_v31  }
 0x33e   : > { %v1996_v11 = vpop.permute.xlu1 %1995  ;;  %v1992_v35 = vpop.permute.xlu0 %1991 }
 0x33f   : > { %vm2029_vm14 = vcmp.eq.f32.partialorder %v1996_v11, %v6962_v51  ;;  %vm2028_vm15 = vcmp.eq.f32.partialorder %v1992_v35, %v6962_v51 }
 0x340   : > { %v7100_v36 = vsel %vm2029_vm14, 1.0, %v8311_v55  ;;  %v7103_v15 = vsel %vm2028_vm15, 1.0, %v8311_v55  ;;  %3868 = vperm.xlu1 %6070, %v6817_v7   ;;  %3856 = vperm.xlu0 %6071, %v6808_v4   ;;  %vm2643_vm14 = vcmask 1041408   ;;  %vm2005_vm15 = vcmp.eq.f32.partialorder %v6989_v10, %v6962_v51 }
 0x343   : > { %v1606_v32 = vpop.permute.xlu1 %1605  ;;  %v1601_v42 = vpop.permute.xlu0 %1600 }
 0x344   : > { %vm1759_vm0 = vcmp.eq.f32.partialorder %v1606_v32, %v6962_v51  ;;  %vm1758_vm1 = vcmp.eq.f32.partialorder %v1601_v42, %v6962_v51  ;;  %3924 = vperm.xlu1 %6070, %v6883_v30   ;;  %3912 = vperm.xlu0 %6071, %v6878_v29  }
 0x345   : > { %v5153_v34 = vsel %vm1759_vm0, 1.0, %v8311_v55  ;;  %v5152_v47 = vsel %vm1758_vm1, 1.0, %v8311_v55 }
 0x346   : > { %v7115_v7 = vpack.c.bf16 %v5153_v34, %v5152_v47 }
 0x347   : > { %v7117_v4 = vpop.permute.xlu1 %1610  ;;  %v7119_v11 = vpop.permute.xlu0 %1615 }
 0x348   : > { %3860 = vperm.xlu1 %6070, %v6805_v3   ;;  %3848 = vperm.xlu0 %6071, %v6796_v0   ;;  %vm1760_vm8 = vcmp.eq.f32.partialorder %v7117_v4, %v6962_v51  ;;  %vm1761_vm9 = vcmp.eq.f32.partialorder %v7119_v11, %v6962_v51  ;;  %v2545_v11 = vld [vmem:[%s6710_s1] sm:$0x3] }
 0x349   : > { %5710 = vmatprep.mubr.msk.bf16.mxu1 %vm2120_vm5, %v7115_v7 }
 0x34b   : > { %v7125_v30 = vpop.permute.xlu1 %1620  ;;  %v7127_v29 = vpop.permute.xlu0 %1625 }
 0x34c   : > { %3916 = vperm.xlu1 %6070, %v6875_v28   ;;  %3904 = vperm.xlu0 %6071, %v6870_v27   ;;  %vm1762_vm10 = vcmp.eq.f32.partialorder %v7125_v30, %v6962_v51  ;;  %vm1763_vm11 = vcmp.eq.f32.partialorder %v7127_v29, %v6962_v51 }
 0x34f   : > { %v7131_v35 = vpop.permute.xlu1 %1630  ;;  %v7133_v32 = vpop.permute.xlu0 %1635 }
 0x350   : > { %3852 = vperm.xlu1 %6070, %v6793_v63   ;;  %3840 = vperm.xlu0 %6071, %v6780_v60  }
 0x353   : > { %v7137_v0 = vpop.permute.xlu0 %2564  ;;  %v7139_v3 = vpop.permute.xlu1 %2562 }
 0x354   : > { %3908 = vperm.xlu1 %6070, %v6867_v26   ;;  %3896 = vperm.xlu0 %6071, %v6864_v25  }
 0x357   : > { %v7143_v42 = vpop.permute.xlu0 %1645  ;;  %v7145_v28 = vpop.permute.xlu1 %1640 }
 0x358   : > { %3844 = vperm.xlu1 %6070, %v6777_v59   ;;  %3832 = vperm.xlu0 %6071, %v6753_v49  }
 0x35b   : > { %v7149_v27 = vpop.permute.xlu0 %1655  ;;  %v7151_v63 = vpop.permute.xlu1 %1650 }
 0x35c   : > { %3900 = vperm.xlu1 %6070, %v6859_v24   ;;  %3888 = vperm.xlu0 %6071, %v6854_v22  }
 0x35f   : > { %v7155_v60 = vpop.permute.xlu0 %2568  ;;  %v7157_v26 = vpop.permute.xlu1 %2566 }
 0x360   : > { %8350 = vst [vmem:[#allocation31_spill] sm:$0xff] %v7155_v60  ;;  %3836 = vperm.xlu1 %6070, %v6763_v54   ;;  %3824 = vperm.xlu0 %6071, %v6756_v50  }
 0x363   : > { %v7161_v25 = vpop.permute.xlu0 %1665  ;;  %v7163_v59 = vpop.permute.xlu1 %1660 }
 0x364   : > { %3892 = vperm.xlu1 %6070, %v6851_v21   ;;  %v1530_v22 = vpop.f32.mrf.mxu1 }
 0x366   : > { %v5672_v31 = vpop.f32.mrf.mxu1 }
 0x367   : > { %v7166_v49 = vpop.permute.xlu0 %1675  ;;  %v7168_v34 = vpop.permute.xlu1 %1670 }
 0x368   : > { %v1415_v24 = vpop.f32.mrf.mxu0  ;;  %3828 = vperm.xlu1 %6070, %v6768_v56   ;;  %v1533_v33 = vpop.f32.mrf.mxu1  ;;  %v8351_v56 = vmov 0.0  }
 0x369   : > { %v5428_v12 = vpack.c.bf16 %v1533_v33, %v1530_v22  ;;  %v5187_v52 = vsel %vm2001_vm4, 1.0, %v8351_v56  ;;  %v5189_v9 = vsel %vm2003_vm6, 1.0, %v8351_v56  ;;  %v5155_v33 = vsel %vm1761_vm9, 1.0, %v8351_v56 }
 0x36a   : > { %v5652_v47 = vpop.f32.mrf.mxu0  ;;  %v5673_v16 = vpop.f32.mrf.mxu1  ;;  %v5156_v31 = vsel %vm1762_vm10, 1.0, %v8351_v56  ;;  %v5157_v4 = vsel %vm1763_vm11, 1.0, %v8351_v56  ;;  %vm2007_vm4 = vcmp.eq.f32.partialorder %v6999_v18, %v6962_v51  ;;  %vm2006_vm6 = vcmp.eq.f32.partialorder %v7001_v19, %v6962_v51 }
 0x36b   : > { %v7171_v8 = vpop.permute.xlu0 %2572  ;;  %v7173_v54 = vpop.permute.xlu1 %2570  ;;  %5429 = vst [vmem:[#allocation4] sm:$0xff] %v5428_v12   ;;  %v5188_v16 = vsel %vm2002_vm7, 1.0, %v8351_v56  ;;  %v5154_v12 = vsel %vm1760_vm8, 1.0, %v8351_v56  ;;  %vm1764_vm7 = vcmp.eq.f32.partialorder %v7131_v35, %v6962_v51  ;;  %vm1765_vm8 = vcmp.eq.f32.partialorder %v7133_v32, %v6962_v51 }
 0x36c   : > { %v1418_v50 = vpop.f32.mrf.mxu0  ;;  %vm1767_vm9 = vcmp.eq.f32.partialorder %v7143_v42, %v6962_v51  ;;  %vm1766_vm10 = vcmp.eq.f32.partialorder %v7145_v28, %v6962_v51  ;;  %v5192_v10 = vsel %vm2006_vm6, 1.0, %v8351_v56  ;;  %v5159_v18 = vsel %vm1765_vm8, 1.0, %v8351_v56 }
 0x36d   : > { %v5423_v38 = vpack.c.bf16 %v1418_v50, %v1415_v24  ;;  %v2096_v50 = vpack.c.bf16 %v5189_v9, %v5188_v16  ;;  %v2645_v9 = vsel %vm2643_vm14, %v2545_v11, 0  ;;  %v5161_v19 = vsel %vm1767_vm9, 1.0, %v8351_v56 }
 0x36e   : > { %v5653_v21 = vpop.f32.mrf.mxu0  ;;  %v5160_v35 = vsel %vm1766_vm10, 1.0, %v8351_v56  ;;  %vm1770_vm6 = vcmp.eq.f32.partialorder %v7163_v59, %v6962_v51  ;;  %vm2010_vm8 = vcmp.eq.f32.partialorder %v7013_v40, %v6962_v51 }
 0x36f   : > { %5424 = vst [vmem:[#allocation3] sm:$0xff] %v5423_v38   ;;  %v1686_v55 = vpop.permute.xlu0 %1685  ;;  %v1681_v60 = vpop.permute.xlu1 %1680  ;;  %v5186_v38 = vsel %vm2000_vm3, 1.0, %v8351_v56  ;;  %vm2004_vm3 = vcmp.eq.f32.partialorder %v6991_v13, %v6962_v51  ;;  %v7216_v21 = vpack.c.bf16 %v5155_v33, %v5154_v12  ;;  %v5158_v13 = vsel %vm1764_vm7, 1.0, %v8351_v56 }
 0x370   : > { %vm1775_vm12 = vcmp.eq.f32.partialorder %v1686_v55, %v6962_v51  ;;  %vm1774_vm13 = vcmp.eq.f32.partialorder %v1681_v60, %v6962_v51  ;;  %v2095_v29 = vpack.c.bf16 %v5187_v52, %v5186_v38  ;;  %v7220_v38 = vpack.c.bf16 %v5157_v4, %v5156_v31 }
 0x371   : > { %v5169_v55 = vsel %vm1775_vm12, 1.0, %v8351_v56  ;;  %v5168_v24 = vsel %vm1774_vm13, 1.0, %v8351_v56  ;;  %v5193_v4 = vsel %vm2007_vm4, 1.0, %v8351_v56  ;;  %v7291_v42 = vpack.c.bf16 %v5159_v18, %v5158_v13 }
 0x372   : > { %v6090_v30 = vld [vmem:[#allocation4] sm:$0xff]   ;;  %v7222_v52 = vpack.c.bf16 %v5169_v55, %v5168_v24  ;;  %v2098_v28 = vpack.c.bf16 %v5193_v4, %v5192_v10  ;;  %vm1771_vm4 = vcmp.eq.f32.partialorder %v7161_v25, %v6962_v51  ;;  %vm2011_vm7 = vcmp.eq.f32.partialorder %v7011_v39, %v6962_v51 }
 0x373   : > { %v1696_v62 = vpop.permute.xlu0 %1695  ;;  %v1691_v6 = vpop.permute.xlu1 %1690  ;;  %5674 = vmatprep.subr.bf16.mxu0 %v6090_v30  ;;  %v5164_v25 = vsel %vm1770_vm6, 1.0, %v8351_v56  ;;  %vm2016_vm6 = vcmp.eq.f32.partialorder %v7039_v58, %v6962_v51 }
 0x374   : > { %vm1777_vm0 = vcmp.eq.f32.partialorder %v1696_v62, %v6962_v51  ;;  %vm1776_vm1 = vcmp.eq.f32.partialorder %v1691_v6, %v6962_v51  ;;  %5675 = vmatpush3.bf16.msra.mxu0 %v6090_v30  ;;  %v5191_v62 = vsel %vm2005_vm15, 1.0, %v8351_v56  ;;  %v5190_v6 = vsel %vm2004_vm3, 1.0, %v8351_v56 }
 0x375   : > { %5979 = vmatprep.subr.msk.bf16.mxu0 %vm2643_vm14, %v2545_v11  ;;  %v5171_v16 = vsel %vm1777_vm0, 1.0, %v8351_v56  ;;  %v5170_v12 = vsel %vm1776_vm1, 1.0, %v8351_v56  ;;  %v2097_v24 = vpack.c.bf16 %v5191_v62, %v5190_v6  ;;  %vm1769_vm15 = vcmp.eq.f32.partialorder %v7149_v27, %v6962_v51 }
 0x376   : > { %v6091_v60 = vld [vmem:[#allocation3] sm:$0xff]   ;;  %v7270_v11 = vpack.c.bf16 %v5171_v16, %v5170_v12  ;;  %vm1768_vm0 = vcmp.eq.f32.partialorder %v7151_v63, %v6962_v51  ;;  %vm2009_vm1 = vcmp.eq.f32.partialorder %v7005_v20, %v6962_v51  ;;  %vm2008_vm3 = vcmp.eq.f32.partialorder %v7007_v23, %v6962_v51 }
 0x377   : > { %v7204_v22 = vpop.permute.xlu0 %2576  ;;  %v7206_v47 = vpop.permute.xlu1 %2574  ;;  %5708 = vmatprep.subr.bf16.mxu1 %v6091_v60  ;;  %5677 = vmatmul.mubr.msk.bf16.vlgmr.msra.gmra.mxu0 %vm2120_vm5, %v2095_v29  ;;  %v5163_v20 = vsel %vm1769_vm15, 1.0, %v8351_v56  ;;  %v5162_v23 = vsel %vm1768_vm0, 1.0, %v8351_v56  ;;  %v5195_v39 = vsel %vm2009_vm1, 1.0, %v8351_v56  ;;  %v5194_v40 = vsel %vm2008_vm3, 1.0, %v8351_v56 }
 0x378   : > { %5709 = vmatpush3.bf16.msra.mxu1 %v6091_v60  ;;  %5680 = vmatprep.mubr.msk.bf16.mxu0 %vm2120_vm5, %v2096_v50  ;;  %v7293_v60 = vpack.c.bf16 %v5161_v19, %v5160_v35  ;;  %v5165_v63 = vsel %vm1771_vm4, 1.0, %v8351_v56  ;;  %v5197_v62 = vsel %vm2011_vm7, 1.0, %v8351_v56  ;;  %v5196_v6 = vsel %vm2010_vm8, 1.0, %v8351_v56 }
 0x379   : > { %5743 = vmatpush3.bf16.msra.mxu0 %v2645_v9  ;;  %v7339_v4 = vpack.c.bf16 %v5163_v20, %v5162_v23  ;;  %v2099_v18 = vpack.c.bf16 %v5195_v39, %v5194_v40  ;;  %v7343_v19 = vpack.c.bf16 %v5165_v63, %v5164_v25  ;;  %vm2015_vm1 = vcmp.eq.f32.partialorder %v7031_v48, %v6962_v51 }
 0x37a   : > { %vm2014_vm3 = vcmp.eq.f32.partialorder %v7033_v53, %v6962_v51  ;;  %v5201_v23 = vsel %vm2015_vm1, 1.0, %v8351_v56  ;;  %vm2017_vm4 = vcmp.eq.f32.partialorder %v7037_v57, %v6962_v51 }
 0x37b   : > { %v1706_v33 = vpop.permute.xlu0 %1705  ;;  %v1701_v31 = vpop.permute.xlu1 %1700  ;;  %5711 = vmatmul.mubr.msk.bf16.vlgmr.msra.gmra.mxu1 %vm2120_vm5, %v7216_v21  ;;  %v5203_v58 = vsel %vm2017_vm4, 1.0, %v8351_v56 }
 0x37c   : > { %vm1779_vm11 = vcmp.eq.f32.partialorder %v1706_v33, %v6962_v51  ;;  %vm1778_vm12 = vcmp.eq.f32.partialorder %v1701_v31, %v6962_v51  ;;  %5714 = vmatprep.mubr.msk.bf16.mxu1 %vm2120_vm5, %v7220_v38 }
 0x37d   : > { %v5173_v32 = vsel %vm1779_vm11, 1.0, %v8351_v56  ;;  %v5172_v55 = vsel %vm1778_vm12, 1.0, %v8351_v56  ;;  %vm1773_vm11 = vcmp.eq.f32.partialorder %v7166_v49, %v6962_v51  ;;  %vm1772_vm12 = vcmp.eq.f32.partialorder %v7168_v34, %v6962_v51 }
 0x37e   : > { %4017 = vxpose.xlu0.c.b16.start [1/8] (narrow) %v7222_v52, 16  ;;  %v7295_v50 = vpack.c.bf16 %v5173_v32, %v5172_v55  ;;  %v2100_v32 = vpack.c.bf16 %v5197_v62, %v5196_v6 }
 0x37f   : > { %v1716_v30 = vpop.permute.xlu0 %1715  ;;  %v1711_v29 = vpop.permute.xlu1 %1710  ;;  %5681 = vmatmul.mubr.msk.bf16.gmra.mxu0 %vm2120_vm5, %v2097_v24  ;;  %v5167_v24 = vsel %vm1773_vm11, 1.0, %v8351_v56 }
 0x380   : > { %vm1781_vm13 = vcmp.eq.f32.partialorder %v1716_v30, %v6962_v51  ;;  %vm1780_vm14 = vcmp.eq.f32.partialorder %v1711_v29, %v6962_v51  ;;  %5684 = vmatprep.mubr.msk.bf16.mxu0 %vm2120_vm5, %v2098_v28  ;;  %v5166_v28 = vsel %vm1772_vm12, 1.0, %v8351_v56 }
 0x381   : > { %v5175_v9 = vsel %vm1781_vm13, 1.0, %v8351_v56  ;;  %v5174_v16 = vsel %vm1780_vm14, 1.0, %v8351_v56  ;;  %vm2013_vm13 = vcmp.eq.f32.partialorder %v7021_v43, %v6962_v51  ;;  %vm2012_vm14 = vcmp.eq.f32.partialorder %v7023_v44, %v6962_v51 }
 0x382   : > { %4018 = vxpose.xlu0.c.b16.cont [2/8] (narrow) %v7270_v11, 16  ;;  %v7326_v27 = vpack.c.bf16 %v5175_v9, %v5174_v16  ;;  %v5199_v16 = vsel %vm2013_vm13, 1.0, %v8351_v56  ;;  %v5198_v49 = vsel %vm2012_vm14, 1.0, %v8351_v56  ;;  %v5200_v43 = vsel %vm2014_vm3, 1.0, %v8351_v56 }
 0x383   : > { %v7304_v12 = vpop.permute.xlu0 %2580  ;;  %v7306_v33 = vpop.permute.xlu1 %2578  ;;  %5715 = vmatmul.mubr.msk.bf16.gmra.mxu1 %vm2120_vm5, %v7291_v42  ;;  %v1861_v39 = vpack.c.bf16 %v5167_v24, %v5166_v28  ;;  %v2101_v40 = vpack.c.bf16 %v5199_v16, %v5198_v49  ;;  %v2102_v44 = vpack.c.bf16 %v5201_v23, %v5200_v43  ;;  %vm2594_vm13 = vcmask 31744  }
 0x384   : > { %5718 = vmatprep.mubr.msk.bf16.mxu1 %vm2120_vm5, %v7293_v60 }
 0x386   : > { %4019 = vxpose.xlu0.c.b16.cont [3/8] (narrow) %v7295_v50, 16 }
 0x387   : > { %v1726_v59 = vpop.permute.xlu0 %1725  ;;  %v1721_v31 = vpop.permute.xlu1 %1720  ;;  %5685 = vmatmul.mubr.msk.bf16.gmra.mxu0 %vm2120_vm5, %v2099_v18 }
 0x388   : > { %vm1783_vm9 = vcmp.eq.f32.partialorder %v1726_v59, %v6962_v51  ;;  %vm1782_vm10 = vcmp.eq.f32.partialorder %v1721_v31, %v6962_v51  ;;  %5688 = vmatprep.mubr.msk.bf16.mxu0 %vm2120_vm5, %v2100_v32 }
 0x389   : > { %v5177_v10 = vsel %vm1783_vm9, 1.0, %v8351_v56  ;;  %v5176_v13 = vsel %vm1782_vm10, 1.0, %v8351_v56  ;;  %vm2019_vm9 = vcmp.eq.f32.partialorder %v7043_v61, %v6962_v51  ;;  %vm2018_vm10 = vcmp.eq.f32.partialorder %v7045_v1, %v6962_v51 }
 0x38a   : > { %v7345_v35 = vpack.c.bf16 %v5177_v10, %v5176_v13  ;;  %4020 = vxpose.xlu0.c.b16.cont [4/8] (narrow) %v7326_v27, 16  ;;  %v5205_v1 = vsel %vm2019_vm9, 1.0, %v8351_v56  ;;  %v5204_v59 = vsel %vm2018_vm10, 1.0, %v8351_v56 }
 0x38b   : > { %v1736_v55 = vpop.permute.xlu0 %1735  ;;  %v1731_v30 = vpop.permute.xlu1 %1730  ;;  %4001 = vxpose.xlu1.c.b16.start [1/8] (narrow) %v7115_v7, 16  ;;  %5719 = vmatmul.mubr.msk.bf16.gmra.mxu1 %vm2120_vm5, %v7339_v4  ;;  %v2104_v10 = vpack.c.bf16 %v5205_v1, %v5204_v59 }
 0x38c   : > { %vm1785_vm15 = vcmp.eq.f32.partialorder %v1736_v55, %v6962_v51  ;;  %vm1784_vm0 = vcmp.eq.f32.partialorder %v1731_v30, %v6962_v51  ;;  %5722 = vmatprep.mubr.msk.bf16.mxu1 %vm2120_vm5, %v7343_v19 }
 0x38d   : > { %v5179_v7 = vsel %vm1785_vm15, 1.0, %v8351_v56  ;;  %v5178_v29 = vsel %vm1784_vm0, 1.0, %v8351_v56 }
 0x38e   : > { %v1867_v9 = vpack.c.bf16 %v5179_v7, %v5178_v29  ;;  %4021 = vxpose.xlu0.c.b16.cont [5/8] (narrow) %v7345_v35, 16 }
 0x38f   : > { %v7388_v20 = vpop.permute.xlu0 %2584  ;;  %v7390_v34 = vpop.permute.xlu1 %2582  ;;  %4002 = vxpose.xlu1.c.b16.cont [2/8] (narrow) %v7216_v21, 16  ;;  %5689 = vmatmul.mubr.msk.bf16.gmra.mxu0 %vm2120_vm5, %v2101_v40  ;;  %v5202_v21 = vsel %vm2016_vm6, 1.0, %v8351_v56 }
 0x390   : > { %5692 = vmatprep.mubr.msk.bf16.mxu0 %vm2120_vm5, %v2102_v44  ;;  %v2103_v62 = vpack.c.bf16 %v5203_v58, %v5202_v21 }
 0x392   : > { %4022 = vxpose.xlu0.c.b16.cont [6/8] (narrow) %v1867_v9, 16 }
 0x393   : > { %v1746_v63 = vpop.permute.xlu0 %1745  ;;  %v1741_v25 = vpop.permute.xlu1 %1740  ;;  %4003 = vxpose.xlu1.c.b16.cont [3/8] (narrow) %v7220_v38, 16  ;;  %5723 = vmatmul.mubr.msk.bf16.gmra.mxu1 %vm2120_vm5, %v1861_v39 }
 0x394   : > { %vm1787_vm7 = vcmp.eq.f32.partialorder %v1746_v63, %v6962_v51  ;;  %vm1786_vm8 = vcmp.eq.f32.partialorder %v1741_v25, %v6962_v51  ;;  %5726 = vmatprep.mubr.msk.bf16.mxu1 %vm2120_vm5, %v7222_v52 }
 0x395   : > { %v5181_v48 = vsel %vm1787_vm7, 1.0, %v8351_v56  ;;  %v5180_v53 = vsel %vm1786_vm8, 1.0, %v8351_v56 }
 0x396   : > { %v1868_v57 = vpack.c.bf16 %v5181_v48, %v5180_v53 }
 0x397   : > { %v1756_v61 = vpop.permute.xlu0 %1755  ;;  %v1751_v38 = vpop.permute.xlu1 %1750  ;;  %4004 = vxpose.xlu1.c.b16.cont [4/8] (narrow) %v7291_v42, 16  ;;  %5693 = vmatmul.mubr.msk.bf16.gmra.mxu0 %vm2120_vm5, %v2103_v62  ;;  %v8354_v42 = vmov 0  }
 0x398   : > { %vm1789_vm11 = vcmp.eq.f32.partialorder %v1756_v61, %v6962_v51  ;;  %vm1788_vm12 = vcmp.eq.f32.partialorder %v1751_v38, %v6962_v51  ;;  %4023 = vxpose.xlu0.c.b16.cont [7/8] (narrow) %v1868_v57, 16  ;;  %5696 = vmatprep.mubr.msk.bf16.mxu0 %vm2120_vm5, %v2104_v10  ;;  %v8352_v51 = vpack.c.bf16 %v7052_v14, %v7055_v37 }
 0x399   : > { %v5183_v31 = vsel %vm1789_vm11, 1.0, %v8351_v56  ;;  %v5182_v52 = vsel %vm1788_vm12, 1.0, %v8351_v56  ;;  %v8355_v14 = vpack.c.bf16 %v7076_v45, %v7079_v46  ;;  %v8356_v37 = vpack.c.bf16 %v7088_v2, %v7091_v5 }
 0x39a   : > { %v1869_v6 = vpack.c.bf16 %v5183_v31, %v5182_v52 }
 0x39b   : > { %4005 = vxpose.xlu1.c.b16.cont [5/8] (narrow) %v7293_v60, 16  ;;  %5727 = vmatmul.mubr.msk.bf16.gmra.mxu1 %vm2120_vm5, %v7270_v11  ;;  %v8353_v11 = vpack.c.bf16 %v7064_v17, %v7067_v41  ;;  %v8357_v17 = vpack.c.bf16 %v7100_v36, %v7103_v15  ;;  %v8358_v41 = vld [vmem:[#allocation31_spill] sm:$0xff]  ;;  %v2587_v45 = vpop.permute.xlu1 %2586  ;;  %v2589_v46 = vpop.permute.xlu0 %2588  ;;  %v6093_v36 = vld [vmem:[%s6715_s0 + $0x30] sm:$0xff]  }
 0x39c   : > { %4024 = vxpose.xlu0.c.b16.end [8/8] (narrow) %v1869_v6, 16  ;;  %5730 = vmatprep.mubr.msk.bf16.mxu1 %vm2120_vm5, %v7295_v50  ;;  %v6094_v15 = vld [vmem:[%s6715_s0 + $0x28] sm:$0xff]  }
 0x39f   : > { %4006 = vxpose.xlu1.c.b16.cont [6/8] (narrow) %v7339_v4, 16  ;;  %5697 = vmatmul.mubr.msk.bf16.gmra.mxu0 %vm2120_vm5, %v8352_v51  ;;  %v2591_v2 = vpop.permute.xlu1 %2590  ;;  %v2593_v5 = vpop.permute.xlu0 %2592 }
 0x3a0   : > { %5700 = vmatprep.mubr.msk.bf16.mxu0 %vm2120_vm5, %v8353_v11 }
 0x3a3   : > { %4007 = vxpose.xlu1.c.b16.cont [7/8] (narrow) %v7343_v19, 16  ;;  %5731 = vmatmul.mubr.msk.bf16.gmra.mxu1 %vm2120_vm5, %v7326_v27 }
 0x3a4   : > { %5734 = vmatprep.mubr.msk.bf16.mxu1 %vm2120_vm5, %v7345_v35 }
 0x3a5   : > { %6072 = vset.pattern.permute.xlu0 %v8354_v42 }
 0x3a7   : > { %4008 = vxpose.xlu1.c.b16.end [8/8] (narrow) %v1861_v39, 16  ;;  %5701 = vmatmul.mubr.msk.bf16.gmra.mxu0 %vm2120_vm5, %v8355_v14 }
 0x3a8   : > { %5704 = vmatprep.mubr.msk.bf16.mxu0 %vm2120_vm5, %v8356_v37 }
 0x3ab   : > { %6073 = vset.pattern.permute.xlu1 %v8354_v42  ;;  %5735 = vmatmul.mubr.msk.bf16.gmra.mxu1 %vm2120_vm5, %v1867_v9 }
 0x3ac   : > { %5738 = vmatprep.mubr.msk.bf16.mxu1 %vm2120_vm5, %v1868_v57 }
 0x3af   : > { %5705 = vmatmul.mubr.msk.bf16.gmra.mxu0 %vm2120_vm5, %v8357_v17 }
 0x3b0   : > { %5744 = vmatprep.mubr.msk.bf16.mxu0 %vm2594_vm13, %v7139_v3  ;;  %v6096_v3 = vld [vmem:[%s6715_s0 + $0x18] sm:$0xff]  }
 0x3b3   : > { %5739 = vmatmul.mubr.msk.bf16.gmra.mxu1 %vm2120_vm5, %v1869_v6 }
 0x3b7   : > { %5745 = vmatmul.mubr.msk.bf16.vlgmr.msra.gmra.mxu0 %vm2594_vm13, %v7137_v0  ;;  %v6095_v0 = vld [vmem:[%s6715_s0 + $0x20] sm:$0xff]  }
 0x3b8   : > { %5748 = vmatprep.mubr.msk.bf16.mxu0 %vm2594_vm13, %v7157_v26  ;;  %v6097_v26 = vld [vmem:[%s6715_s0 + $0x10] sm:$0xff]  }
 0x3bf   : > { %5749 = vmatmul.mubr.msk.bf16.gmra.mxu0 %vm2594_vm13, %v8358_v41 }
 0x3c0   : > { %5752 = vmatprep.mubr.msk.bf16.mxu0 %vm2594_vm13, %v7173_v54  ;;  %v6098_v54 = vld [vmem:[%s6715_s0 + $0x8] sm:$0xff]  }
 0x3c7   : > { %5753 = vmatmul.mubr.msk.bf16.gmra.mxu0 %vm2594_vm13, %v7171_v8  ;;  %v6092_v8 = vld [vmem:[%s6715_s0 + $0x38] sm:$0xff]  }
 0x3c8   : > { %5756 = vmatprep.mubr.msk.bf16.mxu0 %vm2594_vm13, %v7206_v47  ;;  %5776 = vmatprep.subr.bf16.mxu1 %v6092_v8 }
 0x3c9   : > { %5777 = vmatpush3.bf16.msra.mxu1 %v6092_v8 }
 0x3ca   : > { %5778 = vmatprep.subr.bf16.mxu1 %v6093_v36 }
 0x3cd   : > { %5779 = vmatpush3.bf16.msra.mxu1 %v6093_v36 }
 0x3ce   : > { %5780 = vmatprep.subr.bf16.mxu1 %v6094_v15 }
 0x3cf   : > { %5757 = vmatmul.mubr.msk.bf16.gmra.mxu0 %vm2594_vm13, %v7204_v22  ;;  %v6099_v22 = vld [vmem:[%s6715_s0] sm:$0xff]   ;;  %s8360_s0 = scalar_lea.vmem %s6593_s6, %s6699_s16 }
 0x3d0   : > { %5760 = vmatprep.mubr.msk.bf16.mxu0 %vm2594_vm13, %v7306_v33 }
 0x3d1   : > { %5781 = vmatpush3.bf16.msra.mxu1 %v6094_v15 }
 0x3d2   : > { %5782 = vmatprep.subr.bf16.mxu1 %v6095_v0 }
 0x3d5   : > { %5783 = vmatpush3.bf16.msra.mxu1 %v6095_v0 }
 0x3d6   : > { %5784 = vmatprep.subr.bf16.mxu1 %v6096_v3 }
 0x3d7   : > { %5761 = vmatmul.mubr.msk.bf16.gmra.mxu0 %vm2594_vm13, %v7304_v12 }
 0x3d8   : > { %5764 = vmatprep.mubr.msk.bf16.mxu0 %vm2594_vm13, %v7390_v34 }
 0x3d9   : > { %5785 = vmatpush3.bf16.msra.mxu1 %v6096_v3 }
 0x3da   : > { %5786 = vmatprep.subr.bf16.mxu1 %v6097_v26 }
 0x3dd   : > { %5787 = vmatpush3.bf16.msra.mxu1 %v6097_v26 }
 0x3de   : > { %5788 = vmatprep.subr.bf16.mxu1 %v6098_v54 }
 0x3df   : > { %5765 = vmatmul.mubr.msk.bf16.gmra.mxu0 %vm2594_vm13, %v7388_v20 }
 0x3e0   : > { %5768 = vmatprep.mubr.msk.bf16.mxu0 %vm2594_vm13, %v2587_v45 }
 0x3e1   : > { %5789 = vmatpush3.bf16.msra.mxu1 %v6098_v54 }
 0x3e2   : > { %5790 = vmatprep.subr.bf16.mxu1 %v6099_v22 }
 0x3e5   : > { %5791 = vmatpush3.bf16.msra.mxu1 %v6099_v22 }
 0x3e7   : > { %5769 = vmatmul.mubr.msk.bf16.gmra.mxu0 %vm2594_vm13, %v2589_v46  ;;  %v7581_v46 = vld [vmem:[%s1114_s2] ss:$0 sm:$0xff] }
 0x3e8   : > { %5772 = vmatprep.mubr.msk.bf16.mxu0 %vm2594_vm13, %v2591_v2 }
 0x3ef   : > { %5773 = vmatmul.mubr.msk.bf16.gmra.mxu0 %vm2594_vm13, %v2593_v5 }
 0x437   : > { %v5678_v47 = vpop.f32.mrf.mxu0 }
 0x439   : > { %v2203_v50 = vpop.f32.mrf.mxu0 }
 0x43b   : > { %v5712_v60 = vpop.f32.mrf.mxu1  ;;  %v5679_v33 = vpop.f32.mrf.mxu0 }
 0x43c   : > { %v2427_v41 = vadd.f32 %v5712_v60, %v5678_v47 }
 0x43d   : > { %v2418_v12 = vpop.f32.mrf.mxu1  ;;  %v2206_v4 = vpop.f32.mrf.mxu0 }
 0x43e   : > { %v2419_v2 = vadd.f32 %v2418_v12, %v2203_v50 }
 0x43f   : > { %v5713_v27 = vpop.f32.mrf.mxu1  ;;  %v5682_v18 = vpop.f32.mrf.mxu0 }
 0x440   : > { %v2430_v15 = vadd.f32 %v5713_v27, %v5679_v33 }
 0x441   : > { %v2421_v13 = vpop.f32.mrf.mxu1  ;;  %v2219_v35 = vpop.f32.mrf.mxu0 }
 0x442   : > { %v2422_v54 = vadd.f32 %v2421_v13, %v2206_v4 }
 0x443   : > { %v5716_v19 = vpop.f32.mrf.mxu1  ;;  %v7502_v32 = vpop.f32.mrf.mxu0 }
 0x444   : > { %v2443_v50 = vadd.f32 %v5716_v19, %v5682_v18 }
 0x445   : > { %v2434_v55 = vpop.f32.mrf.mxu1  ;;  %v7504_v30 = vpop.f32.mrf.mxu0 }
 0x447   : > { %v7506_v7 = vpop.f32.mrf.mxu0  ;;  %v7508_v29 = vpop.f32.mrf.mxu1 }
 0x448   : > { %v2446_v18 = vadd.f32 %v7508_v29, %v7502_v32 }
 0x449   : > { %v7510_v24 = vpop.f32.mrf.mxu0  ;;  %v7514_v9 = vpop.f32.mrf.mxu1 }
 0x44b   : > { %v7512_v28 = vpop.f32.mrf.mxu0  ;;  %v7520_v20 = vpop.f32.mrf.mxu1 }
 0x44c   : > { %v2459_v29 = vadd.f32 %v7520_v20, %v7506_v7 }
 0x44d   : > { %v7516_v16 = vpop.f32.mrf.mxu0  ;;  %v7526_v43 = vpop.f32.mrf.mxu1 }
 0x44f   : > { %v7518_v49 = vpop.f32.mrf.mxu0  ;;  %v7532_v44 = vpop.f32.mrf.mxu1 }
 0x451   : > { %v7522_v34 = vpop.f32.mrf.mxu0  ;;  %v7538_v48 = vpop.f32.mrf.mxu1 }
 0x453   : > { %v7524_v23 = vpop.f32.mrf.mxu0  ;;  %v7544_v58 = vpop.f32.mrf.mxu1 }
 0x455   : > { %v7528_v39 = vpop.f32.mrf.mxu0  ;;  %v7550_v38 = vpop.f32.mrf.mxu1 }
 0x457   : > { %v7530_v40 = vpop.f32.mrf.mxu0  ;;  %v7556_v31 = vpop.f32.mrf.mxu1 }
 0x459   : > { %v7534_v63 = vpop.f32.mrf.mxu0  ;;  %v7562_v6 = vpop.f32.mrf.mxu1 }
 0x45b   : > { %v7536_v25 = vpop.f32.mrf.mxu0  ;;  %v7568_v11 = vpop.f32.mrf.mxu1 }
 0x45d   : > { %v7540_v53 = vpop.f32.mrf.mxu0  ;;  %v7574_v37 = vpop.f32.mrf.mxu1 }
 0x45f   : > { %v7542_v57 = vpop.f32.mrf.mxu0  ;;  %v7583_v5 = vpop.f32.mrf.mxu1 }
 0x461   : > { %v7546_v21 = vpop.f32.mrf.mxu0  ;;  %v7588_v22 = vpop.f32.mrf.mxu1 }
 0x463   : > { %v7548_v61 = vpop.f32.mrf.mxu0  ;;  %v7598_v4 = vpop.f32.mrf.mxu1 }
 0x465   : > { %v7552_v1 = vpop.f32.mrf.mxu0 }
 0x467   : > { %v7554_v59 = vpop.f32.mrf.mxu0 }
 0x469   : > { %v7558_v52 = vpop.f32.mrf.mxu0 }
 0x46b   : > { %v7560_v62 = vpop.f32.mrf.mxu0 }
 0x46d   : > { %v7564_v10 = vpop.f32.mrf.mxu0 }
 0x46f   : > { %v7566_v51 = vpop.f32.mrf.mxu0 }
 0x471   : > { %v7570_v42 = vpop.f32.mrf.mxu0 }
 0x473   : > { %v7572_v14 = vpop.f32.mrf.mxu0 }
 0x475   : > { %v7576_v17 = vpop.f32.mrf.mxu0 }
 0x477   : > { %v5746_v45 = vpop.f32.mrf.mxu0 }
 0x478   : > { %v2810_v8 = vadd.f32 %v5746_v45, %v2427_v41  ;;  %v2435_v45 = vadd.f32 %v2434_v55, %v2219_v35  ;;  %v2438_v55 = vadd.f32 %v7514_v9, %v7504_v30  ;;  %v2451_v9 = vadd.f32 %v7526_v43, %v7510_v24 }
 0x479   : > { %v2681_v36 = vpop.f32.mrf.mxu0  ;;  %v2462_v24 = vadd.f32 %v7532_v44, %v7512_v28  ;;  %v2454_v43 = vadd.f32 %v7538_v48, %v7516_v16 }
 0x47a   : > { %v7586_v0 = vadd.f32 %v7581_v46, %v2810_v8  ;;  %v2808_v3 = vadd.f32 %v2681_v36, %v2419_v2 }
 0x47b   : > { %v5747_v26 = vpop.f32.mrf.mxu0 }
 0x47c   : > { %v5269_v47 = vmul.f32 -1.442695, %v7586_v0  ;;  %v7592_v60 = vadd.f32 %v7581_v46, %v2808_v3  ;;  %v2811_v56 = vadd.f32 %v5747_v26, %v2430_v15  ;;  %v7612_v26 = vpop.f32.mrf.mxu1 }
 0x47d   : > { %v2684_v12 = vpop.f32.mrf.mxu0 }
 0x47e   : > { %6132 = vpow2.f32 %v5269_v47  ;;  %v5267_v41 = vmul.f32 -1.442695, %v7592_v60  ;;  %v7596_v33 = vadd.f32 %v7581_v46, %v2811_v56  ;;  %v2809_v27 = vadd.f32 %v2684_v12, %v2422_v54 }
 0x47f   : > { %v5750_v2 = vpop.f32.mrf.mxu0 }
 0x480   : > { %6134 = vpow2.f32 %v5267_v41  ;;  %v5270_v13 = vmul.f32 -1.442695, %v7596_v33  ;;  %v7602_v8 = vadd.f32 %v7581_v46, %v2809_v27  ;;  %v2814_v36 = vadd.f32 %v5750_v2, %v2443_v50 }
 0x481   : > { %v2697_v19 = vpop.f32.mrf.mxu0 }
 0x482   : > { %6136 = vpow2.f32 %v5270_v13  ;;  %v5268_v56 = vmul.f32 -1.442695, %v7602_v8  ;;  %v7608_v15 = vadd.f32 %v7581_v46, %v2814_v36  ;;  %v2812_v35 = vadd.f32 %v2697_v19, %v2435_v45  ;;  %v7626_v45 = vpop.f32.mrf.mxu1 }
 0x483   : > { %v5751_v3 = vpop.f32.mrf.mxu0 }
 0x484   : > { %6138 = vpow2.f32 %v5268_v56  ;;  %v5273_v54 = vmul.f32 -1.442695, %v7608_v15  ;;  %v7616_v47 = vadd.f32 %v7581_v46, %v2812_v35  ;;  %v2815_v32 = vadd.f32 %v5751_v3, %v2446_v18 }
 0x485   : > { %v2700_v50 = vpop.f32.mrf.mxu0 }
 0x486   : > { %6140 = vpow2.f32 %v5273_v54  ;;  %v5271_v12 = vmul.f32 -1.442695, %v7616_v47  ;;  %v7622_v41 = vadd.f32 %v7581_v46, %v2815_v32  ;;  %v2813_v30 = vadd.f32 %v2700_v50, %v2438_v55  ;;  %v7640_v55 = vpop.f32.mrf.mxu1 }
 0x487   : > { %v5754_v27 = vpop.f32.mrf.mxu0  ;;  %v2475_v50 = vadd.f32 %v7544_v58, %v7518_v49 }
 0x488   : > { %6142 = vpow2.f32 %v5271_v12  ;;  %v5274_v2 = vmul.f32 -1.442695, %v7622_v41  ;;  %v7630_v13 = vadd.f32 %v7581_v46, %v2813_v30  ;;  %v2818_v7 = vadd.f32 %v5754_v27, %v2459_v29 }
 0x489   : > { %v2713_v20 = vpop.f32.mrf.mxu0 }
 0x48a   : > { %6144 = vpow2.f32 %v5274_v2  ;;  %v5272_v36 = vmul.f32 -1.442695, %v7630_v13  ;;  %v7634_v18 = vadd.f32 %v7581_v46, %v2818_v7  ;;  %v2816_v19 = vadd.f32 %v2713_v20, %v2451_v9  ;;  %v7652_v2 = vpop.f32.mrf.mxu1 }
 0x48b   : > { %v6133_v56 = vpop.eup %6132  ;;  %v5755_v35 = vpop.f32.mrf.mxu0 }
 0x48c   : > { %v2977_v3 = vadd.f32 1.0, %v6133_v56  ;;  %6146 = vpow2.f32 %v5272_v36  ;;  %v5277_v54 = vmul.f32 -1.442695, %v7634_v18  ;;  %v7644_v32 = vadd.f32 %v7581_v46, %v2816_v19 }
 0x48d   : > { %v6135_v29 = vpop.eup %6134  ;;  %v2819_v12 = vadd.f32 %v5755_v35, %v2462_v24  ;;  %v2716_v30 = vpop.f32.mrf.mxu0  ;;  %v2467_v36 = vadd.f32 %v7550_v38, %v7522_v34  ;;  %v2478_v19 = vadd.f32 %v7556_v31, %v7524_v23 }
 0x48e   : > { %6148 = vrcp.f32 %v2977_v3  ;;  %v2975_v28 = vadd.f32 1.0, %v6135_v29  ;;  %v5275_v16 = vmul.f32 -1.442695, %v7644_v32  ;;  %v2817_v44 = vadd.f32 %v2716_v30, %v2454_v43 }
 0x48f   : > { %v6137_v48 = vpop.eup %6136  ;;  %6150 = vpow2.f32 %v5277_v54  ;;  %v7650_v9 = vadd.f32 %v7581_v46, %v2819_v12  ;;  %v5758_v27 = vpop.f32.mrf.mxu0  ;;  %v2470_v29 = vadd.f32 %v7562_v6, %v7528_v39 }
 0x490   : > { %6152 = vrcp.f32 %v2975_v28  ;;  %v2978_v7 = vadd.f32 1.0, %v6137_v48  ;;  %v7655_v20 = vadd.f32 %v7581_v46, %v2817_v44  ;;  %v2822_v49 = vadd.f32 %v5758_v27, %v2475_v50  ;;  %v2514_v50 = vpop.f32.mrf.mxu1 }
 0x491   : > { %v6139_v58 = vpop.eup %6138  ;;  %6154 = vpow2.f32 %v5275_v16  ;;  %v5278_v56 = vmul.f32 -1.442695, %v7650_v9  ;;  %v2729_v24 = vpop.f32.mrf.mxu0  ;;  %v2491_v28 = vadd.f32 %v7568_v11, %v7530_v40 }
 0x492   : > { %6156 = vrcp.f32 %v2978_v7  ;;  %v2976_v43 = vadd.f32 1.0, %v6139_v58  ;;  %v5276_v35 = vmul.f32 -1.442695, %v7655_v20  ;;  %v7664_v3 = vadd.f32 %v7581_v46, %v2822_v49  ;;  %v5737_v58 = vpop.f32.mrf.mxu1 }
 0x493   : > { %v6141_v54 = vpop.eup %6140  ;;  %6158 = vpow2.f32 %v5278_v56  ;;  %v2820_v34 = vadd.f32 %v2729_v24, %v2467_v36  ;;  %v5759_v38 = vpop.f32.mrf.mxu0  ;;  %v2483_v7 = vadd.f32 %v7574_v37, %v7534_v63  ;;  %v2494_v49 = vadd.f32 %v7583_v5, %v7536_v25 }
 0x494   : > { %6160 = vrcp.f32 %v2976_v43  ;;  %v2981_v23 = vadd.f32 1.0, %v6141_v54  ;;  %v5281_v31 = vmul.f32 -1.442695, %v7664_v3  ;;  %v2823_v12 = vadd.f32 %v5759_v38, %v2478_v19 }
 0x495   : > { %v6143_v30 = vpop.eup %6142  ;;  %6162 = vpow2.f32 %v5276_v35  ;;  %v7672_v16 = vadd.f32 %v7581_v46, %v2820_v34  ;;  %v2732_v44 = vpop.f32.mrf.mxu0  ;;  %v2486_v43 = vadd.f32 %v7588_v22, %v7540_v53  ;;  %v2507_v63 = vadd.f32 %v7598_v4, %v7542_v57 }
 0x496   : > { %6164 = vrcp.f32 %v2981_v23  ;;  %v2979_v39 = vadd.f32 1.0, %v6143_v30  ;;  %v7675_v6 = vadd.f32 %v7581_v46, %v2823_v12  ;;  %v2821_v48 = vadd.f32 %v2732_v44, %v2470_v29  ;;  %v2517_v23 = vpop.f32.mrf.mxu1 }
 0x497   : > { %v6145_v27 = vpop.eup %6144  ;;  %6166 = vpow2.f32 %v5281_v31  ;;  %v5279_v40 = vmul.f32 -1.442695, %v7672_v16  ;;  %v5762_v11 = vpop.f32.mrf.mxu0  ;;  %v2499_v34 = vadd.f32 %v7612_v26, %v7546_v21  ;;  %v2510_v38 = vadd.f32 %v7626_v45, %v7548_v61 }
 0x498   : > { %6168 = vrcp.f32 %v2979_v39  ;;  %v2982_v36 = vadd.f32 1.0, %v6145_v27  ;;  %v5282_v19 = vmul.f32 -1.442695, %v7675_v6  ;;  %v7684_v56 = vadd.f32 %v7581_v46, %v2821_v48 }
 0x499   : > { %v6147_v24 = vpop.eup %6146  ;;  %6170 = vpow2.f32 %v5279_v40  ;;  %v2826_v25 = vadd.f32 %v5762_v11, %v2491_v28  ;;  %v2745_v37 = vpop.f32.mrf.mxu0  ;;  %v2502_v4 = vadd.f32 %v7640_v55, %v7552_v1  ;;  %v7705_v21 = vadd.f32 %v7652_v2, %v7554_v59 }
 0x49a   : > { %6172 = vrcp.f32 %v2982_v36  ;;  %v2980_v5 = vadd.f32 1.0, %v6147_v24  ;;  %v5280_v35 = vmul.f32 -1.442695, %v7684_v56  ;;  %v2824_v54 = vadd.f32 %v2745_v37, %v2483_v7  ;;  %v5740_v40 = vpop.f32.mrf.mxu1 }
 0x49b   : > { %v6149_v29 = vpop.eup %6148  ;;  %6174 = vpow2.f32 %v5282_v19  ;;  %v7696_v53 = vadd.f32 %v7581_v46, %v2826_v25  ;;  %v5763_v57 = vpop.f32.mrf.mxu0  ;;  %v7709_v44 = vadd.f32 %v2514_v50, %v7558_v52  ;;  %v7716_v27 = vadd.f32 %v5737_v58, %v7560_v62 }
 0x49c   : > { %v6151_v22 = vpop.eup %6150  ;;  %6176 = vrcp.f32 %v2980_v5  ;;  %v7701_v31 = vadd.f32 %v7581_v46, %v2824_v54  ;;  %v2827_v12 = vadd.f32 %v5763_v57, %v2494_v49  ;;  %v3073_v59 = vmul.f32 %v6149_v29, %v7586_v0 }
 0x49d   : > { %v6153_v30 = vpop.eup %6152  ;;  %v2985_v61 = vadd.f32 1.0, %v6151_v22  ;;  %6178 = vpow2.f32 %v5280_v35  ;;  %v5285_v26 = vmul.f32 -1.442695, %v7696_v53  ;;  %v2748_v45 = vpop.f32.mrf.mxu0  ;;  %v7731_v57 = vadd.f32 %v2517_v23, %v7564_v10 }
 0x49e   : > { %v6155_v28 = vpop.eup %6154  ;;  %v5283_v1 = vmul.f32 -1.442695, %v7701_v31  ;;  %v7713_v55 = vadd.f32 %v7581_v46, %v2827_v12  ;;  %v2825_v39 = vadd.f32 %v2748_v45, %v2486_v43  ;;  %v3071_v19 = vmul.f32 %v6153_v30, %v7592_v60 }
 0x49f   : > { %v6157_v48 = vpop.eup %6156  ;;  %6180 = vrcp.f32 %v2985_v61  ;;  %v2983_v2 = vadd.f32 1.0, %v6155_v28  ;;  %v5766_v7 = vpop.f32.mrf.mxu0 }
 0x4a0   : > { %v6159_v49 = vpop.eup %6158  ;;  %v3074_v52 = vmul.f32 %v6157_v48, %v7596_v33  ;;  %6182 = vpow2.f32 %v5285_v26  ;;  %v5286_v50 = vmul.f32 -1.442695, %v7713_v55  ;;  %v7722_v11 = vadd.f32 %v7581_v46, %v2825_v39 }
 0x4a1   : > { %v6161_v36 = vpop.eup %6160  ;;  %6184 = vrcp.f32 %v2983_v2  ;;  %v2986_v62 = vadd.f32 1.0, %v6159_v49  ;;  %v2830_v58 = vadd.f32 %v5766_v7, %v2507_v63  ;;  %v2761_v0 = vpop.f32.mrf.mxu0 }
 0x4a2   : > { %v6163_v24 = vpop.eup %6162  ;;  %v3104_v43 = vpack.c.bf16 %v3074_v52, %v3073_v59  ;;  %v3072_v25 = vmul.f32 %v6161_v36, %v7602_v8  ;;  %6186 = vpow2.f32 %v5283_v1  ;;  %v5284_v33 = vmul.f32 -1.442695, %v7722_v11  ;;  %v2530_v63 = vpop.f32.mrf.mxu1 }
 0x4a3   : > { %v6165_v37 = vpop.eup %6164  ;;  %6188 = vrcp.f32 %v2986_v62  ;;  %v2984_v5 = vadd.f32 1.0, %v6163_v24  ;;  %v7728_v35 = vadd.f32 %v7581_v46, %v2830_v58  ;;  %v2828_v54 = vadd.f32 %v2761_v0, %v2499_v34  ;;  %v5767_v29 = vpop.f32.mrf.mxu0 }
 0x4a4   : > { %v6167_v60 = vpop.eup %6166  ;;  %6190 = vpow2.f32 %v5286_v50  ;;  %v2831_v22 = vadd.f32 %v5767_v29, %v2510_v38  ;;  %v3103_v12 = vpack.c.bf16 %v3072_v25, %v3071_v19  ;;  %v7738_v34 = vadd.f32 %v5740_v40, %v7566_v51  ;;  %v5741_v7 = vpop.f32.mrf.mxu1 }
 0x4a5   : > { %v6169_v8 = vpop.eup %6168  ;;  %6192 = vrcp.f32 %v2984_v5  ;;  %v2989_v30 = vadd.f32 1.0, %v6167_v60  ;;  %v5289_v61 = vmul.f32 -1.442695, %v7728_v35  ;;  %v7735_v26 = vadd.f32 %v7581_v46, %v2828_v54  ;;  %v2764_v45 = vpop.f32.mrf.mxu0 }
 0x4a6   : > { %v6171_v28 = vpop.eup %6170  ;;  %6194 = vpow2.f32 %v5284_v33  ;;  %v7741_v10 = vadd.f32 %v7581_v46, %v2831_v22  ;;  %v2829_v23 = vadd.f32 %v2764_v45, %v2502_v4  ;;  %5792 = vmatprep.mubr.bf16.mxu1 %v3103_v12  ;;  %v3077_v1 = vmul.f32 %v6165_v37, %v7608_v15  ;;  %v2533_v33 = vpop.f32.mrf.mxu1 }
 0x4a7   : > { %v6173_v38 = vpop.eup %6172  ;;  %6196 = vrcp.f32 %v2989_v30  ;;  %v2987_v39 = vadd.f32 1.0, %v6171_v28  ;;  %v5287_v48 = vmul.f32 -1.442695, %v7735_v26  ;;  %v5770_v59 = vpop.f32.mrf.mxu0  ;;  %5793 = vmatmul.mubr.bf16.vlgmr.msra.gmra.mxu1 %v3104_v43  ;;  %v3075_v52 = vmul.f32 %v6169_v8, %v7616_v47 }
 0x4a8   : > { %v6175_v2 = vpop.eup %6174  ;;  %v3078_v51 = vmul.f32 %v6173_v38, %v7622_v41  ;;  %6198 = vpow2.f32 %v5289_v61  ;;  %v5290_v49 = vmul.f32 -1.442695, %v7741_v10  ;;  %v7748_v40 = vadd.f32 %v7581_v46, %v2829_v23 }
 0x4a9   : > { %v6177_v4 = vpop.eup %6176  ;;  %6200 = vrcp.f32 %v2987_v39  ;;  %v2990_v15 = vadd.f32 1.0, %v6175_v2  ;;  %v2834_v50 = vadd.f32 %v5770_v59, %v7705_v21  ;;  %v2777_v36 = vpop.f32.mrf.mxu0  ;;  %v2531_v54 = vadd.f32 %v2530_v63, %v7570_v42 }
 0x4aa   : > { %v6179_v19 = vpop.eup %6178  ;;  %v3076_v62 = vmul.f32 %v6177_v4, %v7630_v13  ;;  %6202 = vpow2.f32 %v5287_v48  ;;  %v5288_v41 = vmul.f32 -1.442695, %v7748_v40  ;;  %v2832_v58 = vadd.f32 %v2777_v36, %v7709_v44 }
 0x4ab   : > { %6204 = vrcp.f32 %v2990_v15  ;;  %v2988_v0 = vadd.f32 1.0, %v6179_v19  ;;  %v7756_v24 = vadd.f32 %v7581_v46, %v2834_v50  ;;  %v5771_v43 = vpop.f32.mrf.mxu0  ;;  %v3106_v47 = vpack.c.bf16 %v3078_v51, %v3077_v1 }
 0x4ac   : > { %v6181_v25 = vpop.eup %6180  ;;  %6206 = vpow2.f32 %v5290_v49  ;;  %v7759_v21 = vadd.f32 %v7581_v46, %v2832_v58  ;;  %v2835_v13 = vadd.f32 %v5771_v43, %v7716_v27  ;;  %v3105_v37 = vpack.c.bf16 %v3076_v62, %v3075_v52 }
 0x4ad   : > { %v6183_v5 = vpop.eup %6182  ;;  %v2542_v44 = vadd.f32 %v5741_v7, %v7572_v14  ;;  %6208 = vrcp.f32 %v2988_v0  ;;  %v5293_v29 = vmul.f32 -1.442695, %v7756_v24  ;;  %v2780_v60 = vpop.f32.mrf.mxu0  ;;  %v2534_v61 = vadd.f32 %v2533_v33, %v7576_v17 }
 0x4ae   : > { %v6185_v22 = vpop.eup %6184  ;;  %v2993_v12 = vadd.f32 1.0, %v6183_v5  ;;  %6210 = vpow2.f32 %v5288_v41  ;;  %v5291_v8 = vmul.f32 -1.442695, %v7759_v21  ;;  %v7767_v30 = vadd.f32 %v7581_v46, %v2835_v13  ;;  %5796 = vmatprep.mubr.bf16.mxu1 %v3105_v37 }
 0x4af   : > { %v6187_v27 = vpop.eup %6186  ;;  %v3081_v42 = vmul.f32 %v6181_v25, %v7634_v18  ;;  %6212 = vpow2.f32 %v5293_v29  ;;  %v2833_v14 = vadd.f32 %v2780_v60, %v7731_v57  ;;  %v5774_v63 = vpop.f32.mrf.mxu0  ;;  %5797 = vmatmul.mubr.bf16.gmra.mxu1 %v3106_v47  ;;  %v3079_v39 = vmul.f32 %v6185_v22, %v7644_v32 }
 0x4b0   : > { %v6189_v45 = vpop.eup %6188  ;;  %6214 = vrcp.f32 %v2993_v12  ;;  %v2991_v28 = vadd.f32 1.0, %v6187_v27  ;;  %v5294_v23 = vmul.f32 -1.442695, %v7767_v30  ;;  %v2838_v38 = vadd.f32 %v5774_v63, %v7738_v34 }
 0x4b1   : > { %v6191_v1 = vpop.eup %6190  ;;  %v3082_v48 = vmul.f32 %v6189_v45, %v7650_v9  ;;  %6216 = vpow2.f32 %v5291_v8  ;;  %v7777_v17 = vadd.f32 %v7581_v46, %v2833_v14  ;;  %v2793_v18 = vpop.f32.mrf.mxu0 }
 0x4b2   : > { %v6193_v57 = vpop.eup %6192  ;;  %6218 = vrcp.f32 %v2991_v28  ;;  %v2994_v59 = vadd.f32 1.0, %v6191_v1  ;;  %v7780_v2 = vadd.f32 %v7581_v46, %v2838_v38  ;;  %v2836_v7 = vadd.f32 %v2793_v18, %v2531_v54 }
 0x4b3   : > { %v6195_v51 = vpop.eup %6194  ;;  %v3080_v34 = vmul.f32 %v6193_v57, %v7655_v20  ;;  %6220 = vpow2.f32 %v5294_v23  ;;  %v5292_v32 = vmul.f32 -1.442695, %v7777_v17  ;;  %v5775_v49 = vpop.f32.mrf.mxu0  ;;  %v3108_v9 = vpack.c.bf16 %v3082_v48, %v3081_v42 }
 0x4b4   : > { %v6197_v4 = vpop.eup %6196  ;;  %6222 = vrcp.f32 %v2994_v59  ;;  %v2992_v52 = vadd.f32 1.0, %v6195_v51  ;;  %v5297_v15 = vmul.f32 -1.442695, %v7780_v2  ;;  %v7786_v50 = vadd.f32 %v7581_v46, %v2836_v7 }
 0x4b5   : > { %v6199_v36 = vpop.eup %6198  ;;  %6224 = vpow2.f32 %v5292_v32  ;;  %v2839_v19 = vadd.f32 %v5775_v49, %v2542_v44  ;;  %v2796_v62 = vpop.f32.mrf.mxu0  ;;  %v3107_v41 = vpack.c.bf16 %v3080_v34, %v3079_v39  ;;  %v3085_v54 = vmul.f32 %v6197_v4, %v7664_v3 }
 0x4b6   : > { %v6201_v58 = vpop.eup %6200  ;;  %6226 = vrcp.f32 %v2992_v52  ;;  %v2997_v20 = vadd.f32 1.0, %v6199_v36  ;;  %v5295_v0 = vmul.f32 -1.442695, %v7786_v50  ;;  %v2837_v43 = vadd.f32 %v2796_v62, %v2534_v61 }
 0x4b7   : > { %v6203_v47 = vpop.eup %6202  ;;  %6228 = vpow2.f32 %v5297_v15  ;;  %v7790_v25 = vadd.f32 %v7581_v46, %v2839_v19  ;;  %5800 = vmatprep.mubr.bf16.mxu1 %v3107_v41  ;;  %v3083_v27 = vmul.f32 %v6201_v58, %v7672_v16 }
 0x4b8   : > { %v6205_v33 = vpop.eup %6204  ;;  %6230 = vrcp.f32 %v2997_v20  ;;  %v2995_v13 = vadd.f32 1.0, %v6203_v47  ;;  %v7793_v37 = vadd.f32 %v7581_v46, %v2837_v43  ;;  %5801 = vmatmul.mubr.bf16.gmra.mxu1 %v3108_v9 }
 0x4b9   : > { %v6207_v5 = vpop.eup %6206  ;;  %v3086_v44 = vmul.f32 %v6205_v33, %v7675_v6  ;;  %6232 = vpow2.f32 %v5295_v0  ;;  %v5298_v29 = vmul.f32 -1.442695, %v7790_v25 }
 0x4ba   : > { %v6209_v60 = vpop.eup %6208  ;;  %6234 = vrcp.f32 %v2995_v13  ;;  %v2998_v22 = vadd.f32 1.0, %v6207_v5  ;;  %v5296_v12 = vmul.f32 -1.442695, %v7793_v37 }
 0x4bb   : > { %v6211_v8 = vpop.eup %6210  ;;  %v3084_v46 = vmul.f32 %v6209_v60, %v7684_v56  ;;  %6236 = vpow2.f32 %v5298_v29  ;;  %v3110_v61 = vpack.c.bf16 %v3086_v44, %v3085_v54 }
 0x4bc   : > { %v6213_v42 = vpop.eup %6212  ;;  %6238 = vrcp.f32 %v2998_v22  ;;  %v2996_v3 = vadd.f32 1.0, %v6211_v8 }
 0x4bd   : > { %v6215_v14 = vpop.eup %6214  ;;  %v3001_v6 = vadd.f32 1.0, %v6213_v42  ;;  %6240 = vpow2.f32 %v5296_v12  ;;  %v3109_v63 = vpack.c.bf16 %v3084_v46, %v3083_v27  ;;  %v6100_v46 = vld [vmem:[%s6720_s10 + $0x38] sm:$0xff]   ;;  %v6106_v42 = vld [vmem:[%s6720_s10 + $0x8] sm:$0xff]  }
 0x4be   : > { %v6217_v45 = vpop.eup %6216  ;;  %6242 = vrcp.f32 %v2996_v3  ;;  %v3089_v39 = vmul.f32 %v6215_v14, %v7696_v53  ;;  %5824 = vmatprep.subr.bf16.mxu0 %v6100_v46  ;;  %v6107_v3 = vld [vmem:[%s6720_s10] sm:$0xff]   ;;  %v8359_v14 = vmov 0.0  }
 0x4bf   : > { %v6219_v28 = vpop.eup %6218  ;;  %v2999_v23 = vadd.f32 1.0, %v6217_v45  ;;  %5804 = vmatprep.mubr.bf16.mxu1 %v3109_v63  ;;  %6244 = vrcp.f32 %v3001_v6  ;;  %5825 = vmatpush3.bf16.msra.mxu0 %v6100_v46  ;;  %v7829_v6 = vld [vmem:[%s8360_s0] ss:$0 sm:$0xff] }
 0x4c0   : > { %v6221_v38 = vpop.eup %6220  ;;  %5805 = vmatmul.mubr.bf16.gmra.mxu1 %v3110_v61  ;;  %v3087_v7 = vmul.f32 %v6219_v28, %v7701_v31  ;;  %v6105_v61 = vld [vmem:[%s6720_s10 + $0x10] sm:$0xff]  }
 0x4c1   : > { %v6223_v1 = vpop.eup %6222  ;;  %v3002_v16 = vadd.f32 1.0, %v6221_v38  ;;  %6246 = vrcp.f32 %v2999_v23 }
 0x4c2   : > { %v6225_v56 = vpop.eup %6224  ;;  %v3090_v48 = vmul.f32 %v6223_v1, %v7713_v55 }
 0x4c3   : > { %v6227_v18 = vpop.eup %6226  ;;  %6248 = vrcp.f32 %v3002_v16  ;;  %v3000_v57 = vadd.f32 1.0, %v6225_v56 }
 0x4c4   : > { %v6229_v59 = vpop.eup %6228  ;;  %v3088_v51 = vmul.f32 %v6227_v18, %v7722_v11  ;;  %v3112_v34 = vpack.c.bf16 %v3090_v48, %v3089_v39 }
 0x4c5   : > { %v6231_v32 = vpop.eup %6230  ;;  %6250 = vrcp.f32 %v3000_v57  ;;  %v3005_v49 = vadd.f32 1.0, %v6229_v59 }
 0x4c6   : > { %v6233_v9 = vpop.eup %6232  ;;  %v3111_v4 = vpack.c.bf16 %v3088_v51, %v3087_v7  ;;  %v3093_v62 = vmul.f32 %v6231_v32, %v7728_v35 }
 0x4c7   : > { %v6235_v52 = vpop.eup %6234  ;;  %v3003_v15 = vadd.f32 1.0, %v6233_v9  ;;  %6252 = vrcp.f32 %v3005_v49 }
 0x4c8   : > { %v6237_v53 = vpop.eup %6236  ;;  %5808 = vmatprep.mubr.bf16.mxu1 %v3111_v4  ;;  %v3091_v58 = vmul.f32 %v6235_v52, %v7735_v26 }
 0x4c9   : > { %v6239_v55 = vpop.eup %6238  ;;  %v3006_v36 = vadd.f32 1.0, %v6237_v53  ;;  %5809 = vmatmul.mubr.bf16.gmra.mxu1 %v3112_v34  ;;  %6254 = vrcp.f32 %v3003_v15 }
 0x4ca   : > { %v6241_v19 = vpop.eup %6240  ;;  %v3094_v31 = vmul.f32 %v6239_v55, %v7741_v10 }
 0x4cb   : > { %v6243_v11 = vpop.eup %6242  ;;  %6256 = vrcp.f32 %v3006_v36  ;;  %v3004_v41 = vadd.f32 1.0, %v6241_v19 }
 0x4cc   : > { %v3092_v20 = vmul.f32 %v6243_v11, %v7748_v40  ;;  %v3114_v0 = vpack.c.bf16 %v3094_v31, %v3093_v62  ;;  %v6245_v43 = vpop.eup %6244 }
 0x4cd   : > { %6258 = vrcp.f32 %v3004_v41  ;;  %v3097_v5 = vmul.f32 %v6245_v43, %v7756_v24 }
 0x4ce   : > { %v3113_v47 = vpack.c.bf16 %v3092_v20, %v3091_v58  ;;  %v6247_v33 = vpop.eup %6246 }
 0x4cf   : > { %v3095_v54 = vmul.f32 %v6247_v33, %v7759_v21 }
 0x4d0   : > { %v6249_v13 = vpop.eup %6248  ;;  %5812 = vmatprep.mubr.bf16.mxu1 %v3113_v47 }
 0x4d1   : > { %v3098_v35 = vmul.f32 %v6249_v13, %v7767_v30  ;;  %5813 = vmatmul.mubr.bf16.gmra.mxu1 %v3114_v0 }
 0x4d2   : > { %v6251_v10 = vpop.eup %6250 }
 0x4d3   : > { %v3096_v44 = vmul.f32 %v6251_v10, %v7777_v17  ;;  %v3116_v26 = vpack.c.bf16 %v3098_v35, %v3097_v5 }
 0x4d4   : > { %v6253_v29 = vpop.eup %6252 }
 0x4d5   : > { %v3115_v40 = vpack.c.bf16 %v3096_v44, %v3095_v54  ;;  %v3101_v12 = vmul.f32 %v6253_v29, %v7780_v2  ;;  %v6101_v2 = vld [vmem:[%s6720_s10 + $0x30] sm:$0xff]  }
 0x4d6   : > { %v6255_v60 = vpop.eup %6254  ;;  %5826 = vmatprep.subr.bf16.mxu0 %v6101_v2 }
 0x4d7   : > { %5816 = vmatprep.mubr.bf16.mxu1 %v3115_v40  ;;  %v3099_v21 = vmul.f32 %v6255_v60, %v7786_v50  ;;  %5827 = vmatpush3.bf16.msra.mxu0 %v6101_v2  ;;  %v6103_v50 = vld [vmem:[%s6720_s10 + $0x20] sm:$0xff]  }
 0x4d8   : > { %v6257_v22 = vpop.eup %6256 }
 0x4d9   : > { %v3102_v24 = vmul.f32 %v6257_v22, %v7790_v25  ;;  %5817 = vmatmul.mubr.bf16.gmra.mxu1 %v3116_v26  ;;  %v6102_v25 = vld [vmem:[%s6720_s10 + $0x28] sm:$0xff]  }
 0x4da   : > { %v6259_v30 = vpop.eup %6258  ;;  %5828 = vmatprep.subr.bf16.mxu0 %v6102_v25 }
 0x4db   : > { %v3100_v17 = vmul.f32 %v6259_v30, %v7793_v37  ;;  %v3118_v8 = vpack.c.bf16 %v3102_v24, %v3101_v12  ;;  %5829 = vmatpush3.bf16.msra.mxu0 %v6102_v25  ;;  %v6104_v37 = vld [vmem:[%s6720_s10 + $0x18] sm:$0xff]   ;;  %s8361_s10 = sld [smem:[#allocation11_spill]] }
 0x4dc   : > { %5830 = vmatprep.subr.bf16.mxu0 %v6103_v50 }
 0x4dd   : > { %v3117_v27 = vpack.c.bf16 %v3100_v17, %v3099_v21 }
 0x4df   : > { %5820 = vmatprep.mubr.bf16.mxu1 %v3117_v27  ;;  %5831 = vmatpush3.bf16.msra.mxu0 %v6103_v50 }
 0x4e0   : > { %5832 = vmatprep.subr.bf16.mxu0 %v6104_v37 }
 0x4e1   : > { %5821 = vmatmul.mubr.bf16.gmra.mxu1 %v3118_v8  ;;  %s8362_s1 = smov %s8361_s10 }
 0x4e3   : > { %5833 = vmatpush3.bf16.msra.mxu0 %v6104_v37 }
 0x4e4   : > { %5834 = vmatprep.subr.bf16.mxu0 %v6105_v61 }
 0x4e7   : > { %5835 = vmatpush3.bf16.msra.mxu0 %v6105_v61 }
 0x4e8   : > { %5836 = vmatprep.subr.bf16.mxu0 %v6106_v42 }
 0x4eb   : > { %5837 = vmatpush3.bf16.msra.mxu0 %v6106_v42 }
 0x4ec   : > { %5838 = vmatprep.subr.bf16.mxu0 %v6107_v3 }
 0x4ef   : > { %5839 = vmatpush3.bf16.msra.mxu0 %v6107_v3 }
 0x4f0   : > { %5892 = vmatprep.subr.bf16.mxu0 %v8359_v14 }
 0x567   : > { %v5794_v63 = vpop.f32.mrf.mxu1 }
 0x568   : > { %v7832_v45 = vadd.f32 %v5794_v63, %v7829_v6 }
 0x569   : > { %v3224_v28 = vpop.f32.mrf.mxu1 }
 0x56a   : > { %v5310_v23 = vmul.f32 -1.442695, %v7832_v45  ;;  %v7836_v38 = vadd.f32 %v7829_v6, %v3224_v28 }
 0x56b   : > { %v5795_v1 = vpop.f32.mrf.mxu1 }
 0x56c   : > { %6260 = vpow2.f32 %v5310_v23  ;;  %v5308_v16 = vmul.f32 -1.442695, %v7836_v38  ;;  %v7840_v56 = vadd.f32 %v5795_v1, %v7829_v6 }
 0x56d   : > { %v3227_v39 = vpop.f32.mrf.mxu1 }
 0x56e   : > { %6262 = vpow2.f32 %v5308_v16  ;;  %v5311_v48 = vmul.f32 -1.442695, %v7840_v56  ;;  %v7844_v18 = vadd.f32 %v7829_v6, %v3227_v39 }
 0x56f   : > { %v5798_v57 = vpop.f32.mrf.mxu1 }
 0x570   : > { %6264 = vpow2.f32 %v5311_v48  ;;  %v5309_v59 = vmul.f32 -1.442695, %v7844_v18  ;;  %v7848_v7 = vadd.f32 %v5798_v57, %v7829_v6 }
 0x571   : > { %v3240_v51 = vpop.f32.mrf.mxu1 }
 0x572   : > { %6266 = vpow2.f32 %v5309_v59  ;;  %v5314_v34 = vmul.f32 -1.442695, %v7848_v7  ;;  %v7852_v32 = vadd.f32 %v7829_v6, %v3240_v51 }
 0x573   : > { %v5799_v49 = vpop.f32.mrf.mxu1 }
 0x574   : > { %6268 = vpow2.f32 %v5314_v34  ;;  %v5312_v9 = vmul.f32 -1.442695, %v7852_v32  ;;  %v7856_v4 = vadd.f32 %v5799_v49, %v7829_v6 }
 0x575   : > { %v3243_v52 = vpop.f32.mrf.mxu1 }
 0x576   : > { %6270 = vpow2.f32 %v5312_v9  ;;  %v5315_v15 = vmul.f32 -1.442695, %v7856_v4  ;;  %v7860_v53 = vadd.f32 %v7829_v6, %v3243_v52 }
 0x578   : > { %6272 = vpow2.f32 %v5315_v15  ;;  %v5313_v55 = vmul.f32 -1.442695, %v7860_v53  ;;  %v5802_v36 = vpop.f32.mrf.mxu1 }
 0x579   : > { %v6261_v19 = vpop.eup %6260  ;;  %v7864_v62 = vadd.f32 %v5802_v36, %v7829_v6 }
 0x57a   : > { %v3449_v31 = vadd.f32 1.0, %v6261_v19  ;;  %6274 = vpow2.f32 %v5313_v55  ;;  %v3256_v11 = vpop.f32.mrf.mxu1 }
 0x57b   : > { %v6263_v41 = vpop.eup %6262  ;;  %v5318_v58 = vmul.f32 -1.442695, %v7864_v62  ;;  %v7868_v20 = vadd.f32 %v7829_v6, %v3256_v11 }
 0x57c   : > { %6276 = vrcp.f32 %v3449_v31  ;;  %v3447_v0 = vadd.f32 1.0, %v6263_v41  ;;  %v5803_v43 = vpop.f32.mrf.mxu1 }
 0x57d   : > { %v6265_v47 = vpop.eup %6264  ;;  %6278 = vpow2.f32 %v5318_v58  ;;  %v5316_v33 = vmul.f32 -1.442695, %v7868_v20  ;;  %v7872_v13 = vadd.f32 %v5803_v43, %v7829_v6 }
 0x57e   : > { %6280 = vrcp.f32 %v3447_v0  ;;  %v3450_v5 = vadd.f32 1.0, %v6265_v47  ;;  %v3259_v35 = vpop.f32.mrf.mxu1 }
 0x57f   : > { %v6267_v10 = vpop.eup %6266  ;;  %6282 = vpow2.f32 %v5316_v33  ;;  %v5319_v54 = vmul.f32 -1.442695, %v7872_v13  ;;  %v7876_v44 = vadd.f32 %v7829_v6, %v3259_v35 }
 0x580   : > { %6284 = vrcp.f32 %v3450_v5  ;;  %v3448_v26 = vadd.f32 1.0, %v6267_v10  ;;  %v5806_v40 = vpop.f32.mrf.mxu1 }
 0x581   : > { %v6269_v29 = vpop.eup %6268  ;;  %6286 = vpow2.f32 %v5319_v54  ;;  %v5317_v60 = vmul.f32 -1.442695, %v7876_v44  ;;  %v7880_v22 = vadd.f32 %v5806_v40, %v7829_v6 }
 0x582   : > { %6288 = vrcp.f32 %v3448_v26  ;;  %v3453_v12 = vadd.f32 1.0, %v6269_v29  ;;  %v3272_v24 = vpop.f32.mrf.mxu1 }
 0x583   : > { %v6271_v30 = vpop.eup %6270  ;;  %6290 = vpow2.f32 %v5317_v60  ;;  %v5322_v21 = vmul.f32 -1.442695, %v7880_v22  ;;  %v7884_v17 = vadd.f32 %v7829_v6, %v3272_v24 }
 0x584   : > { %6292 = vrcp.f32 %v3453_v12  ;;  %v3451_v8 = vadd.f32 1.0, %v6271_v30  ;;  %v5807_v27 = vpop.f32.mrf.mxu1 }
 0x585   : > { %v6273_v46 = vpop.eup %6272  ;;  %6294 = vpow2.f32 %v5322_v21  ;;  %v5320_v2 = vmul.f32 -1.442695, %v7884_v17  ;;  %v7888_v25 = vadd.f32 %v5807_v27, %v7829_v6 }
 0x586   : > { %6296 = vrcp.f32 %v3451_v8  ;;  %v3454_v50 = vadd.f32 1.0, %v6273_v46  ;;  %v3275_v37 = vpop.f32.mrf.mxu1 }
 0x587   : > { %v6275_v61 = vpop.eup %6274  ;;  %6298 = vpow2.f32 %v5320_v2  ;;  %v5323_v42 = vmul.f32 -1.442695, %v7888_v25  ;;  %v7892_v3 = vadd.f32 %v7829_v6, %v3275_v37 }
 0x588   : > { %6300 = vrcp.f32 %v3454_v50  ;;  %v3452_v63 = vadd.f32 1.0, %v6275_v61 }
 0x589   : > { %v6277_v28 = vpop.eup %6276  ;;  %6302 = vpow2.f32 %v5323_v42  ;;  %v5321_v23 = vmul.f32 -1.442695, %v7892_v3  ;;  %v5810_v1 = vpop.f32.mrf.mxu1 }
 0x58a   : > { %v6279_v16 = vpop.eup %6278  ;;  %6304 = vrcp.f32 %v3452_v63  ;;  %v7896_v39 = vadd.f32 %v5810_v1, %v7829_v6  ;;  %v3545_v35 = vmul.f32 %v6277_v28, %v7832_v45 }
 0x58b   : > { %v6281_v48 = vpop.eup %6280  ;;  %v3457_v57 = vadd.f32 1.0, %v6279_v16  ;;  %6306 = vpow2.f32 %v5321_v23  ;;  %v3288_v59 = vpop.f32.mrf.mxu1 }
 0x58c   : > { %v6283_v51 = vpop.eup %6282  ;;  %v5326_v34 = vmul.f32 -1.442695, %v7896_v39  ;;  %v7900_v49 = vadd.f32 %v7829_v6, %v3288_v59  ;;  %v3543_v43 = vmul.f32 %v6281_v48, %v7836_v38 }
 0x58d   : > { %v6285_v9 = vpop.eup %6284  ;;  %6308 = vrcp.f32 %v3457_v57  ;;  %v3455_v52 = vadd.f32 1.0, %v6283_v51  ;;  %v5811_v15 = vpop.f32.mrf.mxu1 }
 0x58e   : > { %v6287_v55 = vpop.eup %6286  ;;  %6310 = vpow2.f32 %v5326_v34  ;;  %v5324_v36 = vmul.f32 -1.442695, %v7900_v49  ;;  %v7904_v19 = vadd.f32 %v5811_v15, %v7829_v6  ;;  %v3546_v11 = vmul.f32 %v6285_v9, %v7840_v56 }
 0x58f   : > { %v6289_v31 = vpop.eup %6288  ;;  %6312 = vrcp.f32 %v3455_v52  ;;  %v3458_v41 = vadd.f32 1.0, %v6287_v55  ;;  %v3291_v58 = vpop.f32.mrf.mxu1 }
 0x590   : > { %v6291_v0 = vpop.eup %6290  ;;  %v3544_v47 = vmul.f32 %v6289_v31, %v7844_v18  ;;  %6314 = vpow2.f32 %v5324_v36  ;;  %v5327_v33 = vmul.f32 -1.442695, %v7904_v19  ;;  %v7912_v54 = vadd.f32 %v7829_v6, %v3291_v58 }
 0x591   : > { %v6293_v5 = vpop.eup %6292  ;;  %6316 = vrcp.f32 %v3458_v41  ;;  %v3456_v10 = vadd.f32 1.0, %v6291_v0  ;;  %v5814_v56 = vpop.f32.mrf.mxu1  ;;  %v3576_v18 = vpack.c.bf16 %v3546_v11, %v3545_v35 }
 0x592   : > { %v6295_v26 = vpop.eup %6294  ;;  %6318 = vpow2.f32 %v5327_v33  ;;  %v7915_v40 = vadd.f32 %v5814_v56, %v7829_v6  ;;  %v3575_v38 = vpack.c.bf16 %v3544_v47, %v3543_v43  ;;  %v5325_v12 = vmul.f32 -1.442695, %v7912_v54 }
 0x593   : > { %v6297_v29 = vpop.eup %6296  ;;  %6320 = vrcp.f32 %v3456_v10  ;;  %v3461_v60 = vadd.f32 1.0, %v6295_v26  ;;  %v3304_v24 = vpop.f32.mrf.mxu1  ;;  %v3549_v59 = vmul.f32 %v6293_v5, %v7848_v7 }
 0x594   : > { %v6299_v45 = vpop.eup %6298  ;;  %v5330_v30 = vmul.f32 -1.442695, %v7915_v40  ;;  %v7920_v21 = vadd.f32 %v7829_v6, %v3304_v24  ;;  %5840 = vmatprep.mubr.bf16.mxu0 %v3575_v38  ;;  %v3547_v42 = vmul.f32 %v6297_v29, %v7852_v32 }
 0x595   : > { %v6301_v8 = vpop.eup %6300  ;;  %6322 = vrcp.f32 %v3461_v60  ;;  %v3459_v27 = vadd.f32 1.0, %v6299_v45  ;;  %v5815_v46 = vpop.f32.mrf.mxu1  ;;  %5841 = vmatmul.mubr.bf16.vlgmr.msra.gmra.mxu0 %v3576_v18 }
 0x596   : > { %v6303_v2 = vpop.eup %6302  ;;  %6324 = vpow2.f32 %v5325_v12  ;;  %v5328_v50 = vmul.f32 -1.442695, %v7920_v21  ;;  %v7924_v37 = vadd.f32 %v5815_v46, %v7829_v6  ;;  %v3550_v63 = vmul.f32 %v6301_v8, %v7856_v4 }
 0x597   : > { %v6305_v61 = vpop.eup %6304  ;;  %6326 = vrcp.f32 %v3459_v27  ;;  %v3462_v28 = vadd.f32 1.0, %v6303_v2  ;;  %v3307_v23 = vpop.f32.mrf.mxu1 }
 0x598   : > { %v6307_v1 = vpop.eup %6306  ;;  %v3548_v16 = vmul.f32 %v6305_v61, %v7860_v53  ;;  %6328 = vpow2.f32 %v5330_v30  ;;  %v5331_v48 = vmul.f32 -1.442695, %v7924_v37  ;;  %v7931_v57 = vadd.f32 %v7829_v6, %v3307_v23 }
 0x599   : > { %6330 = vrcp.f32 %v3462_v28  ;;  %v3460_v51 = vadd.f32 1.0, %v6307_v1  ;;  %v5818_v34 = vpop.f32.mrf.mxu1  ;;  %v3578_v55 = vpack.c.bf16 %v3550_v63, %v3549_v59 }
 0x59a   : > { %v6309_v32 = vpop.eup %6308  ;;  %6332 = vpow2.f32 %v5328_v50  ;;  %v5329_v4 = vmul.f32 -1.442695, %v7931_v57  ;;  %v7936_v9 = vadd.f32 %v5818_v34, %v7829_v6  ;;  %v3577_v52 = vpack.c.bf16 %v3548_v16, %v3547_v42 }
 0x59b   : > { %v6311_v53 = vpop.eup %6310  ;;  %6334 = vrcp.f32 %v3460_v51  ;;  %v3320_v15 = vpop.f32.mrf.mxu1  ;;  %v3553_v5 = vmul.f32 %v6309_v32, %v7864_v62 }
 0x59c   : > { %v6313_v36 = vpop.eup %6312  ;;  %6336 = vpow2.f32 %v5331_v48  ;;  %v5334_v31 = vmul.f32 -1.442695, %v7936_v9  ;;  %v7940_v7 = vadd.f32 %v7829_v6, %v3320_v15  ;;  %5844 = vmatprep.mubr.bf16.mxu0 %v3577_v52  ;;  %v3465_v12 = vadd.f32 1.0, %v6311_v53 }
 0x59d   : > { %v6315_v11 = vpop.eup %6314  ;;  %6338 = vpow2.f32 %v5329_v4  ;;  %v5819_v41 = vpop.f32.mrf.mxu1  ;;  %5845 = vmatmul.mubr.bf16.gmra.mxu0 %v3578_v55  ;;  %v3551_v18 = vmul.f32 %v6313_v36, %v7868_v20 }
 0x59e   : > { %v6317_v58 = vpop.eup %6316  ;;  %v3463_v0 = vadd.f32 1.0, %v6315_v11  ;;  %v5332_v43 = vmul.f32 -1.442695, %v7940_v7  ;;  %v7944_v47 = vadd.f32 %v5819_v41, %v7829_v6  ;;  %6340 = vpow2.f32 %v5334_v31 }
 0x59f   : > { %v6319_v33 = vpop.eup %6318  ;;  %v3554_v35 = vmul.f32 %v6317_v58, %v7872_v13  ;;  %v3323_v10 = vpop.f32.mrf.mxu1 }
 0x5a0   : > { %v6321_v56 = vpop.eup %6320  ;;  %6342 = vrcp.f32 %v3463_v0  ;;  %v3466_v26 = vadd.f32 1.0, %v6319_v33  ;;  %v5335_v38 = vmul.f32 -1.442695, %v7944_v47  ;;  %v7950_v29 = vadd.f32 %v7829_v6, %v3323_v10 }
 0x5a1   : > { %v3552_v60 = vmul.f32 %v6321_v56, %v7876_v44  ;;  %6344 = vpow2.f32 %v5332_v43  ;;  %v5822_v24 = vpop.f32.mrf.mxu1  ;;  %v3580_v46 = vpack.c.bf16 %v3554_v35, %v3553_v5 }
 0x5a2   : > { %v6323_v62 = vpop.eup %6322  ;;  %6346 = vrcp.f32 %v3466_v26  ;;  %v5333_v13 = vmul.f32 -1.442695, %v7950_v29  ;;  %v7956_v45 = vadd.f32 %v5822_v24, %v7829_v6 }
 0x5a3   : > { %v6325_v30 = vpop.eup %6324  ;;  %6348 = vpow2.f32 %v5335_v38  ;;  %v3336_v8 = vpop.f32.mrf.mxu1  ;;  %v3579_v27 = vpack.c.bf16 %v3552_v60, %v3551_v18  ;;  %v3557_v36 = vmul.f32 %v6323_v62, %v7880_v22 }
 0x5a4   : > { %v6327_v2 = vpop.eup %6326  ;;  %v3464_v50 = vadd.f32 1.0, %v6325_v30  ;;  %6350 = vpow2.f32 %v5333_v13  ;;  %v5338_v20 = vmul.f32 -1.442695, %v7956_v45  ;;  %v7960_v44 = vadd.f32 %v7829_v6, %v3336_v8 }
 0x5a5   : > { %v6329_v61 = vpop.eup %6328  ;;  %6352 = vrcp.f32 %v3465_v12  ;;  %v5823_v42 = vpop.f32.mrf.mxu1  ;;  %5848 = vmatprep.mubr.bf16.mxu0 %v3579_v27  ;;  %v3555_v53 = vmul.f32 %v6327_v2, %v7884_v17 }
 0x5a6   : > { %v6331_v63 = vpop.eup %6330  ;;  %6354 = vrcp.f32 %v3464_v50  ;;  %v3469_v28 = vadd.f32 1.0, %v6329_v61  ;;  %v5336_v23 = vmul.f32 -1.442695, %v7960_v44  ;;  %v7964_v1 = vadd.f32 %v5823_v42, %v7829_v6  ;;  %5849 = vmatmul.mubr.bf16.gmra.mxu0 %v3580_v46 }
 0x5a7   : > { %v6333_v16 = vpop.eup %6332  ;;  %v3558_v48 = vmul.f32 %v6331_v63, %v7888_v25  ;;  %6356 = vpow2.f32 %v5338_v20  ;;  %v3339_v59 = vpop.f32.mrf.mxu1 }
 0x5a8   : > { %v6335_v51 = vpop.eup %6334  ;;  %6358 = vrcp.f32 %v3469_v28  ;;  %v3467_v34 = vadd.f32 1.0, %v6333_v16  ;;  %v5339_v32 = vmul.f32 -1.442695, %v7964_v1  ;;  %v7969_v4 = vadd.f32 %v7829_v6, %v3339_v59 }
 0x5a9   : > { %v6337_v52 = vpop.eup %6336  ;;  %v3556_v15 = vmul.f32 %v6335_v51, %v7892_v3  ;;  %6360 = vpow2.f32 %v5336_v23  ;;  %v3582_v6 = vpack.c.bf16 %v3558_v48, %v3557_v36 }
 0x5aa   : > { %v6339_v55 = vpop.eup %6338  ;;  %6362 = vrcp.f32 %v3467_v34  ;;  %v3470_v25 = vadd.f32 1.0, %v6337_v52  ;;  %v5337_v31 = vmul.f32 -1.442695, %v7969_v4 }
 0x5ab   : > { %v3468_v11 = vadd.f32 1.0, %v6339_v55  ;;  %6364 = vpow2.f32 %v5339_v32  ;;  %v3581_v41 = vpack.c.bf16 %v3556_v15, %v3555_v53  ;;  %v6341_v58 = vpop.eup %6340 }
 0x5ac   : > { %6366 = vrcp.f32 %v3470_v25  ;;  %v3473_v5 = vadd.f32 1.0, %v6341_v58 }
 0x5ad   : > { %v6343_v0 = vpop.eup %6342  ;;  %6368 = vrcp.f32 %v3468_v11  ;;  %5852 = vmatprep.mubr.bf16.mxu0 %v3581_v41 }
 0x5ae   : > { %v6345_v17 = vpop.eup %6344  ;;  %6370 = vpow2.f32 %v5337_v31  ;;  %5853 = vmatmul.mubr.bf16.gmra.mxu0 %v3582_v6  ;;  %v3559_v60 = vmul.f32 %v6343_v0, %v7900_v49 }
 0x5af   : > { %v6347_v3 = vpop.eup %6346  ;;  %v3471_v43 = vadd.f32 1.0, %v6345_v17 }
 0x5b0   : > { %v6349_v33 = vpop.eup %6348  ;;  %v3562_v38 = vmul.f32 %v6347_v3, %v7904_v19 }
 0x5b1   : > { %v6351_v22 = vpop.eup %6350  ;;  %v3474_v35 = vadd.f32 1.0, %v6349_v33  ;;  %6372 = vrcp.f32 %v3471_v43 }
 0x5b2   : > { %v6353_v10 = vpop.eup %6352  ;;  %v3472_v56 = vadd.f32 1.0, %v6351_v22 }
 0x5b3   : > { %v6355_v26 = vpop.eup %6354  ;;  %6374 = vrcp.f32 %v3474_v35  ;;  %v3561_v62 = vmul.f32 %v6353_v10, %v7896_v39 }
 0x5b4   : > { %v6357_v18 = vpop.eup %6356  ;;  %v3560_v12 = vmul.f32 %v6355_v26, %v7912_v54  ;;  %6376 = vrcp.f32 %v3472_v56 }
 0x5b5   : > { %v6359_v24 = vpop.eup %6358  ;;  %6378 = vrcp.f32 %v3473_v5  ;;  %v3584_v27 = vpack.c.bf16 %v3562_v38, %v3561_v62  ;;  %v3477_v19 = vadd.f32 1.0, %v6357_v18 }
 0x5b6   : > { %v6361_v13 = vpop.eup %6360  ;;  %v3583_v30 = vpack.c.bf16 %v3560_v12, %v3559_v60  ;;  %v3565_v28 = vmul.f32 %v6359_v24, %v7915_v40 }
 0x5b7   : > { %v6363_v8 = vpop.eup %6362  ;;  %v3475_v2 = vadd.f32 1.0, %v6361_v13 }
 0x5b8   : > { %v6365_v46 = vpop.eup %6364  ;;  %5856 = vmatprep.mubr.bf16.mxu0 %v3583_v30  ;;  %v3563_v54 = vmul.f32 %v6363_v8, %v7920_v21  ;;  %v4085_v8 = vld [vmem:[%s8361_s10] sm:$0xff] }
 0x5b9   : > { %v6367_v50 = vpop.eup %6366  ;;  %v3478_v20 = vadd.f32 1.0, %v6365_v46  ;;  %5857 = vmatmul.mubr.bf16.gmra.mxu0 %v3584_v27  ;;  %v4086_v27 = vld [vmem:[%s8362_s1 + $0x8] sm:$0xff]  ;;  %4089 = vperm.xlu0 %6072, %v4085_v8  }
 0x5ba   : > { %v6369_v61 = vpop.eup %6368  ;;  %v3566_v42 = vmul.f32 %v6367_v50, %v7924_v37  ;;  %4094 = vperm.xlu1 %6073, %v4086_v27   ;;  %v6111_v50 = vld [vmem:[%s6725_s11 + $0x30] sm:$0xff]  }
 0x5bb   : > { %v6371_v49 = vpop.eup %6370  ;;  %v3564_v39 = vmul.f32 %v6369_v61, %v7931_v57  ;;  %6380 = vrcp.f32 %v3478_v20  ;;  %v6113_v20 = vld [vmem:[%s6725_s11 + $0x28] sm:$0xff]  }
 0x5bc   : > { %6382 = vrcp.f32 %v3475_v2  ;;  %v3476_v63 = vadd.f32 1.0, %v6371_v49  ;;  %v3586_v48 = vpack.c.bf16 %v3566_v42, %v3565_v28  ;;  %v6109_v2 = vld [vmem:[%s6725_s11 + $0x38] sm:$0xff]   ;;  %v6115_v49 = vld [vmem:[%s6725_s11 + $0x20] sm:$0xff]  }
 0x5bd   : > { %6384 = vrcp.f32 %v3477_v19  ;;  %v3585_v23 = vpack.c.bf16 %v3564_v39, %v3563_v54  ;;  %5893 = vmatpush3.bf16.msra.mxu0 %v6109_v2  ;;  %v6117_v54 = vld [vmem:[%s6725_s11 + $0x18] sm:$0xff]  }
 0x5be   : > { %6386 = vrcp.f32 %v3476_v63  ;;  %v6373_v16 = vpop.eup %6372  ;;  %5894 = vmatprep.subr.bf16.mxu0 %v8359_v14  ;;  %v8056_v63 = vld [vmem:[%s1130_s21] ss:$0 sm:$0xff] }
 0x5bf   : > { %5860 = vmatprep.mubr.bf16.mxu0 %v3585_v23  ;;  %v3567_v21 = vmul.f32 %v6373_v16, %v7940_v7 }
 0x5c0   : > { %v6375_v59 = vpop.eup %6374 }
 0x5c1   : > { %v6377_v51 = vpop.eup %6376  ;;  %5861 = vmatmul.mubr.bf16.gmra.mxu0 %v3586_v48  ;;  %v3570_v57 = vmul.f32 %v6375_v59, %v7944_v47 }
 0x5c2   : > { %v6379_v34 = vpop.eup %6378  ;;  %v3568_v37 = vmul.f32 %v6377_v51, %v7950_v29  ;;  %5895 = vmatpush3.bf16.msra.mxu0 %v6111_v50 }
 0x5c3   : > { %v3569_v52 = vmul.f32 %v6379_v34, %v7936_v9  ;;  %v7993_v9 = vpop.permute.xlu0 %3948  ;;  %5896 = vmatprep.subr.bf16.mxu0 %v8359_v14 }
 0x5c4   : > { %v3587_v32 = vpack.c.bf16 %v3568_v37, %v3567_v21 }
 0x5c5   : > { %v3588_v40 = vpack.c.bf16 %v3570_v57, %v3569_v52 }
 0x5c6   : > { %5864 = vmatprep.mubr.bf16.mxu0 %v3587_v32  ;;  %5897 = vmatpush3.bf16.msra.mxu0 %v6113_v20 }
 0x5c7   : > { %v7995_v41 = vpop.permute.xlu0 %3936  ;;  %5898 = vmatprep.subr.bf16.mxu0 %v8359_v14 }
 0x5c8   : > { %v6381_v53 = vpop.eup %6380 }
 0x5c9   : > { %v6383_v15 = vpop.eup %6382  ;;  %5865 = vmatmul.mubr.bf16.gmra.mxu0 %v3588_v40  ;;  %v3574_v25 = vmul.f32 %v6381_v53, %v7964_v1 }
 0x5ca   : > { %v6385_v55 = vpop.eup %6384  ;;  %v3571_v31 = vmul.f32 %v6383_v15, %v7960_v44  ;;  %5899 = vmatpush3.bf16.msra.mxu0 %v6115_v49 }
 0x5cb   : > { %v6387_v36 = vpop.eup %6386  ;;  %v3573_v29 = vmul.f32 %v6385_v55, %v7956_v45  ;;  %v7997_v58 = vpop.permute.xlu0 %3872  ;;  %5900 = vmatprep.subr.bf16.mxu0 %v8359_v14 }
 0x5cc   : > { %v3572_v7 = vmul.f32 %v6387_v36, %v7969_v4  ;;  %v8003_v4 = vpop.permute.xlu1 %3944 }
 0x5cd   : > { %v3590_v47 = vpack.c.bf16 %v3574_v25, %v3573_v29 }
 0x5ce   : > { %v3589_v11 = vpack.c.bf16 %v3572_v7, %v3571_v31  ;;  %5901 = vmatpush3.bf16.msra.mxu0 %v6117_v54 }
 0x5cf   : > { %v7999_v1 = vpop.permute.xlu0 %3928  ;;  %5902 = vmatprep.subr.bf16.mxu0 %v8359_v14 }
 0x5d0   : > { %5868 = vmatprep.mubr.bf16.mxu0 %v3589_v11  ;;  %v8007_v6 = vpop.permute.xlu1 %3880 }
 0x5d1   : > { %5869 = vmatmul.mubr.bf16.gmra.mxu0 %v3590_v47 }
 0x5d2   : > { %5908 = vmatprep.mubr.msk.bf16.mxu0 %vm6513_vm2, %v8359_v14 }
 0x5d3   : > { %v8001_v44 = vpop.permute.xlu0 %3864 }
 0x5d4   : > { %v8011_v17 = vpop.permute.xlu1 %3884 }
 0x5d7   : > { %v8005_v45 = vpop.permute.xlu0 %3920 }
 0x5d8   : > { %v8015_v43 = vpop.permute.xlu1 %3940 }
 0x5db   : > { %v8009_v0 = vpop.permute.xlu0 %3856 }
 0x5dc   : > { %v8019_v22 = vpop.permute.xlu1 %3876 }
 0x5df   : > { %v8013_v3 = vpop.permute.xlu0 %3912 }
 0x5e0   : > { %v8023_v35 = vpop.permute.xlu1 %3932 }
 0x5e3   : > { %v8017_v33 = vpop.permute.xlu0 %3848 }
 0x5e4   : > { %v8025_v56 = vpop.permute.xlu1 %3868 }
 0x5e7   : > { %v8021_v5 = vpop.permute.xlu0 %3904 }
 0x5e8   : > { %v8029_v38 = vpop.permute.xlu1 %3924 }
 0x5eb   : > { %v3841_v10 = vpop.permute.xlu0 %3840 }
 0x5ec   : > { %v8031_v60 = vpop.permute.xlu1 %3860 }
 0x5ef   : > { %v8027_v26 = vpop.permute.xlu0 %3896 }
 0x5f0   : > { %v8035_v24 = vpop.permute.xlu1 %3916 }
 0x5f3   : > { %v3833_v18 = vpop.permute.xlu0 %3832 }
 0x5f4   : > { %v3853_v13 = vpop.permute.xlu1 %3852 }
 0x5f7   : > { %v8033_v12 = vpop.permute.xlu0 %3888 }
 0x5f8   : > { %v8039_v46 = vpop.permute.xlu1 %3908 }
 0x5fb   : > { %v3825_v62 = vpop.permute.xlu0 %3824 }
 0x5fc   : > { %v3845_v19 = vpop.permute.xlu1 %3844 }
 0x5ff   : > { %v4025_v30 = vpop.trf.xlu0 }
 0x600   : > { %4065 = vmatprep.mubr.bf16.mxu1 %v4025_v30  ;;  %v8047_v61 = vpop.permute.xlu1 %3900 }
 0x604   : > { %v3837_v42 = vpop.permute.xlu1 %3836 }
 0x608   : > { %v8058_v28 = vpop.permute.xlu1 %3892 }
 0x60c   : > { %v3829_v37 = vpop.permute.xlu1 %3828 }
 0x655   : > { %v5842_v39 = vpop.f32.mrf.mxu0 }
 0x656   : > { %v3705_v16 = vadd.f32 %v5842_v39, %v8056_v63 }
 0x657   : > { %v3696_v23 = vpop.f32.mrf.mxu0 }
 0x658   : > { %v3697_v48 = vadd.f32 %v8056_v63, %v3696_v23  ;;  %v8065_v57 = vmul.f32 %v3833_v18, %v3705_v16 }
 0x659   : > { %v5843_v59 = vpop.f32.mrf.mxu0 }
 0x65a   : > { %v8062_v51 = vmul.f32 %v3825_v62, %v3697_v48  ;;  %v3708_v34 = vadd.f32 %v5843_v59, %v8056_v63  ;;  %8364 = vst [vmem:[#allocation32_spill] sm:$0xff] %v8065_v57 }
 0x65b   : > { %v3699_v21 = vpop.f32.mrf.mxu0 }
 0x65c   : > { %8363 = vst [vmem:[#allocation31_spill] sm:$0xff] %v8062_v51  ;;  %v8067_v32 = vmul.f32 %v3837_v42, %v3708_v34  ;;  %v3700_v52 = vadd.f32 %v8056_v63, %v3699_v21 }
 0x65d   : > { %v5846_v40 = vpop.f32.mrf.mxu0 }
 0x65e   : > { %v8072_v15 = vmul.f32 %v3829_v37, %v3700_v52  ;;  %v3721_v25 = vadd.f32 %v5846_v40, %v8056_v63 }
 0x65f   : > { %v3712_v55 = vpop.f32.mrf.mxu0 }
 0x660   : > { %8365 = vst [vmem:[#allocation33_spill] sm:$0xff] %v8072_v15  ;;  %v3713_v7 = vadd.f32 %v8056_v63, %v3712_v55  ;;  %v8080_v47 = vmul.f32 %v8017_v33, %v3721_v25 }
 0x661   : > { %v5847_v31 = vpop.f32.mrf.mxu0 }
 0x662   : > { %v3724_v29 = vadd.f32 %v5847_v31, %v8056_v63  ;;  %v8085_v30 = vmul.f32 %v3841_v10, %v3713_v7 }
 0x663   : > { %v3715_v11 = vpop.f32.mrf.mxu0 }
 0x664   : > { %v8082_v18 = vmul.f32 %v3853_v13, %v3724_v29  ;;  %v3716_v62 = vadd.f32 %v8056_v63, %v3715_v11 }
 0x666   : > { %v8089_v27 = vmul.f32 %v3845_v19, %v3716_v62  ;;  %v5850_v2 = vpop.f32.mrf.mxu0 }
 0x668   : > { %v3728_v20 = vpop.f32.mrf.mxu0 }
 0x66a   : > { %v5851_v49 = vpop.f32.mrf.mxu0 }
 0x66c   : > { %v3731_v54 = vpop.f32.mrf.mxu0 }
 0x66e   : > { %v5854_v33 = vpop.f32.mrf.mxu0 }
 0x66f   : > { %v3753_v11 = vadd.f32 %v5854_v33, %v8056_v63 }
 0x670   : > { %v3744_v42 = vpop.f32.mrf.mxu0 }
 0x671   : > { %v3965_v33 = vmul.f32 %v8007_v6, %v3753_v11  ;;  %v3745_v57 = vadd.f32 %v8056_v63, %v3744_v42  ;;  %v6116_v11 = vld [vmem:[%s6728_s5 + $0x18] sm:$0xff]  }
 0x672   : > { %v5855_v13 = vpop.f32.mrf.mxu0 }
 0x673   : > { %v3756_v31 = vadd.f32 %v5855_v13, %v8056_v63  ;;  %v3963_v42 = vmul.f32 %v7997_v58, %v3745_v57  ;;  %v3729_v58 = vadd.f32 %v8056_v63, %v3728_v20 }
 0x674   : > { %v3747_v39 = vpop.f32.mrf.mxu0 }
 0x675   : > { %v3966_v50 = vmul.f32 %v8011_v17, %v3756_v31  ;;  %v3748_v8 = vadd.f32 %v8056_v63, %v3747_v39  ;;  %v3740_v31 = vadd.f32 %v5851_v49, %v8056_v63 }
 0x679   : > { %v8093_v23 = vpop.f32.mrf.mxu0 }
 0x67b   : > { %v8095_v10 = vpop.f32.mrf.mxu0 }
 0x67d   : > { %v8097_v16 = vpop.f32.mrf.mxu0 }
 0x67f   : > { %v8099_v48 = vpop.f32.mrf.mxu0 }
 0x681   : > { %v5862_v19 = vpop.f32.mrf.mxu0 }
 0x683   : > { %v3776_v59 = vpop.f32.mrf.mxu0 }
 0x684   : > { %v3777_v20 = vadd.f32 %v8056_v63, %v3776_v59 }
 0x685   : > { %v5863_v34 = vpop.f32.mrf.mxu0 }
 0x687   : > { %v3779_v21 = vpop.f32.mrf.mxu0 }
 0x689   : > { %v5866_v37 = vpop.f32.mrf.mxu0 }
 0x68b   : > { %v3792_v52 = vpop.f32.mrf.mxu0 }
 0x68d   : > { %v5867_v40 = vpop.f32.mrf.mxu0 }
 0x68e   : > { %v3804_v51 = vadd.f32 %v5867_v40, %v8056_v63  ;;  %v3992_v40 = vpack.c.bf16 %v3966_v50, %v3965_v33  ;;  %v6118_v33 = vld [vmem:[%s6728_s5 + $0x10] sm:$0xff]  }
 0x68f   : > { %v3795_v55 = vpop.f32.mrf.mxu0 }
 0x691   : > { %v5870_v25 = vpop.f32.mrf.mxu0 }
 0x692   : > { %v3817_v29 = vadd.f32 %v5870_v25, %v8056_v63 }
 0x693   : > { %v3808_v7 = vpop.f32.mrf.mxu0 }
 0x694   : > { %v3809_v36 = vadd.f32 %v8056_v63, %v3808_v7  ;;  %v3981_v15 = vmul.f32 %v8003_v4, %v3817_v29  ;;  %v3801_v7 = vadd.f32 %v5866_v37, %v8056_v63  ;;  %v3964_v4 = vmul.f32 %v8019_v22, %v3748_v8  ;;  %v6108_v29 = vld [vmem:[%s6728_s5 + $0x38] sm:$0xff]  }
 0x695   : > { %v5871_v62 = vpop.f32.mrf.mxu0  ;;  %v3732_v22 = vadd.f32 %v8056_v63, %v3731_v54  ;;  %v3780_v54 = vadd.f32 %v8056_v63, %v3779_v21  ;;  %v3971_v21 = vmul.f32 %v8021_v5, %v3777_v20 }
 0x696   : > { %v3820_v53 = vadd.f32 %v5871_v62, %v8056_v63  ;;  %v3979_v62 = vmul.f32 %v7995_v41, %v3809_v36  ;;  %v3977_v41 = vmul.f32 %v7999_v1, %v3801_v7  ;;  %v3991_v36 = vpack.c.bf16 %v3964_v4, %v3963_v42  ;;  %v6123_v7 = vld [vmem:[%s6725_s11] sm:$0xff]  }
 0x697   : > { %v3811_v14 = vpop.f32.mrf.mxu0  ;;  %v3785_v1 = vadd.f32 %v5862_v19, %v8056_v63  ;;  %v3972_v37 = vmul.f32 %v8039_v46, %v3780_v54  ;;  %v6130_v54 = vld [vmem:[%s6733_s25 + $0x8] sm:$0xff]  }
 0x698   : > { %v3982_v13 = vmul.f32 %v7993_v9, %v3820_v53  ;;  %v3812_v25 = vadd.f32 %v8056_v63, %v3811_v14  ;;  %v3978_v9 = vmul.f32 %v8023_v35, %v3804_v51  ;;  %v3796_v14 = vadd.f32 %v8056_v63, %v3795_v55 }
 0x699   : > { %v3737_v53 = vadd.f32 %v5850_v2, %v8056_v63  ;;  %v3788_v35 = vadd.f32 %v5863_v34, %v8056_v63  ;;  %v3995_v59 = vpack.c.bf16 %v3972_v37, %v3971_v21 }
 0x69a   : > { %v3980_v17 = vmul.f32 %v8015_v43, %v3812_v25  ;;  %v4000_v39 = vpack.c.bf16 %v3982_v13, %v3981_v15  ;;  %v3793_v43 = vadd.f32 %v8056_v63, %v3792_v52  ;;  %v3962_v15 = vmul.f32 %v8025_v56, %v3740_v31  ;;  %v6119_v13 = vld [vmem:[%s6725_s11 + $0x10] sm:$0xff]   ;;  %v6121_v25 = vld [vmem:[%s6725_s11 + $0x8] sm:$0xff]   ;;  %s8380_s11 = sld [smem:[#allocation23_spill]] (%p4492_p6) }
 0x69b   : > { %v3976_v51 = vmul.f32 %v8029_v38, %v3796_v14  ;;  %v3998_v8 = vpack.c.bf16 %v3978_v9, %v3977_v41  ;;  %v3961_v2 = vmul.f32 %v8001_v44, %v3737_v53  ;;  %v3960_v56 = vmul.f32 %v8031_v60, %v3732_v22  ;;  %5903 = vmatpush3.bf16.msra.mxu0 %v6119_v13  ;;  %v4090_v53 = vpop.permute.xlu0 %4089 }
 0x69c   : > { %5552 = vmatprep.subr.bf16.mxu1 %v4000_v39  ;;  %v3999_v6 = vpack.c.bf16 %v3980_v17, %v3979_v62  ;;  %v3975_v57 = vmul.f32 %v8005_v45, %v3793_v43  ;;  %v3974_v49 = vmul.f32 %v8035_v24, %v3788_v35  ;;  %v3959_v38 = vmul.f32 %v8009_v0, %v3729_v58  ;;  %v6120_v62 = vld [vmem:[%s6728_s5 + $0x8] sm:$0xff]   ;;  %v8186_v17 = vld [vmem:[#allocation2] sm:$0xff]  ;;  %v6124_v58 = vld [vmem:[%s6733_s25 + $0x38] sm:$0xff]  }
 0x69d   : > { %5553 = vmatpush3.bf16.msra.mxu1 %v3992_v40  ;;  %v3990_v50 = vpack.c.bf16 %v3962_v15, %v3961_v2  ;;  %v3973_v44 = vmul.f32 %v8013_v3, %v3785_v1  ;;  %v3772_v45 = vadd.f32 %v8097_v16, %v8056_v63  ;;  %v3769_v24 = vadd.f32 %v8093_v23, %v8056_v63  ;;  %v8188_v39 = vld [vmem:[#allocation2 + $0x8] sm:$0xff]  ;;  %v6122_v40 = vld [vmem:[%s6728_s5] sm:$0xff]   ;;  %v6125_v1 = vld [vmem:[%s6733_s25 + $0x30] sm:$0xff]  }
 0x69e   : > { %5554 = vmatprep.subr.bf16.mxu1 %v3999_v6  ;;  %v3997_v34 = vpack.c.bf16 %v3976_v51, %v3975_v57  ;;  %v3989_v19 = vpack.c.bf16 %v3960_v56, %v3959_v38  ;;  %v3764_v3 = vadd.f32 %v8056_v63, %v8099_v48  ;;  %v8366_v16 = vpack.c.bf16 %v8082_v18, %v8080_v47  ;;  %v8368_v18 = vld [vmem:[#allocation32_spill] sm:$0xff]  ;;  %v6128_v56 = vld [vmem:[%s6733_s25 + $0x18] sm:$0xff]  }
 0x69f   : > { %v3996_v60 = vpack.c.bf16 %v3974_v49, %v3973_v44  ;;  %v3970_v0 = vmul.f32 %v8047_v61, %v3772_v45  ;;  %v3969_v46 = vmul.f32 %v8027_v26, %v3769_v24  ;;  %v3761_v52 = vadd.f32 %v8056_v63, %v8095_v10  ;;  %v8370_v63 = vld [vmem:[#allocation33_spill] sm:$0xff]  ;;  %v8371_v10 = vld [vmem:[#allocation31_spill] sm:$0xff] }
 0x6a0   : > { %v3968_v5 = vmul.f32 %v8058_v28, %v3764_v3  ;;  %v8367_v61 = vpack.c.bf16 %v8089_v27, %v8085_v30  ;;  %v8369_v26 = vpack.c.bf16 %v8067_v32, %v8368_v18  ;;  %v8372_v55 = vpack.c.bf16 %v8370_v63, %v8371_v10  ;;  %v4009_v28 = vpop.trf.xlu1  ;;  %v6112_v32 = vld [vmem:[%s6728_s5 + $0x28] sm:$0xff]   ;;  %v6114_v27 = vld [vmem:[%s6728_s5 + $0x20] sm:$0xff]   ;;  %v6129_v49 = vld [vmem:[%s6733_s25 + $0x10] sm:$0xff]  }
 0x6a1   : > { %5555 = vmatpush3.bf16.msra.mxu1 %v3991_v36  ;;  %v3994_v23 = vpack.c.bf16 %v3970_v0, %v3969_v46  ;;  %v3967_v48 = vmul.f32 %v8033_v12, %v3761_v52  ;;  %v8373_v30 = vmov 0.0   ;;  %v6110_v12 = vld [vmem:[%s6728_s5 + $0x30] sm:$0xff]   ;;  %v4099_v31 = vpack.c.bf16 %v8188_v39, %v8186_v17  ;;  %v6126_v57 = vld [vmem:[%s6733_s25 + $0x28] sm:$0xff]   ;;  %s8374_s5 = scalar_lea.vmem %s6618_s17, %s6699_s16  ;;  %v5368_v18 = vld [vmem:[%s1151_s8] ss:$0 sm:$0xff]  ;;  %s8377_s8 = sld [smem:[#allocation21_spill]] (%p4492_p6) }
 0x6a2   : > { %5556 = vmatprep.subr.bf16.mxu1 %v3998_v8  ;;  %5904 = vmatprep.subr.bf16.mxu0 %v8373_v30  ;;  %v5365_v44 = vld [vmem:[%s8374_s5] ss:$0 sm:$0xff]  ;;  %s8381_s16 = sld [smem:[#allocation25_spill]] (%p4492_p6) }
 0x6a3   : > { %v3993_v47 = vpack.c.bf16 %v3968_v5, %v3967_v48  ;;  %5905 = vmatpush3.bf16.msra.mxu0 %v6121_v25 }
 0x6a4   : > { %5906 = vmatprep.subr.bf16.mxu0 %v8373_v30  ;;  %v4095_v41 = vpop.permute.xlu1 %4094 }
 0x6a5   : > { %5557 = vmatpush3.bf16.msra.mxu1 %v3990_v50  ;;  %v6127_v50 = vld [vmem:[%s6733_s25 + $0x20] sm:$0xff]  }
 0x6a6   : > { %5558 = vmatprep.subr.bf16.mxu1 %v3997_v34  ;;  %v6131_v34 = vld [vmem:[%s6733_s25] sm:$0xff]   ;;  %s8376_s25 = sld [smem:[#allocation20_spill]] (%p4492_p6) }
 0x6a7   : > { %5907 = vmatpush3.bf16.msra.mxu0 %v6123_v7 }
 0x6a9   : > { %5559 = vmatpush3.bf16.msra.mxu1 %v3989_v19 }
 0x6aa   : > { %5560 = vmatprep.subr.bf16.mxu1 %v3996_v60  ;;  %5909 = vmatmul.mubr.bf16.vlgmr.msra.gmra.mxu0 %v4099_v31 }
 0x6ad   : > { %5561 = vmatpush3.bf16.msra.mxu1 %v8366_v16 }
 0x6ae   : > { %5562 = vmatprep.subr.bf16.mxu1 %v3995_v59 }
 0x6b1   : > { %5563 = vmatpush3.bf16.msra.mxu1 %v8367_v61 }
 0x6b2   : > { %5564 = vmatprep.subr.bf16.mxu1 %v3994_v23 }
 0x6b5   : > { %5565 = vmatpush3.bf16.msra.mxu1 %v8369_v26 }
 0x6b6   : > { %5566 = vmatprep.subr.bf16.mxu1 %v3993_v47 }
 0x6b9   : > { %5567 = vmatpush3.bf16.msra.mxu1 %v8372_v55 }
 0x6ba   : > { %5872 = vmatprep.subr.bf16.mxu1 %v8373_v30 }
 0x6bc   : > { %4066 = vmatmul.mubr.bf16.vlgmr.msra.gmra.mxu1 %v4009_v28 }
 0x6bd   : > { %5873 = vmatpush3.bf16.msra.mxu1 %v6108_v29  ;;  %5888 = vmatprep.mubr.msk.bf16.mxu1 %vm6513_vm2, %v8373_v30 }
 0x6be   : > { %5874 = vmatprep.subr.bf16.mxu1 %v8373_v30 }
 0x6c1   : > { %5875 = vmatpush3.bf16.msra.mxu1 %v6110_v12 }
 0x6c2   : > { %5876 = vmatprep.subr.bf16.mxu1 %v8373_v30 }
 0x6c5   : > { %5877 = vmatpush3.bf16.msra.mxu1 %v6112_v32 }
 0x6c6   : > { %5878 = vmatprep.subr.bf16.mxu1 %v8373_v30 }
 0x6c9   : > { %5879 = vmatpush3.bf16.msra.mxu1 %v6114_v27 }
 0x6ca   : > { %5880 = vmatprep.subr.bf16.mxu1 %v8373_v30 }
 0x6cd   : > { %5881 = vmatpush3.bf16.msra.mxu1 %v6116_v11 }
 0x6ce   : > { %5882 = vmatprep.subr.bf16.mxu1 %v8373_v30 }
 0x6d1   : > { %5883 = vmatpush3.bf16.msra.mxu1 %v6118_v33 }
 0x6d2   : > { %5884 = vmatprep.subr.bf16.mxu1 %v8373_v30 }
 0x6d5   : > { %5885 = vmatpush3.bf16.msra.mxu1 %v6120_v62 }
 0x6d6   : > { %5886 = vmatprep.subr.bf16.mxu1 %v8373_v30 }
 0x6d9   : > { %5887 = vmatpush3.bf16.msra.mxu1 %v6122_v40 }
 0x6da   : > { %5912 = vmatprep.subr.bf16.mxu1 %v8373_v30 }
 0x76a   : > { %v4304_v35 = vpop.f32.mrf.mxu0 }
 0x76c   : > { %v5910_v51 = vpop.f32.mrf.mxu0 }
 0x76d   : > { %v6400_v51 = vld [vmem:[%s8376_s25 + $0x38] sm:$0xff] (%p4492_p6)  }
 0x76e   : > { %v4307_v8 = vpop.f32.mrf.mxu0 }
 0x770   : > { %v5911_v2 = vpop.f32.mrf.mxu0 }
 0x771   : > { %v6401_v2 = vld [vmem:[%s8376_s25 + $0x30] sm:$0xff] (%p4492_p6)  }
 0x77c   : > { %v5568_v4 = vpop.f32.mrf.mxu1 }
 0x77e   : > { %v5569_v9 = vpop.f32.mrf.mxu1 }
 0x77f   : > { %v5570_v6 = vadd.f32 %v5569_v9, %v5568_v4 }
 0x780   : > { %v5571_v14 = vpop.f32.mrf.mxu1 }
 0x781   : > { %v4097_v15 = vmul.f32 %v5570_v6, %v4090_v53  ;;  %v5377_v6 = vld [vmem:[%s1154_s26] ss:$0 sm:$0xff]  ;;  %s8382_s26 = sld [smem:[#allocation12_spill]] (%p4492_p6) }
 0x782   : > { %v5572_v42 = vpop.f32.mrf.mxu1 }
 0x783   : > { %v5573_v43 = vadd.f32 %v5572_v42, %v5571_v14  ;;  %v5378_v42 = vld [vmem:[%s1157_s14] ss:$0 sm:$0xff]  ;;  %s8378_s14 = sld [smem:[#allocation24_spill]] (%p4492_p6) }
 0x785   : > { %v4098_v22 = vmul.f32 %v5573_v43, %v4095_v41 }
 0x787   : > { %v4116_v36 = vpack.c.bf16 %v4098_v22, %v4097_v15 }
 0x789   : > { %5889 = vmatmul.mubr.bf16.vlgmr.msra.gmra.mxu1 %v4116_v36 }
 0x78a   : > { %5928 = vmatprep.mubr.msk.bf16.mxu1 %vm6513_vm2, %v8373_v30  ;;  %5913 = vmatpush3.bf16.msra.mxu1 %v6124_v58  ;;  %vm6518_vm2 = vmmov (%p4492_p6), 0   ;;  %v6402_v58 = vld [vmem:[%s8376_s25 + $0x28] sm:$0xff] (%p4492_p6)  }
 0x78b   : > { %5914 = vmatprep.subr.bf16.mxu1 %v8373_v30 }
 0x78e   : > { %5915 = vmatpush3.bf16.msra.mxu1 %v6125_v1  ;;  %v6403_v1 = vld [vmem:[%s8376_s25 + $0x20] sm:$0xff] (%p4492_p6)  }
 0x78f   : > { %5916 = vmatprep.subr.bf16.mxu1 %v8373_v30 }
 0x792   : > { %5917 = vmatpush3.bf16.msra.mxu1 %v6126_v57  ;;  %v6404_v57 = vld [vmem:[%s8376_s25 + $0x18] sm:$0xff] (%p4492_p6)  }
 0x793   : > { %5918 = vmatprep.subr.bf16.mxu1 %v8373_v30 }
 0x796   : > { %5919 = vmatpush3.bf16.msra.mxu1 %v6127_v50  ;;  %v6405_v50 = vld [vmem:[%s8376_s25 + $0x10] sm:$0xff] (%p4492_p6)  }
 0x797   : > { %5920 = vmatprep.subr.bf16.mxu1 %v8373_v30 }
 0x79a   : > { %5921 = vmatpush3.bf16.msra.mxu1 %v6128_v56  ;;  %v6406_v56 = vld [vmem:[%s8376_s25 + $0x8] sm:$0xff] (%p4492_p6)  }
 0x79b   : > { %5922 = vmatprep.subr.bf16.mxu1 %v8373_v30 }
 0x79e   : > { %5923 = vmatpush3.bf16.msra.mxu1 %v6129_v49  ;;  %v6407_v49 = vld [vmem:[%s8376_s25] sm:$0xff] (%p4492_p6)  }
 0x79f   : > { %5924 = vmatprep.subr.bf16.mxu1 %v8373_v30 }
 0x7a2   : > { %5925 = vmatpush3.bf16.msra.mxu1 %v6130_v54 }
 0x7a3   : > { %5926 = vmatprep.subr.bf16.mxu1 %v8373_v30 }
 0x7a6   : > { %5927 = vmatpush3.bf16.msra.mxu1 %v6131_v34 }
 0x849   : > { %v4215_v38 = vpop.f32.mrf.mxu1 }
 0x84a   : > { %v4305_v20 = vadd.f32 %v4304_v35, %v4215_v38 }
 0x84b   : > { %v5890_v19 = vpop.f32.mrf.mxu1 }
 0x84c   : > { %v4318_v45 = vadd.f32 %v5365_v44, %v4305_v20 }
 0x84d   : > { %v4218_v37 = vpop.f32.mrf.mxu1 }
 0x84e   : > { %v5366_v60 = vmul.f32 -1.442695, %v4318_v45  ;;  %v4308_v24 = vadd.f32 %v4307_v8, %v4218_v37  ;;  %v6517_v8 = vmov (%p4492_p6), 0.0  }
 0x84f   : > { %v5891_v21 = vpop.f32.mrf.mxu1  ;;  %5932 = vmatprep.subr.bf16.mxu0 (%p4492_p6), %v6517_v8  ;;  %5952 = vmatprep.subr.bf16.mxu1 (%p4492_p6), %v6517_v8 }
 0x850   : > { %6388 = vpow2.f32 %v5366_v60  ;;  %v4319_v0 = vadd.f32 %v5365_v44, %v4308_v24  ;;  %5933 = vmatpush3.bf16.msra.mxu0 (%p4492_p6), %v6400_v51  ;;  %5948 = vmatprep.mubr.msk.bf16.mxu0 (%p4492_p6), %vm6518_vm2, %v6517_v8  ;;  %v5380_v44 = vld [vmem:[%s8377_s8] ss:$0 sm:$0xff] (%p4492_p6) }
 0x851   : > { %5934 = vmatprep.subr.bf16.mxu0 (%p4492_p6), %v6517_v8  ;;  %v5393_v51 = vld [vmem:[%s8381_s16] ss:$0 sm:$0xff] (%p4492_p6) }
 0x852   : > { %v5367_v3 = vmul.f32 -1.442695, %v4319_v0 }
 0x854   : > { %6390 = vpow2.f32 %v5367_v3  ;;  %5935 = vmatpush3.bf16.msra.mxu0 (%p4492_p6), %v6401_v2 }
 0x855   : > { %5936 = vmatprep.subr.bf16.mxu0 (%p4492_p6), %v6517_v8 }
 0x858   : > { %5937 = vmatpush3.bf16.msra.mxu0 (%p4492_p6), %v6402_v58 }
 0x859   : > { %5938 = vmatprep.subr.bf16.mxu0 (%p4492_p6), %v6517_v8 }
 0x85c   : > { %5939 = vmatpush3.bf16.msra.mxu0 (%p4492_p6), %v6403_v1 }
 0x85d   : > { %v6389_v59 = vpop.eup %6388  ;;  %5940 = vmatprep.subr.bf16.mxu0 (%p4492_p6), %v6517_v8 }
 0x85e   : > { %v4326_v16 = vadd.f32 1.0, %v6389_v59 }
 0x860   : > { %6392 = vrcp.f32 %v4326_v16  ;;  %5941 = vmatpush3.bf16.msra.mxu0 (%p4492_p6), %v6404_v57 }
 0x861   : > { %v6391_v46 = vpop.eup %6390  ;;  %5942 = vmatprep.subr.bf16.mxu0 (%p4492_p6), %v6517_v8 }
 0x862   : > { %v4327_v52 = vadd.f32 1.0, %v6391_v46 }
 0x864   : > { %6394 = vrcp.f32 %v4327_v52  ;;  %5943 = vmatpush3.bf16.msra.mxu0 (%p4492_p6), %v6405_v50  ;;  %v4780_v50 = vld [vmem:[%s8382_s26] sm:$0x3] (%p4492_p6) }
 0x865   : > { %5944 = vmatprep.subr.bf16.mxu0 (%p4492_p6), %v6517_v8 }
 0x868   : > { %5945 = vmatpush3.bf16.msra.mxu0 (%p4492_p6), %v6406_v56 }
 0x869   : > { %5946 = vmatprep.subr.bf16.mxu0 (%p4492_p6), %v6517_v8 }
 0x86c   : > { %5947 = vmatpush3.bf16.msra.mxu0 (%p4492_p6), %v6407_v49 }
 0x86d   : > { %v6393_v5 = vpop.eup %6392  ;;  %5972 = vmatprep.subr.mxu0 (%p4492_p6), %v6517_v8 }
 0x86e   : > { %v4332_v61 = vmul.f32 %v6393_v5, %v4318_v45 }
 0x871   : > { %v6395_v23 = vpop.eup %6394 }
 0x872   : > { %v4333_v48 = vmul.f32 %v6395_v23, %v4319_v0  ;;  %v6408_v23 = vld [vmem:[%s8378_s14 + $0x38] sm:$0xff] (%p4492_p6)  }
 0x874   : > { %v4334_v47 = vpack.c.bf16 %v4333_v48, %v4332_v61  ;;  %v6409_v61 = vld [vmem:[%s8378_s14 + $0x30] sm:$0xff] (%p4492_p6)   ;;  %v6410_v48 = vld [vmem:[%s8378_s14 + $0x28] sm:$0xff] (%p4492_p6)  }
 0x876   : > { %5929 = vmatmul.mubr.bf16.vlgmr.msra.gmra.mxu1 %v4334_v47  ;;  %v6411_v47 = vld [vmem:[%s8378_s14 + $0x20] sm:$0xff] (%p4492_p6)  }
 0x877   : > { %5968 = vmatprep.mubr.msk.bf16.mxu1 (%p4492_p6), %vm6518_vm2, %v6517_v8  ;;  %5953 = vmatpush3.bf16.msra.mxu1 (%p4492_p6), %v6408_v23 }
 0x878   : > { %5954 = vmatprep.subr.bf16.mxu1 (%p4492_p6), %v6517_v8 }
 0x87b   : > { %5955 = vmatpush3.bf16.msra.mxu1 (%p4492_p6), %v6409_v61 }
 0x87c   : > { %5956 = vmatprep.subr.bf16.mxu1 (%p4492_p6), %v6517_v8 }
 0x87f   : > { %5957 = vmatpush3.bf16.msra.mxu1 (%p4492_p6), %v6410_v48 }
 0x880   : > { %5958 = vmatprep.subr.bf16.mxu1 (%p4492_p6), %v6517_v8 }
 0x883   : > { %5959 = vmatpush3.bf16.msra.mxu1 (%p4492_p6), %v6411_v47 }
 0x884   : > { %5960 = vmatprep.subr.bf16.mxu1 (%p4492_p6), %v6517_v8 }
 0x936   : > { %v4440_v26 = vpop.f32.mrf.mxu1 }
 0x937   : > { %v4441_v63 = vadd.f32 %v5368_v18, %v4440_v26  ;;  %v6413_v26 = vld [vmem:[%s8378_s14 + $0x10] sm:$0xff] (%p4492_p6)  }
 0x938   : > { %v5930_v10 = vpop.f32.mrf.mxu1 }
 0x939   : > { %v4447_v55 = vadd.f32 %v4441_v63, %v8186_v17  ;;  %v6414_v63 = vld [vmem:[%s8378_s14 + $0x8] sm:$0xff] (%p4492_p6)   ;;  %v6415_v10 = vld [vmem:[%s8378_s14] sm:$0xff] (%p4492_p6)  }
 0x93a   : > { %v4443_v28 = vpop.f32.mrf.mxu1 }
 0x93b   : > { %v4444_v29 = vadd.f32 %v5368_v18, %v4443_v28  ;;  %4451 = vadd.xlane.f32.xlu0 %v4447_v55  ;;  %v6412_v18 = vld [vmem:[%s8378_s14 + $0x18] sm:$0xff] (%p4492_p6)  }
 0x93c   : > { %v5931_v30 = vpop.f32.mrf.mxu1  ;;  %5961 = vmatpush3.bf16.msra.mxu1 (%p4492_p6), %v6412_v18 }
 0x93d   : > { %v4448_v12 = vadd.f32 %v4444_v29, %v8188_v39  ;;  %5962 = vmatprep.subr.bf16.mxu1 (%p4492_p6), %v6517_v8 }
 0x93f   : > { %4453 = vadd.xlane.f32.xlu1 %v4448_v12 }
 0x940   : > { %5963 = vmatpush3.bf16.msra.mxu1 (%p4492_p6), %v6413_v26 }
 0x941   : > { %5964 = vmatprep.subr.bf16.mxu1 (%p4492_p6), %v6517_v8 }
 0x944   : > { %5965 = vmatpush3.bf16.msra.mxu1 (%p4492_p6), %v6414_v63 }
 0x945   : > { %5966 = vmatprep.subr.bf16.mxu1 (%p4492_p6), %v6517_v8 }
 0x948   : > { %5967 = vmatpush3.bf16.msra.mxu1 (%p4492_p6), %v6415_v10 }
 0x9c4   : > { %v4452_v32 = vpop.xlane.xlu0 %4451 }
 0x9c5   : > { %v4456_v27 = vmul.f32 0.0078125, %v4452_v32 }
 0x9c7   : > { %v4458_v11 = vsub.f32 %v4447_v55, %v4456_v27 }
 0x9c8   : > { %v4454_v13 = vpop.xlane.xlu1 %4453 }
 0x9c9   : > { %v4457_v25 = vmul.f32 0.0078125, %v4454_v13  ;;  %v4460_v33 = vmul.f32 %v4458_v11, %v4458_v11 }
 0x9cb   : > { %v4459_v7 = vsub.f32 %v4448_v12, %v4457_v25  ;;  %4462 = vadd.xlane.f32.xlu0 %v4460_v33  ;;  %v5390_v25 = vld [vmem:[%s8380_s11] ss:$0 sm:$0xff] (%p4492_p6) }
 0x9cd   : > { %v4461_v62 = vmul.f32 %v4459_v7, %v4459_v7 }
 0x9cf   : > { %4464 = vadd.xlane.f32.xlu0 %v4461_v62 }
 0xa54   : > { %v4463_v17 = vpop.xlane.xlu0 %4462 }
 0xa55   : > { %v4466_v31 = vmul.f32 0.0078125, %v4463_v17 }
 0xa57   : > { %v4468_v40 = vadd.f32 1e-05, %v4466_v31 }
 0xa58   : > { %v4465_v39 = vpop.xlane.xlu0 %4464 }
 0xa59   : > { %6396 = vrsqrt.f32 %v4468_v40  ;;  %v4467_v4 = vmul.f32 0.0078125, %v4465_v39 }
 0xa5b   : > { %v4469_v9 = vadd.f32 1e-05, %v4467_v4 }
 0xa5d   : > { %6398 = vrsqrt.f32 %v4469_v9 }
 0xa66   : > { %v6397_v14 = vpop.eup %6396 }
 0xa67   : > { %v4472_v53 = vmul.f32 %v6397_v14, %v4458_v11  ;;  %v5389_v11 = vld [vmem:[%s8379_s7] ss:$0 sm:$0xff] (%p4492_p6) }
 0xa69   : > { %v4480_v41 = vmul.f32 %v5377_v6, %v4472_v53 }
 0xa6a   : > { %v6399_v43 = vpop.eup %6398 }
 0xa6b   : > { %v4488_v15 = vadd.f32 %v5378_v42, %v4480_v41  ;;  %v4473_v22 = vmul.f32 %v6399_v43, %v4459_v7 }
 0xa6d   : > { %4490 = vst [vmem:[#allocation2] sm:$0xff] %v4488_v15  ;;  %v4481_v36 = vmul.f32 %v5377_v6, %v4473_v22  ;;  %4496 = sbr.rel (!%p4492_p6) target bundleno = 3621 (0xe25), region = 152 }
 0xa6f   : > { %v4489_v35 = vadd.f32 %v5378_v42, %v4481_v36 }
 0xa71   : > { %4491 = vst [vmem:[#allocation2 + $0x8] sm:$0xff] %v4489_v35 }
 0xa74   : > { %v4497_v54 = vld [vmem:[#allocation2] sm:$0xff] }
 0xa78   : > { %v4498_v34 = vld [vmem:[#allocation2 + $0x8] sm:$0xff] }
 0xa79   : > { %v4499_v38 = vpack.c.bf16 %v4498_v34, %v4497_v54 }
 0xa7b   : > { %5949 = vmatmul.mubr.bf16.vlgmr.msra.gmra.mxu0 %v4499_v38 }
 0xa7c   : > { %5976 = vmatprep.mubr.msk.f32.mxu0 %vm6518_vm2, %v6517_v8 }
 0xb3b   : > { %v4605_v20 = vpop.f32.mrf.mxu0 }
 0xb3c   : > { %v4606_v19 = vadd.f32 %v5380_v44, %v4605_v20 }
 0xb3d   : > { %v5950_v45 = vpop.f32.mrf.mxu0 }
 0xb3e   : > { %4614 = vadd.xlane.f32.xlu0 %v4606_v19 }
 0xb3f   : > { %v4608_v37 = vpop.f32.mrf.mxu0 }
 0xb40   : > { %v4609_v60 = vadd.f32 %v5380_v44, %v4608_v37 }
 0xb41   : > { %v5951_v24 = vpop.f32.mrf.mxu0 }
 0xb42   : > { %4616 = vadd.xlane.f32.xlu0 %v4609_v60 }
 0xbc7   : > { %v4615_v21 = vpop.xlane.xlu0 %4614 }
 0xbc8   : > { %v4619_v0 = vmul.f32 0.0078125, %v4615_v21 }
 0xbca   : > { %v4621_v3 = vsub.f32 %v4606_v19, %v4619_v0 }
 0xbcb   : > { %v4617_v59 = vpop.xlane.xlu0 %4616 }
 0xbcc   : > { %v4620_v16 = vmul.f32 0.0078125, %v4617_v59  ;;  %v4623_v46 = vmul.f32 %v4621_v3, %v4621_v3 }
 0xbce   : > { %v4622_v52 = vsub.f32 %v4609_v60, %v4620_v16  ;;  %4625 = vadd.xlane.f32.xlu1 %v4623_v46 }
 0xbd0   : > { %v4624_v5 = vmul.f32 %v4622_v52, %v4622_v52 }
 0xbd2   : > { %4627 = vadd.xlane.f32.xlu1 %v4624_v5 }
 0xc57   : > { %v4626_v55 = vpop.xlane.xlu1 %4625 }
 0xc58   : > { %v4629_v28 = vmul.f32 0.0078125, %v4626_v55 }
 0xc5a   : > { %v4631_v29 = vadd.f32 1e-05, %v4629_v28 }
 0xc5b   : > { %v4628_v30 = vpop.xlane.xlu1 %4627 }
 0xc5c   : > { %6416 = vrsqrt.f32 %v4631_v29  ;;  %v4630_v12 = vmul.f32 0.0078125, %v4628_v30 }
 0xc5e   : > { %v4632_v32 = vadd.f32 1e-05, %v4630_v12 }
 0xc60   : > { %6418 = vrsqrt.f32 %v4632_v32 }
 0xc69   : > { %v6417_v27 = vpop.eup %6416 }
 0xc6a   : > { %v4635_v13 = vmul.f32 %v6417_v27, %v4621_v3 }
 0xc6c   : > { %v4643_v33 = vmul.f32 %v5389_v11, %v4635_v13 }
 0xc6d   : > { %v6419_v7 = vpop.eup %6418 }
 0xc6e   : > { %v4636_v62 = vmul.f32 %v6419_v7, %v4622_v52  ;;  %v4651_v17 = vadd.f32 %v5390_v25, %v4643_v33 }
 0xc70   : > { %v4644_v31 = vmul.f32 %v5389_v11, %v4636_v62  ;;  %v5391_v40 = vmul.f32 -1.442695, %v4651_v17 }
 0xc72   : > { %v4652_v39 = vadd.f32 %v5390_v25, %v4644_v31  ;;  %6420 = vpow2.f32 %v5391_v40 }
 0xc74   : > { %v5392_v4 = vmul.f32 -1.442695, %v4652_v39 }
 0xc76   : > { %6422 = vpow2.f32 %v5392_v4 }
 0xc7f   : > { %v6421_v9 = vpop.eup %6420 }
 0xc80   : > { %v4659_v14 = vadd.f32 1.0, %v6421_v9 }
 0xc82   : > { %6424 = vrcp.f32 %v4659_v14 }
 0xc83   : > { %v6423_v6 = vpop.eup %6422 }
 0xc84   : > { %v4660_v53 = vadd.f32 1.0, %v6423_v6 }
 0xc86   : > { %6426 = vrcp.f32 %v4660_v53 }
 0xc8f   : > { %v6425_v42 = vpop.eup %6424 }
 0xc90   : > { %v4665_v43 = vmul.f32 %v6425_v42, %v4651_v17 }
 0xc93   : > { %v6427_v41 = vpop.eup %6426 }
 0xc94   : > { %v4666_v15 = vmul.f32 %v6427_v41, %v4652_v39 }
 0xc96   : > { %v4667_v22 = vpack.c.bf16 %v4666_v15, %v4665_v43 }
 0xc98   : > { %5969 = vmatmul.mubr.bf16.vlgmr.msra.gmra.mxu1 %v4667_v22 }
 0xd58   : > { %v4773_v36 = vpop.f32.mrf.mxu1 }
 0xd59   : > { %v4774_v57 = vadd.f32 %v5393_v51, %v4773_v36 }
 0xd5a   : > { %v5970_v35 = vpop.f32.mrf.mxu1 }
 0xd5c   : > { %v4776_v2 = vpop.f32.mrf.mxu1 }
 0xd5d   : > { %v4777_v58 = vadd.f32 %v5393_v51, %v4776_v2 }
 0xd5e   : > { %v5971_v1 = vpop.f32.mrf.mxu1 }
 0xd5f   : > { %5973 = vmatpush3.msra.mxu0 %v4777_v58 }
 0xd60   : > { %5974 = vmatprep.subr.mxu0 %v6517_v8 }
 0xd61   : > { %5975 = vmatpush3.msra.mxu0 %v4774_v57 }
 0xd62   : > { %5977 = vmatmul.mubr.msk.f32.vlgmr.msra.gmra.mxu0 %vm2120_vm5, %v4780_v50 }
 0xe22   : > { %v4850_v56 = vpop.f32.mrf.mxu0 }
 0xe23   : > { %4854 = vst [vmem:[#allocation6] sm:$0x3] %v4850_v56 }
 0xe24   : > { %v5978_v49 = vpop.f32.mrf.mxu0 }
 0xe25 PF: > { %s8383_s2 = sld [smem:[#allocation28_spill]]  ;;  %s6519_s28 = smov [#allocation6]  }
 0xe26   : > { %s4862_s0 = sshll.u32 %s6519_s28, 4  ;;  %s4863_s0 = int_to_ptr.vmem [resolvable:$true] %s4862_s0 }
 0xe27   : > { %s6428_s10 = scalar_lea.vmem %s4863_s0, 32  ;;  %p6435_p11 = scmp.lt.s32.totalorder %s4863_s0, %s4863_s0 }
 0xe28   : > { %p6429_p8 = scmp.ne.s32.totalorder %s4863_s0, %s6428_s10  ;;  %p6436_p12 = scmp.lt.s32.totalorder %s6428_s10, %s6428_s10 }
 0xe2a   : > { %p6437_p13 = por %p6436_p12, %p6435_p11 }
 0xe2b   : > { %s8384_s22 = sadd.s32 4294967295, %s8383_s2  }
 0xe2c   : > { %p8277_p7 = scmp.eq.s32.totalorder %s8384_s22, 1 }
 0xe2e   : > { %p6430_p9 = pnand %p6429_p8, %p8277_p7 }
 0xe30   : > { %p6431_p10 = pneg %p6430_p9 }
 0xe32   : > { %p6438_p0 = pnand %p6437_p13, %p6431_p10 }
 0xe34   : > { %6441 = shalt.err (!%p6438_p0)
}
 0xe35   : > { %s8386_s5 = sld [smem:[#allocation26_spill]] }
 0xe3b   : > { %5981 = dma.vmem_to_hbm [thread:$0]  (%p8277_p7), %s4863_s0, 32, %s8386_s5, [#allocation7]  }
 0xe3c   : > { %6465 = dma.done.wait (%p8277_p7), [#allocation7], 32  }
 0xe3d   : > { %6467 = vsyncadd (%p8277_p7), [#allocation7], 4294967264 }
 0xe3e PF: > { %s8387_s21 = sld [smem:[#allocation28_spill]] }
 0xe3f   : > { %s8388_s7 = sld [smem:[#allocation27_spill]] }
 0xe40   : > { %s8389_s10 = sld [smem:[#allocation29_spill]] }
 0xe44   : > { %s70_s11 = sadd.s32 1, %s8387_s21  }
 0xe45   : > { %p67_p1 = scmp.ge.s32.totalorder %s70_s11, 4  }
 0xe47   :  { %69 = sbr.rel (!%p67_p1) target bundleno = 55 (0x37), region = 253 }
 0xe4c   :  { %4875 = vsyncpa [#allocation7], 1 }
 0xe4d   :  { %4877 = vsyncpa [#allocation7 + $0x1], 1 }

</bundles_post_ra>
